<compile_context>
chip_gen: v5e
topology: v5e:2x2
jax: 0.10.0
libtpu: 0.0.40
codegen_flags: <defaults>
</compile_context>

<pallas_src>
import math

import jax
import jax.numpy as jnp
from jax import lax
from jax.experimental import pallas as pl
from jax.experimental.pallas import tpu as pltpu

HIDDEN = 512
NUM_HEADS = 8
HEAD_DIM = HIDDEN // NUM_HEADS
LN_EPS = 1e-12


def _cross_att_kernel(hs_ref, ctx_ref, mask_ref,
                      wq_ref, bq_ref, wk_ref, bk_ref, wv_ref, bv_ref,
                      wo_ref, bo_ref, gamma_ref, beta_ref,
                      out_ref, attn_scratch):
    # One batch element per grid step; batch axis is "parallel".
    hs = hs_ref[0]                     # (Sq, H) f32
    ctx = ctx_ref[0]                   # (Sk, H) f32
    mask = mask_ref[0]                 # (1, Sk) additive mask, f32

    hs_b = hs.astype(jnp.bfloat16)
    ctx_b = ctx.astype(jnp.bfloat16)

    scale = 1.0 / math.sqrt(HEAD_DIM)
    # Q / K / V projections: bf16 MXU inputs, f32 accumulation.
    # Fold the 1/sqrt(head_dim) scale into Q once (not per head score tile).
    q = (jnp.dot(hs_b, wq_ref[...], preferred_element_type=jnp.float32)
         + bq_ref[...]) * scale                                      # (Sq, H)
    k = jnp.dot(ctx_b, wk_ref[...],
                preferred_element_type=jnp.float32) + bk_ref[...]    # (Sk, H)
    v = jnp.dot(ctx_b, wv_ref[...],
                preferred_element_type=jnp.float32) + bv_ref[...]    # (Sk, H)

    q_b = q.astype(jnp.bfloat16)
    k_b = k.astype(jnp.bfloat16)
    v_b = v.astype(jnp.bfloat16)

    # Static head loop (unrolled at trace time); each head writes its result
    # to a static lane offset of a persistent VMEM scratch — no concatenate.
    for h in range(NUM_HEADS):
        lo, hi = h * HEAD_DIM, (h + 1) * HEAD_DIM
        qh = q_b[:, lo:hi]                       # (Sq, hd)
        kh = k_b[:, lo:hi]                       # (Sk, hd)
        vh = v_b[:, lo:hi]                       # (Sk, hd)
        # Contract over head_dim directly on the MXU (no kh.T / XLU transpose).
        scores = lax.dot_general(
            qh, kh, dimension_numbers=(((1,), (1,)), ((), ())),
            preferred_element_type=jnp.float32)  # (Sq, Sk)
        scores = scores + mask                   # broadcast over query rows
        m = jnp.max(scores, axis=-1, keepdims=True)
        e = jnp.exp(scores - m)
        s = jnp.sum(e, axis=-1, keepdims=True)
        p = e * pl.reciprocal(s, approx=True)    # softmax; divide on EUP
        attn_scratch[:, lo:hi] = jnp.dot(
            p.astype(jnp.bfloat16), vh, preferred_element_type=jnp.float32)

    # Output dense + residual + LayerNorm (eps=1e-12, biased variance).
    attn_b = attn_scratch[...].astype(jnp.bfloat16)                  # (Sq, H)
    dense = jnp.dot(attn_b, wo_ref[...],
                    preferred_element_type=jnp.float32) + bo_ref[...]
    x = dense + hs
    mu = jnp.mean(x, axis=-1, keepdims=True)
    var = jnp.mean((x - mu) ** 2, axis=-1, keepdims=True)
    y = (x - mu) * lax.rsqrt(var + LN_EPS) * gamma_ref[...] + beta_ref[...]
    out_ref[0] = y.astype(out_ref.dtype)


def bert_crossatt_layer(hidden, context, mask, params):
    """hidden: (B, Sq, H), context: (B, Sk, H), mask: (B, 1, Sk) additive."""
    B, Sq, H = hidden.shape
    _, Sk, _ = context.shape
    wq, bq, wk, bk, wv, bv, wo, bo, gamma, beta = params

    # bf16 weight matrices feed the MXU at full rate; accumulation stays f32.
    wq = wq.astype(jnp.bfloat16)
    wk = wk.astype(jnp.bfloat16)
    wv = wv.astype(jnp.bfloat16)
    wo = wo.astype(jnp.bfloat16)

    def full2d(shape):
        return pl.BlockSpec(shape, lambda b: (0, 0))

    in_specs = [
        pl.BlockSpec((1, Sq, H), lambda b: (b, 0, 0)),    # hidden
        pl.BlockSpec((1, Sk, H), lambda b: (b, 0, 0)),    # context
        pl.BlockSpec((1, 1, Sk), lambda b: (b, 0, 0)),    # additive mask (B,1,Sk)
        full2d((H, H)), full2d((1, H)),                   # Wq, bq
        full2d((H, H)), full2d((1, H)),                   # Wk, bk
        full2d((H, H)), full2d((1, H)),                   # Wv, bv
        full2d((H, H)), full2d((1, H)),                   # Wo, bo
        full2d((1, H)), full2d((1, H)),                   # gamma, beta
    ]
    out_specs = pl.BlockSpec((1, Sq, H), lambda b: (b, 0, 0))

    return pl.pallas_call(
        _cross_att_kernel,
        out_shape=jax.ShapeDtypeStruct((B, Sq, H), hidden.dtype),
        grid=(B,),
        in_specs=in_specs,
        out_specs=out_specs,
        scratch_shapes=[pltpu.VMEM((Sq, H), jnp.float32)],
        compiler_params=pltpu.CompilerParams(
            dimension_semantics=("parallel",)),
    )(hidden, context, mask, wq, bq, wk, bk, wv, bv, wo, bo, gamma, beta)


def reference(hidden, context, mask, params):
    """Pure-JAX f32 reference matching the PyTorch forward (eval mode).
    mask: (B, 1, Sk) additive, broadcast over heads and query positions."""
    wq, bq, wk, bk, wv, bv, wo, bo, gamma, beta = params
    B, Sq, H = hidden.shape
    Sk = context.shape[1]
    q = hidden @ wq + bq
    k = context @ wk + bk
    v = context @ wv + bv
    q = q.reshape(B, Sq, NUM_HEADS, HEAD_DIM).transpose(0, 2, 1, 3)
    k = k.reshape(B, Sk, NUM_HEADS, HEAD_DIM).transpose(0, 2, 1, 3)
    v = v.reshape(B, Sk, NUM_HEADS, HEAD_DIM).transpose(0, 2, 1, 3)
    scores = jnp.einsum('bhqd,bhkd->bhqk', q, k) / math.sqrt(HEAD_DIM)
    scores = scores + mask[:, None, :, :]        # (B,1,1,Sk) broadcast
    probs = jax.nn.softmax(scores, axis=-1)
    ctxl = jnp.einsum('bhqk,bhkd->bhqd', probs, v)
    ctxl = ctxl.transpose(0, 2, 1, 3).reshape(B, Sq, H)
    dense = ctxl @ wo + bo
    x = dense + hidden
    mu = x.mean(-1, keepdims=True)
    var = ((x - mu) ** 2).mean(-1, keepdims=True)
    return (x - mu) / jnp.sqrt(var + LN_EPS) * gamma + beta


def init_params(key):
    ks = jax.random.split(key, 8)
    std = 0.02
    wq = jax.random.normal(ks[0], (HIDDEN, HIDDEN), jnp.float32) * std
    wk = jax.random.normal(ks[1], (HIDDEN, HIDDEN), jnp.float32) * std
    wv = jax.random.normal(ks[2], (HIDDEN, HIDDEN), jnp.float32) * std
    wo = jax.random.normal(ks[3], (HIDDEN, HIDDEN), jnp.float32) * std
    bq = jax.random.normal(ks[4], (1, HIDDEN), jnp.float32) * std
    bk = jax.random.normal(ks[5], (1, HIDDEN), jnp.float32) * std
    bv = jax.random.normal(ks[6], (1, HIDDEN), jnp.float32) * std
    bo = jax.random.normal(ks[7], (1, HIDDEN), jnp.float32) * std
    gamma = jnp.ones((1, HIDDEN), jnp.float32)
    beta = jnp.zeros((1, HIDDEN), jnp.float32)
    return (wq, bq, wk, bk, wv, bv, wo, bo, gamma, beta)


if __name__ == "__main__":
    B, Sq, Sk = 2, 8, 16
    key = jax.random.PRNGKey(0)
    k_hid, k_ctx, k_par = jax.random.split(key, 3)

    hidden = jax.random.normal(k_hid, (B, Sq, HIDDEN), jnp.float32)
    context = jax.random.normal(k_ctx, (B, Sk, HIDDEN), jnp.float32)
    params = init_params(k_par)

    # Additive attention mask, (B, 1, Sk): batch 0 attends to all 16 ctx
    # tokens, batch 1 only to the first 10 (rest masked with -1e9).
    valid_len = jnp.array([16, 10], jnp.int32)
    key_pos = jnp.arange(Sk)[None, :] < valid_len[:, None]          # (B, Sk)
    mask = jnp.where(key_pos, 0.0, -1e9).astype(jnp.float32)[:, None, :]

    # TODO(synk): dropout (attention-prob and hidden) is inference-mode
    # identity here; training-mode stochastic masking is not implemented.
    out = bert_crossatt_layer(hidden, context, mask, params)
    out = jax.block_until_ready(out)

    ref = reference(hidden, context, mask, params)
    assert out.shape == (B, Sq, HIDDEN)
    # bf16 MXU inputs + approx reciprocal loosen the tolerance slightly
    # (accumulation / softmax / LayerNorm are all f32).
    assert jnp.allclose(out, ref, atol=3e-2, rtol=3e-2), (
        float(jnp.max(jnp.abs(out - ref))))

    print("KERNEL_OK")
</pallas_src>

<mosaic_0001>
module attributes {stable_mosaic.version = 11 : i64} {
  func.func @_cross_att_kernel(%arg0: i32, %arg1: memref<1x8x512xf32, #tpu.memory_space<vmem>>, %arg2: memref<1x16x512xf32, #tpu.memory_space<vmem>>, %arg3: memref<1x1x16xf32, #tpu.memory_space<vmem>>, %arg4: memref<512x512xbf16, #tpu.memory_space<vmem>>, %arg5: memref<1x512xf32, #tpu.memory_space<vmem>>, %arg6: memref<512x512xbf16, #tpu.memory_space<vmem>>, %arg7: memref<1x512xf32, #tpu.memory_space<vmem>>, %arg8: memref<512x512xbf16, #tpu.memory_space<vmem>>, %arg9: memref<1x512xf32, #tpu.memory_space<vmem>>, %arg10: memref<512x512xbf16, #tpu.memory_space<vmem>>, %arg11: memref<1x512xf32, #tpu.memory_space<vmem>>, %arg12: memref<1x512xf32, #tpu.memory_space<vmem>>, %arg13: memref<1x512xf32, #tpu.memory_space<vmem>>, %arg14: memref<1x8x512xf32, #tpu.memory_space<vmem>>, %arg15: memref<8x512xf32, #tpu.memory_space<vmem>>) attributes {dimension_semantics = [#tpu.dimension_semantics<parallel>], iteration_bounds = array<i64: 2>, scalar_prefetch = 0 : i64, scratch_operands = 1 : i64, tpu.core_type = #tpu.core_type<tc>, window_params = [{transform_indices = @transform_0, window_bounds = array<i64: 1, 8, 512>}, {transform_indices = @transform_1, window_bounds = array<i64: 1, 16, 512>}, {transform_indices = @transform_2, window_bounds = array<i64: 1, 1, 16>}, {pipeline_mode = #tpu.pipeline_mode<synchronous>, transform_indices = @transform_3, window_bounds = array<i64: 512, 512>}, {pipeline_mode = #tpu.pipeline_mode<synchronous>, transform_indices = @transform_4, window_bounds = array<i64: 1, 512>}, {pipeline_mode = #tpu.pipeline_mode<synchronous>, transform_indices = @transform_5, window_bounds = array<i64: 512, 512>}, {pipeline_mode = #tpu.pipeline_mode<synchronous>, transform_indices = @transform_6, window_bounds = array<i64: 1, 512>}, {pipeline_mode = #tpu.pipeline_mode<synchronous>, transform_indices = @transform_7, window_bounds = array<i64: 512, 512>}, {pipeline_mode = #tpu.pipeline_mode<synchronous>, transform_indices = @transform_8, window_bounds = array<i64: 1, 512>}, {pipeline_mode = #tpu.pipeline_mode<synchronous>, transform_indices = @transform_9, window_bounds = array<i64: 512, 512>}, {pipeline_mode = #tpu.pipeline_mode<synchronous>, transform_indices = @transform_10, window_bounds = array<i64: 1, 512>}, {pipeline_mode = #tpu.pipeline_mode<synchronous>, transform_indices = @transform_11, window_bounds = array<i64: 1, 512>}, {pipeline_mode = #tpu.pipeline_mode<synchronous>, transform_indices = @transform_12, window_bounds = array<i64: 1, 512>}, {transform_indices = @transform_13, window_bounds = array<i64: 1, 8, 512>}]} {
    %c0 = arith.constant 0 : index
    %c0_0 = arith.constant 0 : index
    %c0_1 = arith.constant 0 : index
    %0 = vector.load %arg1[%c0, %c0_0, %c0_1] : memref<1x8x512xf32, #tpu.memory_space<vmem>>, vector<1x8x512xf32>
    %1 = vector.shape_cast %0 : vector<1x8x512xf32> to vector<8x512xf32>
    %c0_2 = arith.constant 0 : index
    %c0_3 = arith.constant 0 : index
    %c0_4 = arith.constant 0 : index
    %2 = vector.load %arg2[%c0_2, %c0_3, %c0_4] : memref<1x16x512xf32, #tpu.memory_space<vmem>>, vector<1x16x512xf32>
    %3 = vector.shape_cast %2 : vector<1x16x512xf32> to vector<16x512xf32>
    %c0_5 = arith.constant 0 : index
    %c0_6 = arith.constant 0 : index
    %c0_7 = arith.constant 0 : index
    %4 = vector.load %arg3[%c0_5, %c0_6, %c0_7] : memref<1x1x16xf32, #tpu.memory_space<vmem>>, vector<1x1x16xf32>
    %5 = vector.shape_cast %4 : vector<1x1x16xf32> to vector<1x16xf32>
    %6 = arith.truncf %1 : vector<8x512xf32> to vector<8x512xbf16>
    %7 = arith.truncf %3 : vector<16x512xf32> to vector<16x512xbf16>
    %c0_8 = arith.constant 0 : index
    %c0_9 = arith.constant 0 : index
    %8 = vector.load %arg4[%c0_8, %c0_9] : memref<512x512xbf16, #tpu.memory_space<vmem>>, vector<512x512xbf16>
    %cst = arith.constant dense<0.000000e+00> : vector<8x512xf32>
    %9 = tpu.matmul %6, %8, %cst {dimension_numbers = #tpu.dot_dimension_numbers<[1], [0], [0], [1], [0, 0, 1, 1], [], []>} : vector<8x512xbf16>, vector<512x512xbf16>, vector<8x512xf32> -> vector<8x512xf32>
    %c0_10 = arith.constant 0 : index
    %c0_11 = arith.constant 0 : index
    %10 = vector.load %arg5[%c0_10, %c0_11] : memref<1x512xf32, #tpu.memory_space<vmem>>, vector<1x512xf32>
    %11 = vector.broadcast %10 : vector<1x512xf32> to vector<8x512xf32>
    %12 = arith.addf %9, %11 : vector<8x512xf32>
    %cst_12 = arith.constant 1.250000e-01 : f32
    %13 = vector.broadcast %cst_12 : f32 to vector<8x512xf32>
    %14 = arith.mulf %12, %13 : vector<8x512xf32>
    %c0_13 = arith.constant 0 : index
    %c0_14 = arith.constant 0 : index
    %15 = vector.load %arg6[%c0_13, %c0_14] : memref<512x512xbf16, #tpu.memory_space<vmem>>, vector<512x512xbf16>
    %cst_15 = arith.constant dense<0.000000e+00> : vector<16x512xf32>
    %16 = tpu.matmul %7, %15, %cst_15 {dimension_numbers = #tpu.dot_dimension_numbers<[1], [0], [0], [1], [0, 0, 1, 1], [], []>} : vector<16x512xbf16>, vector<512x512xbf16>, vector<16x512xf32> -> vector<16x512xf32>
    %c0_16 = arith.constant 0 : index
    %c0_17 = arith.constant 0 : index
    %17 = vector.load %arg7[%c0_16, %c0_17] : memref<1x512xf32, #tpu.memory_space<vmem>>, vector<1x512xf32>
    %18 = vector.broadcast %17 : vector<1x512xf32> to vector<16x512xf32>
    %19 = arith.addf %16, %18 : vector<16x512xf32>
    %c0_18 = arith.constant 0 : index
    %c0_19 = arith.constant 0 : index
    %20 = vector.load %arg8[%c0_18, %c0_19] : memref<512x512xbf16, #tpu.memory_space<vmem>>, vector<512x512xbf16>
    %cst_20 = arith.constant dense<0.000000e+00> : vector<16x512xf32>
    %21 = tpu.matmul %7, %20, %cst_20 {dimension_numbers = #tpu.dot_dimension_numbers<[1], [0], [0], [1], [0, 0, 1, 1], [], []>} : vector<16x512xbf16>, vector<512x512xbf16>, vector<16x512xf32> -> vector<16x512xf32>
    %c0_21 = arith.constant 0 : index
    %c0_22 = arith.constant 0 : index
    %22 = vector.load %arg9[%c0_21, %c0_22] : memref<1x512xf32, #tpu.memory_space<vmem>>, vector<1x512xf32>
    %23 = vector.broadcast %22 : vector<1x512xf32> to vector<16x512xf32>
    %24 = arith.addf %21, %23 : vector<16x512xf32>
    %25 = arith.truncf %14 : vector<8x512xf32> to vector<8x512xbf16>
    %26 = arith.truncf %19 : vector<16x512xf32> to vector<16x512xbf16>
    %27 = arith.truncf %24 : vector<16x512xf32> to vector<16x512xbf16>
    %28 = vector.extract_strided_slice %25 {offsets = [0, 0], sizes = [8, 64], strides = [1, 1]} : vector<8x512xbf16> to vector<8x64xbf16>
    %29 = vector.extract_strided_slice %26 {offsets = [0, 0], sizes = [16, 64], strides = [1, 1]} : vector<16x512xbf16> to vector<16x64xbf16>
    %30 = vector.extract_strided_slice %27 {offsets = [0, 0], sizes = [16, 64], strides = [1, 1]} : vector<16x512xbf16> to vector<16x64xbf16>
    %cst_23 = arith.constant dense<0.000000e+00> : vector<8x16xf32>
    %31 = tpu.matmul %28, %29, %cst_23 {dimension_numbers = #tpu.dot_dimension_numbers<[1], [1], [0], [0], [0, 0, 1, 0], [], []>} : vector<8x64xbf16>, vector<16x64xbf16>, vector<8x16xf32> -> vector<8x16xf32>
    %32 = vector.broadcast %5 : vector<1x16xf32> to vector<8x16xf32>
    %33 = arith.addf %31, %32 : vector<8x16xf32>
    %cst_24 = arith.constant dense<0xFF800000> : vector<8xf32>
    %34 = vector.multi_reduction <maximumf>, %33, %cst_24 [1] : vector<8x16xf32> to vector<8xf32>
    %35 = vector.shape_cast %34 : vector<8xf32> to vector<8x1xf32>
    %36 = vector.broadcast %35 : vector<8x1xf32> to vector<8x16xf32>
    %37 = arith.subf %33, %36 : vector<8x16xf32>
    %38 = math.exp %37 : vector<8x16xf32>
    %cst_25 = arith.constant dense<0.000000e+00> : vector<8xf32>
    %39 = vector.multi_reduction <add>, %38, %cst_25 [1] : vector<8x16xf32> to vector<8xf32>
    %40 = vector.shape_cast %39 : vector<8xf32> to vector<8x1xf32>
    %41 = tpu.reciprocal %40 {approx = true} : vector<8x1xf32> -> vector<8x1xf32>
    %42 = vector.broadcast %41 : vector<8x1xf32> to vector<8x16xf32>
    %43 = arith.mulf %38, %42 : vector<8x16xf32>
    %44 = arith.truncf %43 : vector<8x16xf32> to vector<8x16xbf16>
    %cst_26 = arith.constant dense<0.000000e+00> : vector<8x64xf32>
    %45 = tpu.matmul %44, %30, %cst_26 {dimension_numbers = #tpu.dot_dimension_numbers<[1], [0], [0], [1], [0, 0, 1, 1], [], []>} : vector<8x16xbf16>, vector<16x64xbf16>, vector<8x64xf32> -> vector<8x64xf32>
    %c0_27 = arith.constant 0 : index
    %c0_28 = arith.constant 0 : index
    %46 = vector.load %arg15[%c0_27, %c0_28] : memref<8x512xf32, #tpu.memory_space<vmem>>, vector<8x64xf32>
    tpu.vector_store %arg15[%c0_27, %c0_28], %45 {strides = array<i32>} : memref<8x512xf32, #tpu.memory_space<vmem>>, vector<8x64xf32>,
    %47 = vector.extract_strided_slice %25 {offsets = [0, 64], sizes = [8, 64], strides = [1, 1]} : vector<8x512xbf16> to vector<8x64xbf16>
    %48 = vector.extract_strided_slice %26 {offsets = [0, 64], sizes = [16, 64], strides = [1, 1]} : vector<16x512xbf16> to vector<16x64xbf16>
    %49 = vector.extract_strided_slice %27 {offsets = [0, 64], sizes = [16, 64], strides = [1, 1]} : vector<16x512xbf16> to vector<16x64xbf16>
    %cst_29 = arith.constant dense<0.000000e+00> : vector<8x16xf32>
    %50 = tpu.matmul %47, %48, %cst_29 {dimension_numbers = #tpu.dot_dimension_numbers<[1], [1], [0], [0], [0, 0, 1, 0], [], []>} : vector<8x64xbf16>, vector<16x64xbf16>, vector<8x16xf32> -> vector<8x16xf32>
    %51 = vector.broadcast %5 : vector<1x16xf32> to vector<8x16xf32>
    %52 = arith.addf %50, %51 : vector<8x16xf32>
    %cst_30 = arith.constant dense<0xFF800000> : vector<8xf32>
    %53 = vector.multi_reduction <maximumf>, %52, %cst_30 [1] : vector<8x16xf32> to vector<8xf32>
    %54 = vector.shape_cast %53 : vector<8xf32> to vector<8x1xf32>
    %55 = vector.broadcast %54 : vector<8x1xf32> to vector<8x16xf32>
    %56 = arith.subf %52, %55 : vector<8x16xf32>
    %57 = math.exp %56 : vector<8x16xf32>
    %cst_31 = arith.constant dense<0.000000e+00> : vector<8xf32>
    %58 = vector.multi_reduction <add>, %57, %cst_31 [1] : vector<8x16xf32> to vector<8xf32>
    %59 = vector.shape_cast %58 : vector<8xf32> to vector<8x1xf32>
    %60 = tpu.reciprocal %59 {approx = true} : vector<8x1xf32> -> vector<8x1xf32>
    %61 = vector.broadcast %60 : vector<8x1xf32> to vector<8x16xf32>
    %62 = arith.mulf %57, %61 : vector<8x16xf32>
    %63 = arith.truncf %62 : vector<8x16xf32> to vector<8x16xbf16>
    %cst_32 = arith.constant dense<0.000000e+00> : vector<8x64xf32>
    %64 = tpu.matmul %63, %49, %cst_32 {dimension_numbers = #tpu.dot_dimension_numbers<[1], [0], [0], [1], [0, 0, 1, 1], [], []>} : vector<8x16xbf16>, vector<16x64xbf16>, vector<8x64xf32> -> vector<8x64xf32>
    %c0_33 = arith.constant 0 : index
    %c64 = arith.constant 64 : index
    %65 = vector.load %arg15[%c0_33, %c64] : memref<8x512xf32, #tpu.memory_space<vmem>>, vector<8x64xf32>
    tpu.vector_store %arg15[%c0_33, %c64], %64 {strides = array<i32>} : memref<8x512xf32, #tpu.memory_space<vmem>>, vector<8x64xf32>,
    %66 = vector.extract_strided_slice %25 {offsets = [0, 128], sizes = [8, 64], strides = [1, 1]} : vector<8x512xbf16> to vector<8x64xbf16>
    %67 = vector.extract_strided_slice %26 {offsets = [0, 128], sizes = [16, 64], strides = [1, 1]} : vector<16x512xbf16> to vector<16x64xbf16>
    %68 = vector.extract_strided_slice %27 {offsets = [0, 128], sizes = [16, 64], strides = [1, 1]} : vector<16x512xbf16> to vector<16x64xbf16>
    %cst_34 = arith.constant dense<0.000000e+00> : vector<8x16xf32>
    %69 = tpu.matmul %66, %67, %cst_34 {dimension_numbers = #tpu.dot_dimension_numbers<[1], [1], [0], [0], [0, 0, 1, 0], [], []>} : vector<8x64xbf16>, vector<16x64xbf16>, vector<8x16xf32> -> vector<8x16xf32>
    %70 = vector.broadcast %5 : vector<1x16xf32> to vector<8x16xf32>
    %71 = arith.addf %69, %70 : vector<8x16xf32>
    %cst_35 = arith.constant dense<0xFF800000> : vector<8xf32>
    %72 = vector.multi_reduction <maximumf>, %71, %cst_35 [1] : vector<8x16xf32> to vector<8xf32>
    %73 = vector.shape_cast %72 : vector<8xf32> to vector<8x1xf32>
    %74 = vector.broadcast %73 : vector<8x1xf32> to vector<8x16xf32>
    %75 = arith.subf %71, %74 : vector<8x16xf32>
    %76 = math.exp %75 : vector<8x16xf32>
    %cst_36 = arith.constant dense<0.000000e+00> : vector<8xf32>
    %77 = vector.multi_reduction <add>, %76, %cst_36 [1] : vector<8x16xf32> to vector<8xf32>
    %78 = vector.shape_cast %77 : vector<8xf32> to vector<8x1xf32>
    %79 = tpu.reciprocal %78 {approx = true} : vector<8x1xf32> -> vector<8x1xf32>
    %80 = vector.broadcast %79 : vector<8x1xf32> to vector<8x16xf32>
    %81 = arith.mulf %76, %80 : vector<8x16xf32>
    %82 = arith.truncf %81 : vector<8x16xf32> to vector<8x16xbf16>
    %cst_37 = arith.constant dense<0.000000e+00> : vector<8x64xf32>
    %83 = tpu.matmul %82, %68, %cst_37 {dimension_numbers = #tpu.dot_dimension_numbers<[1], [0], [0], [1], [0, 0, 1, 1], [], []>} : vector<8x16xbf16>, vector<16x64xbf16>, vector<8x64xf32> -> vector<8x64xf32>
    %c0_38 = arith.constant 0 : index
    %c128 = arith.constant 128 : index
    %84 = vector.load %arg15[%c0_38, %c128] : memref<8x512xf32, #tpu.memory_space<vmem>>, vector<8x64xf32>
    tpu.vector_store %arg15[%c0_38, %c128], %83 {strides = array<i32>} : memref<8x512xf32, #tpu.memory_space<vmem>>, vector<8x64xf32>,
    %85 = vector.extract_strided_slice %25 {offsets = [0, 192], sizes = [8, 64], strides = [1, 1]} : vector<8x512xbf16> to vector<8x64xbf16>
    %86 = vector.extract_strided_slice %26 {offsets = [0, 192], sizes = [16, 64], strides = [1, 1]} : vector<16x512xbf16> to vector<16x64xbf16>
    %87 = vector.extract_strided_slice %27 {offsets = [0, 192], sizes = [16, 64], strides = [1, 1]} : vector<16x512xbf16> to vector<16x64xbf16>
    %cst_39 = arith.constant dense<0.000000e+00> : vector<8x16xf32>
    %88 = tpu.matmul %85, %86, %cst_39 {dimension_numbers = #tpu.dot_dimension_numbers<[1], [1], [0], [0], [0, 0, 1, 0], [], []>} : vector<8x64xbf16>, vector<16x64xbf16>, vector<8x16xf32> -> vector<8x16xf32>
    %89 = vector.broadcast %5 : vector<1x16xf32> to vector<8x16xf32>
    %90 = arith.addf %88, %89 : vector<8x16xf32>
    %cst_40 = arith.constant dense<0xFF800000> : vector<8xf32>
    %91 = vector.multi_reduction <maximumf>, %90, %cst_40 [1] : vector<8x16xf32> to vector<8xf32>
    %92 = vector.shape_cast %91 : vector<8xf32> to vector<8x1xf32>
    %93 = vector.broadcast %92 : vector<8x1xf32> to vector<8x16xf32>
    %94 = arith.subf %90, %93 : vector<8x16xf32>
    %95 = math.exp %94 : vector<8x16xf32>
    %cst_41 = arith.constant dense<0.000000e+00> : vector<8xf32>
    %96 = vector.multi_reduction <add>, %95, %cst_41 [1] : vector<8x16xf32> to vector<8xf32>
    %97 = vector.shape_cast %96 : vector<8xf32> to vector<8x1xf32>
    %98 = tpu.reciprocal %97 {approx = true} : vector<8x1xf32> -> vector<8x1xf32>
    %99 = vector.broadcast %98 : vector<8x1xf32> to vector<8x16xf32>
    %100 = arith.mulf %95, %99 : vector<8x16xf32>
    %101 = arith.truncf %100 : vector<8x16xf32> to vector<8x16xbf16>
    %cst_42 = arith.constant dense<0.000000e+00> : vector<8x64xf32>
    %102 = tpu.matmul %101, %87, %cst_42 {dimension_numbers = #tpu.dot_dimension_numbers<[1], [0], [0], [1], [0, 0, 1, 1], [], []>} : vector<8x16xbf16>, vector<16x64xbf16>, vector<8x64xf32> -> vector<8x64xf32>
    %c0_43 = arith.constant 0 : index
    %c192 = arith.constant 192 : index
    %103 = vector.load %arg15[%c0_43, %c192] : memref<8x512xf32, #tpu.memory_space<vmem>>, vector<8x64xf32>
    tpu.vector_store %arg15[%c0_43, %c192], %102 {strides = array<i32>} : memref<8x512xf32, #tpu.memory_space<vmem>>, vector<8x64xf32>,
    %104 = vector.extract_strided_slice %25 {offsets = [0, 256], sizes = [8, 64], strides = [1, 1]} : vector<8x512xbf16> to vector<8x64xbf16>
    %105 = vector.extract_strided_slice %26 {offsets = [0, 256], sizes = [16, 64], strides = [1, 1]} : vector<16x512xbf16> to vector<16x64xbf16>
    %106 = vector.extract_strided_slice %27 {offsets = [0, 256], sizes = [16, 64], strides = [1, 1]} : vector<16x512xbf16> to vector<16x64xbf16>
    %cst_44 = arith.constant dense<0.000000e+00> : vector<8x16xf32>
    %107 = tpu.matmul %104, %105, %cst_44 {dimension_numbers = #tpu.dot_dimension_numbers<[1], [1], [0], [0], [0, 0, 1, 0], [], []>} : vector<8x64xbf16>, vector<16x64xbf16>, vector<8x16xf32> -> vector<8x16xf32>
    %108 = vector.broadcast %5 : vector<1x16xf32> to vector<8x16xf32>
    %109 = arith.addf %107, %108 : vector<8x16xf32>
    %cst_45 = arith.constant dense<0xFF800000> : vector<8xf32>
    %110 = vector.multi_reduction <maximumf>, %109, %cst_45 [1] : vector<8x16xf32> to vector<8xf32>
    %111 = vector.shape_cast %110 : vector<8xf32> to vector<8x1xf32>
    %112 = vector.broadcast %111 : vector<8x1xf32> to vector<8x16xf32>
    %113 = arith.subf %109, %112 : vector<8x16xf32>
    %114 = math.exp %113 : vector<8x16xf32>
    %cst_46 = arith.constant dense<0.000000e+00> : vector<8xf32>
    %115 = vector.multi_reduction <add>, %114, %cst_46 [1] : vector<8x16xf32> to vector<8xf32>
    %116 = vector.shape_cast %115 : vector<8xf32> to vector<8x1xf32>
    %117 = tpu.reciprocal %116 {approx = true} : vector<8x1xf32> -> vector<8x1xf32>
    %118 = vector.broadcast %117 : vector<8x1xf32> to vector<8x16xf32>
    %119 = arith.mulf %114, %118 : vector<8x16xf32>
    %120 = arith.truncf %119 : vector<8x16xf32> to vector<8x16xbf16>
    %cst_47 = arith.constant dense<0.000000e+00> : vector<8x64xf32>
    %121 = tpu.matmul %120, %106, %cst_47 {dimension_numbers = #tpu.dot_dimension_numbers<[1], [0], [0], [1], [0, 0, 1, 1], [], []>} : vector<8x16xbf16>, vector<16x64xbf16>, vector<8x64xf32> -> vector<8x64xf32>
    %c0_48 = arith.constant 0 : index
    %c256 = arith.constant 256 : index
    %122 = vector.load %arg15[%c0_48, %c256] : memref<8x512xf32, #tpu.memory_space<vmem>>, vector<8x64xf32>
    tpu.vector_store %arg15[%c0_48, %c256], %121 {strides = array<i32>} : memref<8x512xf32, #tpu.memory_space<vmem>>, vector<8x64xf32>,
    %123 = vector.extract_strided_slice %25 {offsets = [0, 320], sizes = [8, 64], strides = [1, 1]} : vector<8x512xbf16> to vector<8x64xbf16>
    %124 = vector.extract_strided_slice %26 {offsets = [0, 320], sizes = [16, 64], strides = [1, 1]} : vector<16x512xbf16> to vector<16x64xbf16>
    %125 = vector.extract_strided_slice %27 {offsets = [0, 320], sizes = [16, 64], strides = [1, 1]} : vector<16x512xbf16> to vector<16x64xbf16>
    %cst_49 = arith.constant dense<0.000000e+00> : vector<8x16xf32>
    %126 = tpu.matmul %123, %124, %cst_49 {dimension_numbers = #tpu.dot_dimension_numbers<[1], [1], [0], [0], [0, 0, 1, 0], [], []>} : vector<8x64xbf16>, vector<16x64xbf16>, vector<8x16xf32> -> vector<8x16xf32>
    %127 = vector.broadcast %5 : vector<1x16xf32> to vector<8x16xf32>
    %128 = arith.addf %126, %127 : vector<8x16xf32>
    %cst_50 = arith.constant dense<0xFF800000> : vector<8xf32>
    %129 = vector.multi_reduction <maximumf>, %128, %cst_50 [1] : vector<8x16xf32> to vector<8xf32>
    %130 = vector.shape_cast %129 : vector<8xf32> to vector<8x1xf32>
    %131 = vector.broadcast %130 : vector<8x1xf32> to vector<8x16xf32>
    %132 = arith.subf %128, %131 : vector<8x16xf32>
    %133 = math.exp %132 : vector<8x16xf32>
    %cst_51 = arith.constant dense<0.000000e+00> : vector<8xf32>
    %134 = vector.multi_reduction <add>, %133, %cst_51 [1] : vector<8x16xf32> to vector<8xf32>
    %135 = vector.shape_cast %134 : vector<8xf32> to vector<8x1xf32>
    %136 = tpu.reciprocal %135 {approx = true} : vector<8x1xf32> -> vector<8x1xf32>
    %137 = vector.broadcast %136 : vector<8x1xf32> to vector<8x16xf32>
    %138 = arith.mulf %133, %137 : vector<8x16xf32>
    %139 = arith.truncf %138 : vector<8x16xf32> to vector<8x16xbf16>
    %cst_52 = arith.constant dense<0.000000e+00> : vector<8x64xf32>
    %140 = tpu.matmul %139, %125, %cst_52 {dimension_numbers = #tpu.dot_dimension_numbers<[1], [0], [0], [1], [0, 0, 1, 1], [], []>} : vector<8x16xbf16>, vector<16x64xbf16>, vector<8x64xf32> -> vector<8x64xf32>
    %c0_53 = arith.constant 0 : index
    %c320 = arith.constant 320 : index
    %141 = vector.load %arg15[%c0_53, %c320] : memref<8x512xf32, #tpu.memory_space<vmem>>, vector<8x64xf32>
    tpu.vector_store %arg15[%c0_53, %c320], %140 {strides = array<i32>} : memref<8x512xf32, #tpu.memory_space<vmem>>, vector<8x64xf32>,
    %142 = vector.extract_strided_slice %25 {offsets = [0, 384], sizes = [8, 64], strides = [1, 1]} : vector<8x512xbf16> to vector<8x64xbf16>
    %143 = vector.extract_strided_slice %26 {offsets = [0, 384], sizes = [16, 64], strides = [1, 1]} : vector<16x512xbf16> to vector<16x64xbf16>
    %144 = vector.extract_strided_slice %27 {offsets = [0, 384], sizes = [16, 64], strides = [1, 1]} : vector<16x512xbf16> to vector<16x64xbf16>
    %cst_54 = arith.constant dense<0.000000e+00> : vector<8x16xf32>
    %145 = tpu.matmul %142, %143, %cst_54 {dimension_numbers = #tpu.dot_dimension_numbers<[1], [1], [0], [0], [0, 0, 1, 0], [], []>} : vector<8x64xbf16>, vector<16x64xbf16>, vector<8x16xf32> -> vector<8x16xf32>
    %146 = vector.broadcast %5 : vector<1x16xf32> to vector<8x16xf32>
    %147 = arith.addf %145, %146 : vector<8x16xf32>
    %cst_55 = arith.constant dense<0xFF800000> : vector<8xf32>
    %148 = vector.multi_reduction <maximumf>, %147, %cst_55 [1] : vector<8x16xf32> to vector<8xf32>
    %149 = vector.shape_cast %148 : vector<8xf32> to vector<8x1xf32>
    %150 = vector.broadcast %149 : vector<8x1xf32> to vector<8x16xf32>
    %151 = arith.subf %147, %150 : vector<8x16xf32>
    %152 = math.exp %151 : vector<8x16xf32>
    %cst_56 = arith.constant dense<0.000000e+00> : vector<8xf32>
    %153 = vector.multi_reduction <add>, %152, %cst_56 [1] : vector<8x16xf32> to vector<8xf32>
    %154 = vector.shape_cast %153 : vector<8xf32> to vector<8x1xf32>
    %155 = tpu.reciprocal %154 {approx = true} : vector<8x1xf32> -> vector<8x1xf32>
    %156 = vector.broadcast %155 : vector<8x1xf32> to vector<8x16xf32>
    %157 = arith.mulf %152, %156 : vector<8x16xf32>
    %158 = arith.truncf %157 : vector<8x16xf32> to vector<8x16xbf16>
    %cst_57 = arith.constant dense<0.000000e+00> : vector<8x64xf32>
    %159 = tpu.matmul %158, %144, %cst_57 {dimension_numbers = #tpu.dot_dimension_numbers<[1], [0], [0], [1], [0, 0, 1, 1], [], []>} : vector<8x16xbf16>, vector<16x64xbf16>, vector<8x64xf32> -> vector<8x64xf32>
    %c0_58 = arith.constant 0 : index
    %c384 = arith.constant 384 : index
    %160 = vector.load %arg15[%c0_58, %c384] : memref<8x512xf32, #tpu.memory_space<vmem>>, vector<8x64xf32>
    tpu.vector_store %arg15[%c0_58, %c384], %159 {strides = array<i32>} : memref<8x512xf32, #tpu.memory_space<vmem>>, vector<8x64xf32>,
    %161 = vector.extract_strided_slice %25 {offsets = [0, 448], sizes = [8, 64], strides = [1, 1]} : vector<8x512xbf16> to vector<8x64xbf16>
    %162 = vector.extract_strided_slice %26 {offsets = [0, 448], sizes = [16, 64], strides = [1, 1]} : vector<16x512xbf16> to vector<16x64xbf16>
    %163 = vector.extract_strided_slice %27 {offsets = [0, 448], sizes = [16, 64], strides = [1, 1]} : vector<16x512xbf16> to vector<16x64xbf16>
    %cst_59 = arith.constant dense<0.000000e+00> : vector<8x16xf32>
    %164 = tpu.matmul %161, %162, %cst_59 {dimension_numbers = #tpu.dot_dimension_numbers<[1], [1], [0], [0], [0, 0, 1, 0], [], []>} : vector<8x64xbf16>, vector<16x64xbf16>, vector<8x16xf32> -> vector<8x16xf32>
    %165 = vector.broadcast %5 : vector<1x16xf32> to vector<8x16xf32>
    %166 = arith.addf %164, %165 : vector<8x16xf32>
    %cst_60 = arith.constant dense<0xFF800000> : vector<8xf32>
    %167 = vector.multi_reduction <maximumf>, %166, %cst_60 [1] : vector<8x16xf32> to vector<8xf32>
    %168 = vector.shape_cast %167 : vector<8xf32> to vector<8x1xf32>
    %169 = vector.broadcast %168 : vector<8x1xf32> to vector<8x16xf32>
    %170 = arith.subf %166, %169 : vector<8x16xf32>
    %171 = math.exp %170 : vector<8x16xf32>
    %cst_61 = arith.constant dense<0.000000e+00> : vector<8xf32>
    %172 = vector.multi_reduction <add>, %171, %cst_61 [1] : vector<8x16xf32> to vector<8xf32>
    %173 = vector.shape_cast %172 : vector<8xf32> to vector<8x1xf32>
    %174 = tpu.reciprocal %173 {approx = true} : vector<8x1xf32> -> vector<8x1xf32>
    %175 = vector.broadcast %174 : vector<8x1xf32> to vector<8x16xf32>
    %176 = arith.mulf %171, %175 : vector<8x16xf32>
    %177 = arith.truncf %176 : vector<8x16xf32> to vector<8x16xbf16>
    %cst_62 = arith.constant dense<0.000000e+00> : vector<8x64xf32>
    %178 = tpu.matmul %177, %163, %cst_62 {dimension_numbers = #tpu.dot_dimension_numbers<[1], [0], [0], [1], [0, 0, 1, 1], [], []>} : vector<8x16xbf16>, vector<16x64xbf16>, vector<8x64xf32> -> vector<8x64xf32>
    %c0_63 = arith.constant 0 : index
    %c448 = arith.constant 448 : index
    %179 = vector.load %arg15[%c0_63, %c448] : memref<8x512xf32, #tpu.memory_space<vmem>>, vector<8x64xf32>
    tpu.vector_store %arg15[%c0_63, %c448], %178 {strides = array<i32>} : memref<8x512xf32, #tpu.memory_space<vmem>>, vector<8x64xf32>,
    %c0_64 = arith.constant 0 : index
    %c0_65 = arith.constant 0 : index
    %180 = vector.load %arg15[%c0_64, %c0_65] : memref<8x512xf32, #tpu.memory_space<vmem>>, vector<8x512xf32>
    %181 = arith.truncf %180 : vector<8x512xf32> to vector<8x512xbf16>
    %c0_66 = arith.constant 0 : index
    %c0_67 = arith.constant 0 : index
    %182 = vector.load %arg10[%c0_66, %c0_67] : memref<512x512xbf16, #tpu.memory_space<vmem>>, vector<512x512xbf16>
    %cst_68 = arith.constant dense<0.000000e+00> : vector<8x512xf32>
    %183 = tpu.matmul %181, %182, %cst_68 {dimension_numbers = #tpu.dot_dimension_numbers<[1], [0], [0], [1], [0, 0, 1, 1], [], []>} : vector<8x512xbf16>, vector<512x512xbf16>, vector<8x512xf32> -> vector<8x512xf32>
    %c0_69 = arith.constant 0 : index
    %c0_70 = arith.constant 0 : index
    %184 = vector.load %arg11[%c0_69, %c0_70] : memref<1x512xf32, #tpu.memory_space<vmem>>, vector<1x512xf32>
    %185 = vector.broadcast %184 : vector<1x512xf32> to vector<8x512xf32>
    %186 = arith.addf %183, %185 : vector<8x512xf32>
    %187 = arith.addf %186, %1 : vector<8x512xf32>
    %cst_71 = arith.constant dense<0.000000e+00> : vector<8xf32>
    %188 = vector.multi_reduction <add>, %187, %cst_71 [1] : vector<8x512xf32> to vector<8xf32>
    %189 = vector.shape_cast %188 : vector<8xf32> to vector<8x1xf32>
    %cst_72 = arith.constant 5.120000e+02 : f32
    %190 = vector.broadcast %cst_72 : f32 to vector<8x1xf32>
    %191 = arith.divf %189, %190 : vector<8x1xf32>
    %192 = vector.broadcast %191 : vector<8x1xf32> to vector<8x512xf32>
    %193 = arith.subf %187, %192 : vector<8x512xf32>
    %194 = arith.mulf %193, %193 : vector<8x512xf32>
    %cst_73 = arith.constant dense<0.000000e+00> : vector<8xf32>
    %195 = vector.multi_reduction <add>, %194, %cst_73 [1] : vector<8x512xf32> to vector<8xf32>
    %196 = vector.shape_cast %195 : vector<8xf32> to vector<8x1xf32>
    %cst_74 = arith.constant 5.120000e+02 : f32
    %197 = vector.broadcast %cst_74 : f32 to vector<8x1xf32>
    %198 = arith.divf %196, %197 : vector<8x1xf32>
    %199 = vector.broadcast %191 : vector<8x1xf32> to vector<8x512xf32>
    %200 = arith.subf %187, %199 : vector<8x512xf32>
    %cst_75 = arith.constant 9.99999996E-13 : f32
    %201 = vector.broadcast %cst_75 : f32 to vector<8x1xf32>
    %202 = arith.addf %198, %201 : vector<8x1xf32>
    %203 = math.rsqrt %202 : vector<8x1xf32>
    %204 = vector.broadcast %203 : vector<8x1xf32> to vector<8x512xf32>
    %205 = arith.mulf %200, %204 : vector<8x512xf32>
    %c0_76 = arith.constant 0 : index
    %c0_77 = arith.constant 0 : index
    %206 = vector.load %arg12[%c0_76, %c0_77] : memref<1x512xf32, #tpu.memory_space<vmem>>, vector<1x512xf32>
    %207 = vector.broadcast %206 : vector<1x512xf32> to vector<8x512xf32>
    %208 = arith.mulf %205, %207 : vector<8x512xf32>
    %c0_78 = arith.constant 0 : index
    %c0_79 = arith.constant 0 : index
    %209 = vector.load %arg13[%c0_78, %c0_79] : memref<1x512xf32, #tpu.memory_space<vmem>>, vector<1x512xf32>
    %210 = vector.broadcast %209 : vector<1x512xf32> to vector<8x512xf32>
    %211 = arith.addf %208, %210 : vector<8x512xf32>
    %c0_80 = arith.constant 0 : index
    %c0_81 = arith.constant 0 : index
    %c0_82 = arith.constant 0 : index
    %212 = vector.load %arg14[%c0_80, %c0_81, %c0_82] : memref<1x8x512xf32, #tpu.memory_space<vmem>>, vector<1x8x512xf32>
    %213 = vector.shape_cast %212 : vector<1x8x512xf32> to vector<8x512xf32>
    %214 = vector.shape_cast %211 : vector<8x512xf32> to vector<1x8x512xf32>
    tpu.vector_store %arg14[%c0_80, %c0_81, %c0_82], %214 {strides = array<i32>} : memref<1x8x512xf32, #tpu.memory_space<vmem>>, vector<1x8x512xf32>,
    return
  }
  func.func @transform_0(%arg0: i32) -> (i32, i32, i32) {
    %c0_i32 = arith.constant 0 : i32
    %c0_i32_0 = arith.constant 0 : i32
    %c0_i32_1 = arith.constant 0 : i32
    return %arg0, %c0_i32, %c0_i32_0 : i32, i32, i32
  }
  func.func @transform_1(%arg0: i32) -> (i32, i32, i32) {
    %c0_i32 = arith.constant 0 : i32
    %c0_i32_0 = arith.constant 0 : i32
    %c0_i32_1 = arith.constant 0 : i32
    return %arg0, %c0_i32, %c0_i32_0 : i32, i32, i32
  }
  func.func @transform_2(%arg0: i32) -> (i32, i32, i32) {
    %c0_i32 = arith.constant 0 : i32
    %c0_i32_0 = arith.constant 0 : i32
    %c0_i32_1 = arith.constant 0 : i32
    return %arg0, %c0_i32, %c0_i32_0 : i32, i32, i32
  }
  func.func @transform_3(%arg0: i32) -> (i32, i32) {
    %c0_i32 = arith.constant 0 : i32
    %c0_i32_0 = arith.constant 0 : i32
    %c0_i32_1 = arith.constant 0 : i32
    return %c0_i32, %c0_i32_0 : i32, i32
  }
  func.func @transform_4(%arg0: i32) -> (i32, i32) {
    %c0_i32 = arith.constant 0 : i32
    %c0_i32_0 = arith.constant 0 : i32
    %c0_i32_1 = arith.constant 0 : i32
    return %c0_i32, %c0_i32_0 : i32, i32
  }
  func.func @transform_5(%arg0: i32) -> (i32, i32) {
    %c0_i32 = arith.constant 0 : i32
    %c0_i32_0 = arith.constant 0 : i32
    %c0_i32_1 = arith.constant 0 : i32
    return %c0_i32, %c0_i32_0 : i32, i32
  }
  func.func @transform_6(%arg0: i32) -> (i32, i32) {
    %c0_i32 = arith.constant 0 : i32
    %c0_i32_0 = arith.constant 0 : i32
    %c0_i32_1 = arith.constant 0 : i32
    return %c0_i32, %c0_i32_0 : i32, i32
  }
  func.func @transform_7(%arg0: i32) -> (i32, i32) {
    %c0_i32 = arith.constant 0 : i32
    %c0_i32_0 = arith.constant 0 : i32
    %c0_i32_1 = arith.constant 0 : i32
    return %c0_i32, %c0_i32_0 : i32, i32
  }
  func.func @transform_8(%arg0: i32) -> (i32, i32) {
    %c0_i32 = arith.constant 0 : i32
    %c0_i32_0 = arith.constant 0 : i32
    %c0_i32_1 = arith.constant 0 : i32
    return %c0_i32, %c0_i32_0 : i32, i32
  }
  func.func @transform_9(%arg0: i32) -> (i32, i32) {
    %c0_i32 = arith.constant 0 : i32
    %c0_i32_0 = arith.constant 0 : i32
    %c0_i32_1 = arith.constant 0 : i32
    return %c0_i32, %c0_i32_0 : i32, i32
  }
  func.func @transform_10(%arg0: i32) -> (i32, i32) {
    %c0_i32 = arith.constant 0 : i32
    %c0_i32_0 = arith.constant 0 : i32
    %c0_i32_1 = arith.constant 0 : i32
    return %c0_i32, %c0_i32_0 : i32, i32
  }
  func.func @transform_11(%arg0: i32) -> (i32, i32) {
    %c0_i32 = arith.constant 0 : i32
    %c0_i32_0 = arith.constant 0 : i32
    %c0_i32_1 = arith.constant 0 : i32
    return %c0_i32, %c0_i32_0 : i32, i32
  }
  func.func @transform_12(%arg0: i32) -> (i32, i32) {
    %c0_i32 = arith.constant 0 : i32
    %c0_i32_0 = arith.constant 0 : i32
    %c0_i32_1 = arith.constant 0 : i32
    return %c0_i32, %c0_i32_0 : i32, i32
  }
  func.func @transform_13(%arg0: i32) -> (i32, i32, i32) {
    %c0_i32 = arith.constant 0 : i32
    %c0_i32_0 = arith.constant 0 : i32
    %c0_i32_1 = arith.constant 0 : i32
    return %arg0, %c0_i32, %c0_i32_0 : i32, i32, i32
  }
}

</mosaic_0001>

<bundles_post_ra>
// kernel: tpu_custom_call.1
= control target key start
LH: loop header
LB: loop body
LE: loop exit
PB: predicated region body
PF: predicated region fallthrough
CT: control target
= control target key end

     0   :  { %s9284_s0 = inlined_call_operand.hbm [shape: f32[2,8,512], index: 0, kind: input, shape index: {}]   ;;  %s9285_s1 = inlined_call_operand.hbm [shape: f32[2,16,512], index: 1, kind: input, shape index: {}]   ;;  %s9286_s2 = inlined_call_operand.hbm [shape: f32[2,1,16], index: 2, kind: input, shape index: {}]   ;;  %s9287_s3 = inlined_call_operand.hbm [shape: bf16[512,512], index: 3, kind: input, shape index: {}]   ;;  %s9288_s4 = inlined_call_operand.hbm [shape: f32[1,512], index: 4, kind: input, shape index: {}]   ;;  %s9289_s5 = inlined_call_operand.hbm [shape: bf16[512,512], index: 5, kind: input, shape index: {}]   ;;  %s9290_s6 = inlined_call_operand.vmem [shape: f32[1,512], index: 6, kind: input, shape index: {}]   ;;  %s9291_s7 = inlined_call_operand.hbm [shape: bf16[512,512], index: 7, kind: input, shape index: {}]   ;;  %s9292_s8 = inlined_call_operand.hbm [shape: f32[1,512], index: 8, kind: input, shape index: {}]   ;;  %s9293_s9 = inlined_call_operand.hbm [shape: bf16[512,512], index: 9, kind: input, shape index: {}]   ;;  %s9294_s10 = inlined_call_operand.vmem [shape: f32[1,512], index: 10, kind: input, shape index: {}]   ;;  %s9295_s11 = inlined_call_operand.hbm [shape: f32[1,512], index: 11, kind: input, shape index: {}]   ;;  %s9296_s12 = inlined_call_operand.hbm [shape: f32[1,512], index: 12, kind: input, shape index: {}]   ;;  %s9297_s13 = inlined_call_operand.hbm [shape: f32[2,8,512], index: 13, kind: output, shape index: {}]  }
   0x1   :  { %9311 = sst [smem:[#allocation35_spill]] %s9285_s1 }
   0x2   :  { %9312 = sst [smem:[#allocation36_spill]] %s9287_s3 }
   0x3   :  { %9313 = sst [smem:[#allocation37_spill]] %s9288_s4 }
   0x4   :  { %9314 = sst [smem:[#allocation38_spill]] %s9289_s5 }
   0x5   :  { %9315 = sst [smem:[#allocation39_spill]] %s9291_s7 }
   0x6   :  { %9316 = sst [smem:[#allocation40_spill]] %s9292_s8 }
   0x7   :  { %9317 = sst [smem:[#allocation41_spill]] %s9293_s9 }
   0x8   :  { %9318 = sst [smem:[#allocation42_spill]] %s9295_s11 }
   0x9   :  { %9319 = sst [smem:[#allocation43_spill]] %s9297_s13 }
   0xa   :  { %18 = vsyncpa [#allocation4], 0 }
   0xb   :  { %20 = vsyncpa [#allocation4 + $0x1], 0 }
   0xc   :  { %21 = vsyncpa [#allocation7], 0 }
   0xd   :  { %23 = vsyncpa [#allocation7 + $0x1], 0 }
   0xe   :  { %24 = vsyncpa [#allocation10], 0 }
   0xf   :  { %25 = vsyncpa [#allocation13], 0 }
  0x10   :  { %26 = vsyncpa [#allocation16], 0 }
  0x11   :  { %27 = vsyncpa [#allocation19], 0 }
  0x12   :  { %28 = vsyncpa [#allocation5], 0 }
  0x13   :  { %30 = vsyncpa [#allocation5 + $0x1], 0  ;;  %s8736_s25 = smov 0   ;;  %s8738_s26 = smov 0  }
  0x14   :  { %s8740_s27 = smov 0   ;;  %s8742_s28 = smov 0  }
  0x15 LB: > { %9320 = sst [smem:[#allocation29_spill]] %s8638_s25  ;;  %s8760_s15 = sadd.s32 4294967295, %s8650_s28   ;;  %s8650_s28 = sphi %s8742_s28, %s9356_s28   ;;  %s8646_s27 = sphi %s8740_s27, %s9358_s27   ;;  %s8642_s26 = sphi %s8738_s26, %s9360_s26   ;;  %s8638_s25 = sphi %s8736_s25, %s9359_s25  }
  0x16   : > { %9321 = sst [smem:[#allocation30_spill]] %s8646_s27  ;;  %p5438_p0 = scmp.ge.s32.totalorder %s8650_s28, 1 }
  0x17   : > { %s9322_s3 = sld [smem:[#allocation36_spill]]  ;;  %p9307_p1 = scmp.eq.s32.totalorder %s8760_s15, 0 }
  0x18   : > { %p355_p2 = scmp.lt.s32.totalorder %s8650_s28, 3  ;;  %s8652_s17 = smov [#allocation9]  }
  0x19   : > { %s368_s18 = sshll.u32 %s8652_s17, 4  ;;  %s9324_s5 = sld [smem:[#allocation38_spill]]  ;;  %s369_s18 = int_to_ptr.vmem [resolvable:$true] %s368_s18 }
  0x1a   : > { %p8765_p3 = pnand %p5438_p0, %p355_p2  ;;  %s9326_s8 = sld [smem:[#allocation40_spill]] }
  0x1b   : > { %s8653_s30 = smov [#allocation12]   ;;  %s9300_s19 = smov 16  }
  0x1c   : > { %p8090_p4 = pneg %p8765_p3  ;;  %s394_s17 = sshll.u32 %s8653_s30, 4  ;;  %s395_s17 = int_to_ptr.vmem [resolvable:$true] %s394_s17 }
  0x1d   : > { %s366_s14 = sshll.u32 %s9322_s3, 4  ;;  %s9298_s3 = smov 256   ;;  %s367_s14 = int_to_ptr.hbm [resolvable:$true] %s366_s14 }
  0x1e   : > { %p8777_p6 = pnand %p8090_p4, %p9307_p1  ;;  %s9327_s11 = sld [smem:[#allocation42_spill]] }
  0x1f   : > { %s392_s21 = sshll.u32 %s9324_s5, 4  ;;  %s8656_s30 = smov [#allocation15]   ;;  %s393_s21 = int_to_ptr.hbm [resolvable:$true] %s392_s21 }
  0x20   : > { %s424_s29 = sshll.u32 %s9326_s8, 4  ;;  %s8803_s20 = sadd.s32 1, %s8650_s28   ;;  %s425_s29 = int_to_ptr.hbm [resolvable:$true] %s424_s29 }
  0x21   : > { %8093 = dma.hbm_to_vmem [thread:$0]  (!%p8777_p6), %s367_s14, 16384, %s369_s18, [#allocation10], %s9298_s3, %s9298_s3, %s9300_s19  }
  0x22   : > { %8099 = dma.hbm_to_vmem [thread:$0]  (!%p8777_p6), %s393_s21, 16384, %s395_s17, [#allocation13], %s9298_s3, %s9298_s3, %s9300_s19  }
  0x23   : > { %s426_s14 = sshll.u32 %s8656_s30, 4  ;;  %s8657_s18 = smov [#allocation18]   ;;  %s427_s14 = int_to_ptr.vmem [resolvable:$true] %s426_s14 }
  0x24   : > { %s453_s24 = sshll.u32 %s9327_s11, 4  ;;  %s455_s21 = sshll.u32 %s8657_s18, 4  ;;  %s454_s24 = int_to_ptr.hbm [resolvable:$true] %s453_s24  ;;  %s456_s21 = int_to_ptr.vmem [resolvable:$true] %s455_s21 }
  0x25   : > { %8105 = dma.hbm_to_vmem [thread:$0]  (!%p8777_p6), %s425_s29, 64, %s427_s14, [#allocation16]  }
  0x26   : > { %8111 = dma.hbm_to_vmem [thread:$0]  (!%p8777_p6), %s454_s24, 64, %s456_s21, [#allocation19]  }
  0x27   : > { %s5437_s17 = sadd.s32 4294967294, %s8650_s28   ;;  %9328 = sst [smem:[#allocation31_spill]] %s8803_s20 }
  0x28   : > { %s40_s23 = ssub.s32 %s8650_s28, %s8803_s20  ;;  %s43_s30 = sadd.s32 1, %s8646_s27 }
  0x29   : > { %p41_p7 = scmp.eq.s32.totalorder %s40_s23, 0  ;;  %p50_p8 = scmp.ne.s32.totalorder %s8646_s27, %s8642_s26 }
  0x2a   : > { %p51_p9 = scmp.eq.s32.totalorder %s8650_s28, 0  ;;  %p56_p10 = scmp.ne.s32.totalorder %s8642_s26, %s8638_s25 }
  0x2b   : > { %s8814_s29 = scalar_select %p41_p7, %s8646_s27, %s43_s30  }
  0x2c   : > { %p52_p11 = por %p51_p9, %p50_p8  ;;  %p8818_p12 = por %p9307_p1, %p56_p10 }
  0x2d   : > { %9329 = sst [smem:[#allocation32_spill]] %s8814_s29  ;;  %p342_p13 = scmp.eq.s32.totalorder %s8760_s15, 1 }
  0x2e   : > { %p348_p0 = scmp.eq.s32.totalorder %s5437_s17, 1  ;;  %p8137_p2 = scmp.lt.s32.totalorder %s8650_s28, 2 }
  0x2f   : > { %s8825_s24 = sand.u32 1, %s8646_s27   ;;  %p8827_p4 = por %p342_p13, %p50_p8 }
  0x30   : > { %p8831_p5 = por %p348_p0, %p56_p10  ;;  %p8835_p7 = pnand %p8137_p2, %p52_p11 }
  0x31   : > { %s9331_s18 = scalar_select %p8827_p4, 1, 0 }
  0x32   : > { %s9333_s21 = scalar_select %p8831_p5, 1, 0 }
  0x33   : > { %9332 = sst [smem:[#allocation33_spill]] %s9331_s18  ;;  %s498_s30 = sand.u32 1, %s8650_s28  }
  0x34   : > { %9334 = sst [smem:[#allocation34_spill]] %s9333_s21  ;;  %s5451_s17 = sshll.u32 %s8825_s24, 6 }
  0x35   : > { %s7536_s3 = sshll.u32 %s8650_s28, 6  ;;  %s502_s19 = scalar_lea.vmem [#allocation6], %s5451_s17 }
  0x36   : > { %s510_s5 = sshll.u32 %s502_s19, 4  ;;  %s9336_s1 = sld [smem:[#allocation35_spill]]  ;;  %s511_s5 = int_to_ptr.vmem [resolvable:$true] %s510_s5 }
  0x37   : > { %s8845_s20 = scalar_lea.sflag [#allocation7], %s498_s30  ;;  %p8358_p9 = pneg %p8835_p7 }
  0x3c   : > { %s507_s29 = scalar_lea.hbm %s9336_s1, %s7536_s3  ;;  %s8361_s8 = scalar_lea.hbm %s9336_s1, 128 }
  0x3d   : > { %s508_s27 = sshll.u32 %s507_s29, 4  ;;  %s509_s27 = int_to_ptr.hbm [resolvable:$true] %s508_s27 }
  0x3e   : > { %s8354_s21 = sshra.s32 %s509_s27, 4  ;;  %s8355_s21 = int_to_ptr.hbm [resolvable:$true] %s8354_s21 }
  0x3f   : > { %s8356_s25 = scalar_lea.hbm %s8355_s21, 64  ;;  %p8362_p13 = scmp.lt.s32.totalorder %s8355_s21, %s9336_s1 }
  0x40   : > { %p8357_p8 = scmp.ne.s32.totalorder %s8355_s21, %s8356_s25  ;;  %p8363_p0 = scmp.lt.s32.totalorder %s8361_s8, %s8356_s25 }
  0x42   : > { %p8359_p10 = pnand %p8358_p9, %p8357_p8  ;;  %p8364_p2 = por %p8363_p0, %p8362_p13 }
  0x44   : > { %p8360_p11 = pneg %p8359_p10 }
  0x46   : > { %p8365_p1 = pnand %p8364_p2, %p8360_p11 }
  0x48   : > { %8368 = shalt.err (!%p8365_p1)
}
  0x49   : > { %s8658_s29 = smov 512   ;;  %s8659_s30 = smov 32  }
  0x4a   : > { %8121 = dma.hbm_to_vmem [thread:$0]  (!%p8835_p7), %s509_s27, 1024, %s511_s5, %s8845_s20, %s8658_s29, %s8658_s29, %s8659_s30  }
  0x4b   : > { %s9337_s4 = sld [smem:[#allocation37_spill]]  ;;  %s8660_s17 = smov [#allocation11]  }
  0x4c   : > { %s383_s3 = sshll.u32 %s8660_s17, 4  ;;  %s9338_s7 = sld [smem:[#allocation39_spill]]  ;;  %s384_s3 = int_to_ptr.vmem [resolvable:$true] %s383_s3 }
  0x4d   : > { %s8661_s11 = smov [#allocation14]   ;;  %s9339_s9 = sld [smem:[#allocation41_spill]] }
  0x4e   : > { %s411_s5 = sshll.u32 %s8661_s11, 4  ;;  %s9340_s18 = smov 16   ;;  %s412_s5 = int_to_ptr.vmem [resolvable:$true] %s411_s5 }
  0x4f   : > { %s9341_s30 = smov 256   ;;  %s8663_s11 = smov [#allocation20]  }
  0x50   : > { %s467_s27 = sshll.u32 %s8663_s11, 4  ;;  %s5448_s29 = sshll.u32 %s8825_s24, 5  ;;  %s468_s27 = int_to_ptr.vmem [resolvable:$true] %s467_s27 }
  0x51   : > { %s381_s19 = sshll.u32 %s9337_s4, 4  ;;  %s382_s19 = int_to_ptr.hbm [resolvable:$true] %s381_s19 }
  0x52   : > { %s409_s8 = sshll.u32 %s9338_s7, 4  ;;  %s479_s7 = scalar_lea.sflag [#allocation4], %s8825_s24  ;;  %s410_s8 = int_to_ptr.hbm [resolvable:$true] %s409_s8 }
  0x53   : > { %8096 = dma.hbm_to_vmem [thread:$0]  (!%p8777_p6), %s382_s19, 64, %s384_s3, [#allocation10]  }
  0x54   : > { %s435_s13 = sshll.u32 %s9339_s9, 4  ;;  %s465_s19 = sshll.u32 %s9296_s12, 4  ;;  %s436_s13 = int_to_ptr.hbm [resolvable:$true] %s435_s13  ;;  %s466_s19 = int_to_ptr.hbm [resolvable:$true] %s465_s19 }
  0x55   : > { %8102 = dma.hbm_to_vmem [thread:$0]  (!%p8777_p6), %s410_s8, 16384, %s412_s5, [#allocation13], %s9341_s30, %s9341_s30, %s9340_s18  }
  0x56   : > { %s8662_s3 = smov [#allocation17]   ;;  %s7535_s8 = sshll.u32 %s8650_s28, 5 }
  0x57   : > { %s437_s21 = sshll.u32 %s8662_s3, 4  ;;  %s487_s25 = scalar_lea.hbm %s9284_s0, %s7535_s8  ;;  %s438_s21 = int_to_ptr.vmem [resolvable:$true] %s437_s21 }
  0x58   : > { %8108 = dma.hbm_to_vmem [thread:$0]  (!%p8777_p6), %s436_s13, 16384, %s438_s21, [#allocation16], %s9341_s30, %s9341_s30, %s9340_s18  }
  0x59   : > { %8114 = dma.hbm_to_vmem [thread:$0]  (!%p8777_p6), %s466_s19, 64, %s468_s27, [#allocation19]  }
  0x5a   : > { %s482_s3 = scalar_lea.vmem [#allocation3], %s5448_s29  ;;  %s489_s4 = sshll.u32 %s487_s25, 4  ;;  %s490_s4 = int_to_ptr.hbm [resolvable:$true] %s489_s4 }
  0x5b   : > { %s491_s1 = sshll.u32 %s482_s3, 4  ;;  %s8504_s9 = sshra.s32 %s490_s4, 4  ;;  %s492_s1 = int_to_ptr.vmem [resolvable:$true] %s491_s1  ;;  %s8505_s9 = int_to_ptr.hbm [resolvable:$true] %s8504_s9 }
  0x5c   : > { %s8506_s13 = scalar_lea.hbm %s8505_s9, 32  ;;  %s8511_s30 = scalar_lea.hbm %s9284_s0, 64 }
  0x5d   : > { %p8507_p1 = scmp.ne.s32.totalorder %s8505_s9, %s8506_s13  ;;  %p8512_p6 = scmp.lt.s32.totalorder %s8505_s9, %s9284_s0 }
  0x5e   : > { %p8513_p11 = scmp.lt.s32.totalorder %s8511_s30, %s8506_s13 }
  0x5f   : > { %p8509_p8 = pnand %p8507_p1, %p8358_p9 }
  0x60   : > { %p8514_p13 = por %p8513_p11, %p8512_p6 }
  0x61   : > { %p8510_p10 = pneg %p8509_p8 }
  0x63   : > { %p8515_p0 = pnand %p8514_p13, %p8510_p10 }
  0x65   : > { %8518 = shalt.err (!%p8515_p0)
}
  0x66   : > { %8118 = dma.hbm_to_vmem [thread:$0]  (!%p8835_p7), %s490_s4, 512, %s492_s1, %s479_s7  }
  0x67   : > { %s526_s29 = scalar_lea.hbm %s9286_s2, %s8650_s28  ;;  %s523_s8 = scalar_lea.vmem [#allocation8], %s8825_s24 }
  0x68   : > { %s530_s5 = sshll.u32 %s523_s8, 4  ;;  %s528_s17 = sshll.u32 %s526_s29, 4  ;;  %s531_s5 = int_to_ptr.vmem [resolvable:$true] %s530_s5  ;;  %s529_s17 = int_to_ptr.hbm [resolvable:$true] %s528_s17 }
  0x69   : > { %s8534_s9 = sshra.s32 %s529_s17, 4  ;;  %s8541_s1 = scalar_lea.hbm %s9286_s2, 2  ;;  %s8535_s9 = int_to_ptr.hbm [resolvable:$true] %s8534_s9 }
  0x6a   : > { %s8536_s25 = scalar_lea.hbm %s8535_s9, 1  ;;  %p8542_p10 = scmp.lt.s32.totalorder %s8535_s9, %s9286_s2 }
  0x6b   : > { %p8537_p2 = scmp.ne.s32.totalorder %s8535_s9, %s8536_s25  ;;  %p8543_p6 = scmp.lt.s32.totalorder %s8541_s1, %s8536_s25 }
  0x6d   : > { %p8539_p1 = pnand %p8537_p2, %p8358_p9  ;;  %p8544_p11 = por %p8543_p6, %p8542_p10 }
  0x6f   : > { %p8540_p8 = pneg %p8539_p1 }
  0x71   : > { %p8545_p13 = pnand %p8544_p11, %p8540_p8 }
  0x73   : > { %8548 = shalt.err (!%p8545_p13)
}
  0x74   : > { %8124 = dma.hbm_to_vmem [thread:$0]  (!%p8835_p7), %s529_s17, 16, %s531_s5, %s8845_s20  }
  0x75   : > { %539 = sbr.rel (%p8765_p3) target bundleno = 1819 (0x71b), region = 72  ;;  %s8924_s24 = sand.u32 (!%p8765_p3), 1, %s8642_s26  }
  0x76   : > { %s5455_s22 = sshll.u32 (!%p8765_p3), %s8924_s24, 5  ;;  %s542_s18 = scalar_lea.sflag (!%p8765_p3), [#allocation4], %s8924_s24 }
  0x77   : > { %s8930_s30 = scalar_lea.vmem (!%p8765_p3), [#allocation3], %s5455_s22 }
  0x7a   : > { %8609 = dma.done.wait (%p8818_p12), %s542_s18, 512  }
  0x7b   : > { %8611 = vsyncadd (%p8818_p12), %s542_s18, 4294966784  ;;  %s551_s16 = sand.u32 1, %s8760_s15   ;;  %s5456_s20 = sshll.u32 %s8924_s24, 6 }
  0x7c   : > { %s552_s23 = scalar_lea.sflag [#allocation7], %s551_s16  ;;  %s8938_s19 = scalar_lea.vmem [#allocation6], %s5456_s20 }
  0x7d   : > { %8613 = dma.done.wait (%p8818_p12), %s552_s23, 1040  }
  0x7e   : > { %8615 = vsyncadd (%p8818_p12), %s552_s23, 4294966256  ;;  %s564_s21 = scalar_lea.vmem [#allocation8], %s8924_s24  ;;  %p9342_p3 = scmp.eq.s32.totalorder %s8760_s15, 0 }
  0x80   : > { %8617 = dma.done.wait (%p9342_p3), [#allocation10], 16448   ;;  %p9343_p7 = pmov %p9342_p3 }
  0x81   : > { %p9344_p9 = pmov %p9342_p3 }
  0x82   : > { %8619 = vsyncadd (%p9343_p7), [#allocation10], 4294950848 }
  0x83   : > { %8621 = dma.done.wait (%p9344_p9), [#allocation13], 32768   ;;  %p9345_p0 = pmov %p9342_p3 }
  0x85   : > { %8623 = vsyncadd (%p9345_p0), [#allocation13], 4294934528  ;;  %p9346_p2 = pmov %p9345_p0 }
  0x86   : > { %p9347_p1 = pmov %p9345_p0 }
  0x87   : > { %8625 = dma.done.wait (%p9346_p2), [#allocation16], 16448  }
  0x88   : > { %8627 = vsyncadd (%p9347_p1), [#allocation16], 4294950848  ;;  %p9348_p12 = pmov %p9345_p0 }
  0x89   : > { %p9349_p8 = pmov %p9345_p0 }
  0x8a   : > { %8629 = dma.done.wait (%p9348_p12), [#allocation19], 128  }
  0x8b   : > { %8631 = vsyncadd (%p9349_p8), [#allocation19], 4294967168  ;;  %v5580_v0 = vld [vmem:[#allocation9 + $0xe0] sm:$0xf]  ;;  %v7567_v1 = vld [vmem:[#allocation9 + $0xec] sm:$0xf0] }
  0x8c   : > { %v5708_v2 = vld [vmem:[#allocation9 + $0x1e0] sm:$0xf]  ;;  %v5581_v3 = vor.u32 %v7567_v1, %v5580_v0  ;;  %v7599_v4 = vld [vmem:[#allocation9 + $0x1ec] sm:$0xf0]  ;;  %s8664_s27 = smov 64   ;;  %vm3691_vm0 = vcmask 523264  }
  0x8d   : > { %v5836_v5 = vld [vmem:[#allocation9 + $0x2e0] sm:$0xf]  ;;  %v7631_v6 = vld [vmem:[#allocation9 + $0x2ec] sm:$0xf0]  ;;  %v5709_v7 = vor.u32 %v7599_v4, %v5708_v2  ;;  %vm3711_vm1 = vcmask 130048   ;;  %vm3808_vm2 = vcmask 1048064  }
  0x8e   : > { %v5837_v8 = vor.u32 %v7631_v6, %v5836_v5  ;;  %v5964_v9 = vld [vmem:[#allocation9 + $0x3e0] sm:$0xf]  ;;  %v7663_v10 = vld [vmem:[#allocation9 + $0x3ec] sm:$0xf0]  ;;  %1457 = vmatpush.bf16.msra.mxu0 %v5581_v3  ;;  %s8049_s5 = sshll.u32 %s8760_s15, 5  ;;  %s9350_s25 = sld [smem:[#allocation43_spill]] }
  0x8f   : > { %v5564_v11 = vld [vmem:[#allocation9 + $0xc0] sm:$0xf]  ;;  %v5965_v12 = vor.u32 %v7663_v10, %v5964_v9  ;;  %v7563_v13 = vld [vmem:[#allocation9 + $0xcc] sm:$0xf0]  ;;  %1470 = vmatpush.bf16.msra.mxu1 %v5709_v7  ;;  %s656_s1 = scalar_lea.vmem [#allocation21], %s5455_s22  ;;  %s5236_s18 = scalar_lea.sflag [#allocation5], %s8924_s24 }
  0x90   : > { %v5692_v14 = vld [vmem:[#allocation9 + $0x1c0] sm:$0xf]  ;;  %v7595_v15 = vld [vmem:[#allocation9 + $0x1cc] sm:$0xf0]  ;;  %1483 = vmatpush.bf16.msra.mxu2 %v5837_v8  ;;  %v5565_v16 = vor.u32 %v7563_v13, %v5564_v11  ;;  %s5249_s4 = sshll.u32 %s656_s1, 4  ;;  %s5250_s4 = int_to_ptr.vmem [resolvable:$true] %s5249_s4 }
  0x91   : > { %v5693_v17 = vor.u32 %v7595_v15, %v5692_v14  ;;  %v5820_v18 = vld [vmem:[#allocation9 + $0x2c0] sm:$0xf]  ;;  %v7627_v19 = vld [vmem:[#allocation9 + $0x2cc] sm:$0xf0]  ;;  %1496 = vmatpush.bf16.msra.mxu3 %v5965_v12 }
  0x92   : > { %v5948_v20 = vld [vmem:[#allocation9 + $0x3c0] sm:$0xf]  ;;  %v5821_v21 = vor.u32 %v7627_v19, %v5820_v18  ;;  %v7659_v22 = vld [vmem:[#allocation9 + $0x3cc] sm:$0xf0]  ;;  %1458 = vmatpush.bf16.msra.mxu0 %v5565_v16 }
  0x93   : > { %v5548_v23 = vld [vmem:[#allocation9 + $0xa0] sm:$0xf]  ;;  %v7559_v24 = vld [vmem:[#allocation9 + $0xac] sm:$0xf0]  ;;  %v5949_v25 = vor.u32 %v7659_v22, %v5948_v20  ;;  %1471 = vmatpush.bf16.msra.mxu1 %v5693_v17 }
  0x94   : > { %v5676_v26 = vld [vmem:[#allocation9 + $0x1a0] sm:$0xf]  ;;  %v7591_v27 = vld [vmem:[#allocation9 + $0x1ac] sm:$0xf0]  ;;  %v5549_v29 = vor.u32 %v7559_v24, %v5548_v23  ;;  %1484 = vmatpush.bf16.msra.mxu2 %v5821_v21  ;;  %s9351_s3 = smov %s9350_s25  ;;  %s5247_s13 = scalar_lea.hbm %s9350_s25, %s8049_s5 }
  0x95   : > { %v5804_v28 = vld [vmem:[#allocation9 + $0x2a0] sm:$0xf]  ;;  %v7623_v30 = vld [vmem:[#allocation9 + $0x2ac] sm:$0xf0]  ;;  %v5677_v33 = vor.u32 %v7591_v27, %v5676_v26  ;;  %1497 = vmatpush.bf16.msra.mxu3 %v5949_v25  ;;  %s5251_s7 = sshll.u32 %s5247_s13, 4  ;;  %s8584_s22 = scalar_lea.hbm %s9351_s3, 64  ;;  %s5252_s7 = int_to_ptr.hbm [resolvable:$true] %s5251_s7 }
  0x96   : > { %v5932_v31 = vld [vmem:[#allocation9 + $0x3a0] sm:$0xf]  ;;  %v7655_v32 = vld [vmem:[#allocation9 + $0x3ac] sm:$0xf0]  ;;  %v5805_v34 = vor.u32 %v7623_v30, %v5804_v28  ;;  %1459 = vmatpush.bf16.msra.mxu0 %v5549_v29  ;;  %v7565_v28 = vld [vmem:[#allocation9 + $0xe4] sm:$0xf] }
  0x97   : > { %v5532_v35 = vld [vmem:[#allocation9 + $0x80] sm:$0xf]  ;;  %v7555_v36 = vld [vmem:[#allocation9 + $0x8c] sm:$0xf0]  ;;  %v5933_v38 = vor.u32 %v7655_v32, %v5932_v31  ;;  %1472 = vmatpush.bf16.msra.mxu1 %v5677_v33  ;;  %v5582_v29 = vld [vmem:[#allocation9 + $0xf0] sm:$0xf0] }
  0x98   : > { %v5660_v37 = vld [vmem:[#allocation9 + $0x180] sm:$0xf]  ;;  %v7587_v39 = vld [vmem:[#allocation9 + $0x18c] sm:$0xf0]  ;;  %v5533_v44 = vor.u32 %v7555_v36, %v5532_v35  ;;  %1485 = vmatpush.bf16.msra.mxu2 %v5805_v34  ;;  %v7597_v30 = vld [vmem:[#allocation9 + $0x1e4] sm:$0xf] }
  0x99   : > { %v5788_v40 = vld [vmem:[#allocation9 + $0x280] sm:$0xf]  ;;  %v7619_v41 = vld [vmem:[#allocation9 + $0x28c] sm:$0xf0]  ;;  %v5661_v45 = vor.u32 %v7587_v39, %v5660_v37  ;;  %1498 = vmatpush.bf16.msra.mxu3 %v5933_v38  ;;  %v5710_v32 = vld [vmem:[#allocation9 + $0x1f0] sm:$0xf0] }
  0x9a   : > { %v5916_v42 = vld [vmem:[#allocation9 + $0x380] sm:$0xf]  ;;  %v7651_v43 = vld [vmem:[#allocation9 + $0x38c] sm:$0xf0]  ;;  %v5789_v46 = vor.u32 %v7619_v41, %v5788_v40  ;;  %1460 = vmatpush.bf16.msra.mxu0 %v5533_v44  ;;  %v7629_v33 = vld [vmem:[#allocation9 + $0x2e4] sm:$0xf]  ;;  %v5585_v40 = vor.u32 %v7565_v28, %v5582_v29  ;;  %v5713_v41 = vor.u32 %v7597_v30, %v5710_v32 }
  0x9b   : > { %v5516_v47 = vld [vmem:[#allocation9 + $0x60] sm:$0xf]  ;;  %v7551_v48 = vld [vmem:[#allocation9 + $0x6c] sm:$0xf0]  ;;  %v5917_v50 = vor.u32 %v7651_v43, %v5916_v42  ;;  %1473 = vmatpush.bf16.msra.mxu1 %v5661_v45  ;;  %v5838_v34 = vld [vmem:[#allocation9 + $0x2f0] sm:$0xf0] }
  0x9c   : > { %v5644_v49 = vld [vmem:[#allocation9 + $0x160] sm:$0xf]  ;;  %v7583_v51 = vld [vmem:[#allocation9 + $0x16c] sm:$0xf0]  ;;  %v5517_v56 = vor.u32 %v7551_v48, %v5516_v47  ;;  %1486 = vmatpush.bf16.msra.mxu2 %v5789_v46  ;;  %v7661_v37 = vld [vmem:[#allocation9 + $0x3e4] sm:$0xf]  ;;  %v5841_v42 = vor.u32 %v7629_v33, %v5838_v34 }
  0x9d   : > { %v5772_v52 = vld [vmem:[#allocation9 + $0x260] sm:$0xf]  ;;  %v7615_v53 = vld [vmem:[#allocation9 + $0x26c] sm:$0xf0]  ;;  %v5645_v57 = vor.u32 %v7583_v51, %v5644_v49  ;;  %1499 = vmatpush.bf16.msra.mxu3 %v5917_v50  ;;  %v5966_v38 = vld [vmem:[#allocation9 + $0x3f0] sm:$0xf0] }
  0x9e   : > { %v5900_v54 = vld [vmem:[#allocation9 + $0x360] sm:$0xf]  ;;  %v7647_v55 = vld [vmem:[#allocation9 + $0x36c] sm:$0xf0]  ;;  %v5773_v58 = vor.u32 %v7615_v53, %v5772_v52  ;;  %1461 = vmatpush.bf16.msra.mxu0 %v5517_v56  ;;  %v7561_v43 = vld [vmem:[#allocation9 + $0xc4] sm:$0xf]  ;;  %v5969_v46 = vor.u32 %v7661_v37, %v5966_v38 }
  0x9f   : > { %v5500_v59 = vld [vmem:[#allocation9 + $0x40] sm:$0xf]  ;;  %v7547_v60 = vld [vmem:[#allocation9 + $0x4c] sm:$0xf0]  ;;  %v5901_v62 = vor.u32 %v7647_v55, %v5900_v54  ;;  %1474 = vmatpush.bf16.msra.mxu1 %v5645_v57  ;;  %v5566_v44 = vld [vmem:[#allocation9 + $0xd0] sm:$0xf0] }
  0xa0   : > { %v5628_v61 = vld [vmem:[#allocation9 + $0x140] sm:$0xf]  ;;  %v7579_v63 = vld [vmem:[#allocation9 + $0x14c] sm:$0xf0]  ;;  %v5501_v4 = vor.u32 %v7547_v60, %v5500_v59  ;;  %1487 = vmatpush.bf16.msra.mxu2 %v5773_v58  ;;  %v7593_v45 = vld [vmem:[#allocation9 + $0x1c4] sm:$0xf]  ;;  %v5569_v53 = vor.u32 %v7561_v43, %v5566_v44 }
  0xa1   : > { %v5756_v0 = vld [vmem:[#allocation9 + $0x240] sm:$0xf]  ;;  %v7611_v1 = vld [vmem:[#allocation9 + $0x24c] sm:$0xf0]  ;;  %v5629_v5 = vor.u32 %v7579_v63, %v5628_v61  ;;  %1500 = vmatpush.bf16.msra.mxu3 %v5901_v62  ;;  %v5694_v47 = vld [vmem:[#allocation9 + $0x1d0] sm:$0xf0] }
  0xa2   : > { %v5884_v2 = vld [vmem:[#allocation9 + $0x340] sm:$0xf]  ;;  %v7643_v3 = vld [vmem:[#allocation9 + $0x34c] sm:$0xf0]  ;;  %v5757_v6 = vor.u32 %v7611_v1, %v5756_v0  ;;  %1462 = vmatpush.bf16.msra.mxu0 %v5501_v4  ;;  %v7625_v48 = vld [vmem:[#allocation9 + $0x2c4] sm:$0xf]  ;;  %v5697_v58 = vor.u32 %v7593_v45, %v5694_v47 }
  0xa3   : > { %v5484_v7 = vld [vmem:[#allocation9 + $0x20] sm:$0xf]  ;;  %v7543_v8 = vld [vmem:[#allocation9 + $0x2c] sm:$0xf0]  ;;  %v5885_v10 = vor.u32 %v7643_v3, %v5884_v2  ;;  %1475 = vmatpush.bf16.msra.mxu1 %v5629_v5  ;;  %v5822_v49 = vld [vmem:[#allocation9 + $0x2d0] sm:$0xf0] }
  0xa4   : > { %v5612_v9 = vld [vmem:[#allocation9 + $0x120] sm:$0xf]  ;;  %v7575_v11 = vld [vmem:[#allocation9 + $0x12c] sm:$0xf0]  ;;  %v5485_v16 = vor.u32 %v7543_v8, %v5484_v7  ;;  %1488 = vmatpush.bf16.msra.mxu2 %v5757_v6  ;;  %v7657_v50 = vld [vmem:[#allocation9 + $0x3c4] sm:$0xf]  ;;  %v5825_v59 = vor.u32 %v7625_v48, %v5822_v49 }
  0xa5   : > { %v5740_v12 = vld [vmem:[#allocation9 + $0x220] sm:$0xf]  ;;  %v7607_v13 = vld [vmem:[#allocation9 + $0x22c] sm:$0xf0]  ;;  %v5613_v19 = vor.u32 %v7575_v11, %v5612_v9  ;;  %1501 = vmatpush.bf16.msra.mxu3 %v5885_v10  ;;  %v5950_v51 = vld [vmem:[#allocation9 + $0x3d0] sm:$0xf0] }
  0xa6   : > { %v5868_v14 = vld [vmem:[#allocation9 + $0x320] sm:$0xf]  ;;  %v7639_v15 = vld [vmem:[#allocation9 + $0x32c] sm:$0xf0]  ;;  %v5741_v20 = vor.u32 %v7607_v13, %v5740_v12  ;;  %1463 = vmatpush.bf16.msra.mxu0 %v5485_v16  ;;  %v7557_v54 = vld [vmem:[#allocation9 + $0xa4] sm:$0xf]  ;;  %v5953_v63 = vor.u32 %v7657_v50, %v5950_v51 }
  0xa7   : > { %v5468_v17 = vld [vmem:[#allocation9] sm:$0xf]  ;;  %v7539_v18 = vld [vmem:[#allocation9 + $0xc] sm:$0xf0]  ;;  %v5869_v24 = vor.u32 %v7639_v15, %v5868_v14  ;;  %1476 = vmatpush.bf16.msra.mxu1 %v5613_v19  ;;  %v5550_v55 = vld [vmem:[#allocation9 + $0xb0] sm:$0xf0] }
  0xa8   : > { %v5596_v21 = vld [vmem:[#allocation9 + $0x100] sm:$0xf]  ;;  %v7571_v22 = vld [vmem:[#allocation9 + $0x10c] sm:$0xf0]  ;;  %v5469_v31 = vor.u32 %v7539_v18, %v5468_v17  ;;  %1489 = vmatpush.bf16.msra.mxu2 %v5741_v20  ;;  %v7589_v56 = vld [vmem:[#allocation9 + $0x1a4] sm:$0xf]  ;;  %v5553_v8 = vor.u32 %v7557_v54, %v5550_v55 }
  0xa9   : > { %v5724_v23 = vld [vmem:[#allocation9 + $0x200] sm:$0xf]  ;;  %v7603_v25 = vld [vmem:[#allocation9 + $0x20c] sm:$0xf0]  ;;  %v5597_v35 = vor.u32 %v7571_v22, %v5596_v21  ;;  %1502 = vmatpush.bf16.msra.mxu3 %v5869_v24  ;;  %v5678_v60 = vld [vmem:[#allocation9 + $0x1b0] sm:$0xf0] }
  0xaa   : > { %v5852_v26 = vld [vmem:[#allocation9 + $0x300] sm:$0xf]  ;;  %v7635_v27 = vld [vmem:[#allocation9 + $0x30c] sm:$0xf0]  ;;  %v5725_v36 = vor.u32 %v7603_v25, %v5724_v23  ;;  %1464 = vmatpush.bf16.msra.mxu0 %v5469_v31  ;;  %v7621_v61 = vld [vmem:[#allocation9 + $0x2a4] sm:$0xf]  ;;  %v5681_v9 = vor.u32 %v7589_v56, %v5678_v60 }
  0xab   : > { %v5853_v39 = vor.u32 %v7635_v27, %v5852_v26  ;;  %1477 = vmatpush.bf16.msra.mxu1 %v5597_v35  ;;  %v660_v52 = vld [vmem:[%s8930_s30 + $0x10] sm:$0xff]  ;;  %v658_v0 = vld [vmem:[%s8930_s30] sm:$0xff]  ;;  %v661_v1 = vld [vmem:[%s8930_s30 + $0x18] sm:$0xff] }
  0xac   : > { %1490 = vmatpush.bf16.msra.mxu2 %v5725_v36  ;;  %v8962_v57 = vpack.c.bf16 %v660_v52, %v660_v52  ;;  %v5806_v62 = vld [vmem:[#allocation9 + $0x2b0] sm:$0xf0]  ;;  %v659_v2 = vld [vmem:[%s8930_s30 + $0x8] sm:$0xff]  ;;  %v8968_v5 = vpack.c.bf16 %v658_v0, %v658_v0  ;;  %v8970_v6 = vpack.c.bf16 %v661_v1, %v661_v1 }
  0xad   : > { %1503 = vmatpush.bf16.msra.mxu3 %v5853_v39  ;;  %v7653_v3 = vld [vmem:[#allocation9 + $0x3a4] sm:$0xf]  ;;  %v5934_v4 = vld [vmem:[#allocation9 + $0x3b0] sm:$0xf0]  ;;  %v8972_v7 = vpack.c.bf16 %v659_v2, %v659_v2  ;;  %v5809_v10 = vor.u32 %v7621_v61, %v5806_v62 }
  0xae   : > { %1509 = vmatpush.bf16.msrb.mxu0 %v5585_v40  ;;  %v7553_v11 = vld [vmem:[#allocation9 + $0x84] sm:$0xf]  ;;  %v5534_v12 = vld [vmem:[#allocation9 + $0x90] sm:$0xf0]  ;;  %v5937_v14 = vor.u32 %v7653_v3, %v5934_v4 }
  0xaf   : > { %1522 = vmatpush.bf16.msrb.mxu1 %v5713_v41  ;;  %1491 = vmatmul.bf16.vlgmr.msra.gmra.mxu2 %v8962_v57  ;;  %v7585_v13 = vld [vmem:[#allocation9 + $0x184] sm:$0xf]  ;;  %v5662_v15 = vld [vmem:[#allocation9 + $0x190] sm:$0xf0]  ;;  %v5537_v20 = vor.u32 %v7553_v11, %v5534_v12  ;;  %v7600_v12 = vld [vmem:[#allocation9 + $0x1f4] sm:$0xf0] }
  0xb0   : > { %1535 = vmatpush.bf16.msrb.mxu2 %v5841_v42  ;;  %v7617_v16 = vld [vmem:[#allocation9 + $0x284] sm:$0xf]  ;;  %v5790_v17 = vld [vmem:[#allocation9 + $0x290] sm:$0xf0]  ;;  %1465 = vmatmul.bf16.vlgmr.msra.gmra.mxu0 %v8968_v5  ;;  %v5665_v21 = vor.u32 %v7585_v13, %v5662_v15  ;;  %v5844_v13 = vld [vmem:[#allocation9 + $0x2e8] sm:$0xf] }
  0xb1   : > { %1548 = vmatpush.bf16.msrb.mxu3 %v5969_v46  ;;  %v7649_v18 = vld [vmem:[#allocation9 + $0x384] sm:$0xf]  ;;  %v5918_v19 = vld [vmem:[#allocation9 + $0x390] sm:$0xf0]  ;;  %1478 = vmatmul.bf16.vlgmr.msra.gmra.mxu1 %v8972_v7  ;;  %v5793_v22 = vor.u32 %v7617_v16, %v5790_v17  ;;  %v5972_v17 = vld [vmem:[#allocation9 + $0x3e8] sm:$0xf] }
  0xb2   : > { %1510 = vmatpush.bf16.msrb.mxu0 %v5569_v53  ;;  %1504 = vmatmul.bf16.vlgmr.msra.gmra.mxu3 %v8970_v6  ;;  %v7549_v23 = vld [vmem:[#allocation9 + $0x64] sm:$0xf]  ;;  %v5518_v24 = vld [vmem:[#allocation9 + $0x70] sm:$0xf0]  ;;  %v5921_v26 = vor.u32 %v7649_v18, %v5918_v19  ;;  %v7664_v18 = vld [vmem:[#allocation9 + $0x3f4] sm:$0xf0] }
  0xb3   : > { %1523 = vmatpush.bf16.msrb.mxu1 %v5697_v58  ;;  %v7581_v25 = vld [vmem:[#allocation9 + $0x164] sm:$0xf]  ;;  %v5646_v27 = vld [vmem:[#allocation9 + $0x170] sm:$0xf0]  ;;  %v5521_v32 = vor.u32 %v7549_v23, %v5518_v24  ;;  %v5572_v23 = vld [vmem:[#allocation9 + $0xc8] sm:$0xf] }
  0xb4   : > { %1536 = vmatpush.bf16.msrb.mxu2 %v5825_v59  ;;  %v7613_v28 = vld [vmem:[#allocation9 + $0x264] sm:$0xf]  ;;  %v5774_v29 = vld [vmem:[#allocation9 + $0x270] sm:$0xf0]  ;;  %v5649_v33 = vor.u32 %v7581_v25, %v5646_v27  ;;  %v7564_v24 = vld [vmem:[#allocation9 + $0xd4] sm:$0xf0] }
  0xb5   : > { %1549 = vmatpush.bf16.msrb.mxu3 %v5953_v63  ;;  %v7645_v30 = vld [vmem:[#allocation9 + $0x364] sm:$0xf]  ;;  %v5902_v31 = vld [vmem:[#allocation9 + $0x370] sm:$0xf0]  ;;  %v5777_v34 = vor.u32 %v7613_v28, %v5774_v29  ;;  %v5700_v25 = vld [vmem:[#allocation9 + $0x1c8] sm:$0xf] }
  0xb6   : > { %1511 = vmatpush.bf16.msrb.mxu0 %v5553_v8  ;;  %v7545_v35 = vld [vmem:[#allocation9 + $0x44] sm:$0xf]  ;;  %v5502_v36 = vld [vmem:[#allocation9 + $0x50] sm:$0xf0]  ;;  %v5905_v38 = vor.u32 %v7645_v30, %v5902_v31  ;;  %v5588_v8 = vld [vmem:[#allocation9 + $0xe8] sm:$0xf] }
  0xb7   : > { %1524 = vmatpush.bf16.msrb.mxu1 %v5681_v9  ;;  %v7577_v37 = vld [vmem:[#allocation9 + $0x144] sm:$0xf]  ;;  %v5630_v39 = vld [vmem:[#allocation9 + $0x150] sm:$0xf0]  ;;  %v5505_v44 = vor.u32 %v7545_v35, %v5502_v36  ;;  %v7568_v9 = vld [vmem:[#allocation9 + $0xf4] sm:$0xf0] }
  0xb8   : > { %1537 = vmatpush.bf16.msrb.mxu2 %v5809_v10  ;;  %v7609_v40 = vld [vmem:[#allocation9 + $0x244] sm:$0xf]  ;;  %v5758_v41 = vld [vmem:[#allocation9 + $0x250] sm:$0xf0]  ;;  %v5633_v45 = vor.u32 %v7577_v37, %v5630_v39  ;;  %v5716_v10 = vld [vmem:[#allocation9 + $0x1e8] sm:$0xf] }
  0xb9   : > { %1550 = vmatpush.bf16.msrb.mxu3 %v5937_v14  ;;  %v7641_v42 = vld [vmem:[#allocation9 + $0x344] sm:$0xf]  ;;  %v5886_v43 = vld [vmem:[#allocation9 + $0x350] sm:$0xf0]  ;;  %v5761_v46 = vor.u32 %v7609_v40, %v5758_v41  ;;  %v7632_v14 = vld [vmem:[#allocation9 + $0x2f4] sm:$0xf0] }
  0xba   : > { %1512 = vmatpush.bf16.msrb.mxu0 %v5537_v20  ;;  %v7541_v47 = vld [vmem:[#allocation9 + $0x24] sm:$0xf]  ;;  %v5486_v48 = vld [vmem:[#allocation9 + $0x30] sm:$0xf0]  ;;  %v5889_v50 = vor.u32 %v7641_v42, %v5886_v43  ;;  %v5589_v20 = vor.u32 %v7568_v9, %v5588_v8  ;;  %v7596_v27 = vld [vmem:[#allocation9 + $0x1d4] sm:$0xf0] }
  0xbb   : > { %1525 = vmatpush.bf16.msrb.mxu1 %v5665_v21  ;;  %v7573_v49 = vld [vmem:[#allocation9 + $0x124] sm:$0xf]  ;;  %v5614_v51 = vld [vmem:[#allocation9 + $0x130] sm:$0xf0]  ;;  %v5489_v56 = vor.u32 %v7541_v47, %v5486_v48  ;;  %v5717_v21 = vor.u32 %v7600_v12, %v5716_v10  ;;  %v5828_v28 = vld [vmem:[#allocation9 + $0x2c8] sm:$0xf] }
  0xbc   : > { %1538 = vmatpush.bf16.msrb.mxu2 %v5793_v22  ;;  %v7605_v52 = vld [vmem:[#allocation9 + $0x224] sm:$0xf]  ;;  %v5742_v53 = vld [vmem:[#allocation9 + $0x230] sm:$0xf0]  ;;  %v5617_v60 = vor.u32 %v7573_v49, %v5614_v51  ;;  %v5845_v22 = vor.u32 %v7632_v14, %v5844_v13  ;;  %v7628_v29 = vld [vmem:[#allocation9 + $0x2d4] sm:$0xf0] }
  0xbd   : > { %1551 = vmatpush.bf16.msrb.mxu3 %v5921_v26  ;;  %v7637_v54 = vld [vmem:[#allocation9 + $0x324] sm:$0xf]  ;;  %v5870_v55 = vld [vmem:[#allocation9 + $0x330] sm:$0xf0]  ;;  %v5745_v61 = vor.u32 %v7605_v52, %v5742_v53  ;;  %v5973_v26 = vor.u32 %v7664_v18, %v5972_v17  ;;  %v5956_v30 = vld [vmem:[#allocation9 + $0x3c8] sm:$0xf] }
  0xbe   : > { %1513 = vmatpush.bf16.msrb.mxu0 %v5521_v32  ;;  %v7537_v58 = vld [vmem:[#allocation9 + $0x4] sm:$0xf]  ;;  %v5470_v59 = vld [vmem:[#allocation9 + $0x10] sm:$0xf0]  ;;  %v5873_v1 = vor.u32 %v7637_v54, %v5870_v55  ;;  %v7660_v31 = vld [vmem:[#allocation9 + $0x3d4] sm:$0xf0]  ;;  %v5573_v32 = vor.u32 %v7564_v24, %v5572_v23 }
  0xbf   : > { %1526 = vmatpush.bf16.msrb.mxu1 %v5649_v33  ;;  %v7569_v62 = vld [vmem:[#allocation9 + $0x104] sm:$0xf]  ;;  %v5598_v63 = vld [vmem:[#allocation9 + $0x110] sm:$0xf0]  ;;  %v5473_v11 = vor.u32 %v7537_v58, %v5470_v59  ;;  %v5701_v33 = vor.u32 %v7596_v27, %v5700_v25  ;;  %v5556_v35 = vld [vmem:[#allocation9 + $0xa8] sm:$0xf] }
  0xc0   : > { %1539 = vmatpush.bf16.msrb.mxu2 %v5777_v34  ;;  %v7601_v0 = vld [vmem:[#allocation9 + $0x204] sm:$0xf]  ;;  %v5726_v2 = vld [vmem:[#allocation9 + $0x210] sm:$0xf0]  ;;  %v5601_v15 = vor.u32 %v7569_v62, %v5598_v63  ;;  %v5829_v34 = vor.u32 %v7628_v29, %v5828_v28  ;;  %v7560_v36 = vld [vmem:[#allocation9 + $0xb4] sm:$0xf0] }
  0xc1   : > { %1552 = vmatpush.bf16.msrb.mxu3 %v5905_v38  ;;  %v7633_v3 = vld [vmem:[#allocation9 + $0x304] sm:$0xf]  ;;  %v5854_v4 = vld [vmem:[#allocation9 + $0x310] sm:$0xf0]  ;;  %v5729_v16 = vor.u32 %v7601_v0, %v5726_v2  ;;  %v5684_v37 = vld [vmem:[#allocation9 + $0x1a8] sm:$0xf]  ;;  %v5957_v38 = vor.u32 %v7660_v31, %v5956_v30 }
  0xc2   : > { %1514 = vmatpush.bf16.msrb.mxu0 %v5505_v44  ;;  %v5857_v19 = vor.u32 %v7633_v3, %v5854_v4  ;;  %v7592_v39 = vld [vmem:[#allocation9 + $0x1b4] sm:$0xf0]  ;;  %v5812_v40 = vld [vmem:[#allocation9 + $0x2a8] sm:$0xf]  ;;  %v5557_v44 = vor.u32 %v7560_v36, %v5556_v35 }
  0xc3   : > { %1527 = vmatpush.bf16.msrb.mxu1 %v5633_v45  ;;  %v7624_v41 = vld [vmem:[#allocation9 + $0x2b4] sm:$0xf0]  ;;  %v5940_v42 = vld [vmem:[#allocation9 + $0x3a8] sm:$0xf]  ;;  %v5685_v45 = vor.u32 %v7592_v39, %v5684_v37 }
  0xc4   : > { %1540 = vmatpush.bf16.msrb.mxu2 %v5761_v46  ;;  %v7656_v43 = vld [vmem:[#allocation9 + $0x3b4] sm:$0xf0]  ;;  %v5813_v46 = vor.u32 %v7624_v41, %v5812_v40  ;;  %v5540_v47 = vld [vmem:[#allocation9 + $0x88] sm:$0xf] }
  0xc5   : > { %1553 = vmatpush.bf16.msrb.mxu3 %v5889_v50  ;;  %v7556_v48 = vld [vmem:[#allocation9 + $0x94] sm:$0xf0]  ;;  %v5668_v49 = vld [vmem:[#allocation9 + $0x188] sm:$0xf]  ;;  %v5941_v50 = vor.u32 %v7656_v43, %v5940_v42 }
  0xc6   : > { %1515 = vmatpush.bf16.msrb.mxu0 %v5489_v56  ;;  %v7588_v51 = vld [vmem:[#allocation9 + $0x194] sm:$0xf0]  ;;  %v5796_v52 = vld [vmem:[#allocation9 + $0x288] sm:$0xf]  ;;  %v5541_v56 = vor.u32 %v7556_v48, %v5540_v47  ;;  %v5718_v48 = vld [vmem:[#allocation9 + $0x1f8] sm:$0xf0] }
  0xc7   : > { %1528 = vmatpush.bf16.msrb.mxu1 %v5617_v60  ;;  %v7620_v53 = vld [vmem:[#allocation9 + $0x294] sm:$0xf0]  ;;  %v5924_v54 = vld [vmem:[#allocation9 + $0x388] sm:$0xf]  ;;  %v5669_v58 = vor.u32 %v7588_v51, %v5668_v49  ;;  %v7630_v49 = vld [vmem:[#allocation9 + $0x2ec] sm:$0xf] }
  0xc8   : > { %1541 = vmatpush.bf16.msrb.mxu2 %v5745_v61  ;;  %v7652_v55 = vld [vmem:[#allocation9 + $0x394] sm:$0xf0]  ;;  %v5797_v59 = vor.u32 %v7620_v53, %v5796_v52  ;;  %v5524_v60 = vld [vmem:[#allocation9 + $0x68] sm:$0xf]  ;;  %v7662_v53 = vld [vmem:[#allocation9 + $0x3ec] sm:$0xf] }
  0xc9   : > { %1554 = vmatpush.bf16.msrb.mxu3 %v5873_v1  ;;  %v7552_v61 = vld [vmem:[#allocation9 + $0x74] sm:$0xf0]  ;;  %v5652_v62 = vld [vmem:[#allocation9 + $0x168] sm:$0xf]  ;;  %v5925_v63 = vor.u32 %v7652_v55, %v5924_v54  ;;  %v5974_v54 = vld [vmem:[#allocation9 + $0x3f8] sm:$0xf0] }
  0xca   : > { %1516 = vmatpush.bf16.msrb.mxu0 %v5473_v11  ;;  %v7584_v0 = vld [vmem:[#allocation9 + $0x174] sm:$0xf0]  ;;  %v5780_v1 = vld [vmem:[#allocation9 + $0x268] sm:$0xf]  ;;  %v5525_v8 = vor.u32 %v7552_v61, %v5524_v60  ;;  %v7562_v60 = vld [vmem:[#allocation9 + $0xcc] sm:$0xf] }
  0xcb   : > { %1529 = vmatpush.bf16.msrb.mxu1 %v5601_v15  ;;  %v7616_v2 = vld [vmem:[#allocation9 + $0x274] sm:$0xf0]  ;;  %v5908_v3 = vld [vmem:[#allocation9 + $0x368] sm:$0xf]  ;;  %v5653_v9 = vor.u32 %v7584_v0, %v5652_v62  ;;  %v5574_v61 = vld [vmem:[#allocation9 + $0xd8] sm:$0xf0] }
  0xcc   : > { %1542 = vmatpush.bf16.msrb.mxu2 %v5729_v16  ;;  %v7648_v4 = vld [vmem:[#allocation9 + $0x374] sm:$0xf0]  ;;  %v5781_v10 = vor.u32 %v7616_v2, %v5780_v1  ;;  %v5508_v11 = vld [vmem:[#allocation9 + $0x48] sm:$0xf]  ;;  %v7594_v62 = vld [vmem:[#allocation9 + $0x1cc] sm:$0xf] }
  0xcd   : > { %1555 = vmatpush.bf16.msrb.mxu3 %v5857_v19  ;;  %1517 = vmatmul.bf16.vlgmr.msrb.gmra.mxu0 %v8968_v5  ;;  %v7548_v12 = vld [vmem:[#allocation9 + $0x54] sm:$0xf0]  ;;  %v5636_v13 = vld [vmem:[#allocation9 + $0x148] sm:$0xf]  ;;  %v5909_v14 = vor.u32 %v7648_v4, %v5908_v3  ;;  %v5702_v0 = vld [vmem:[#allocation9 + $0x1d8] sm:$0xf0] }
  0xce   : > { %1561 = vmatpush.bf16.msra.mxu0 %v5589_v20  ;;  %1530 = vmatmul.bf16.vlgmr.msrb.gmra.mxu1 %v8972_v7  ;;  %v7580_v15 = vld [vmem:[#allocation9 + $0x154] sm:$0xf0]  ;;  %v5764_v16 = vld [vmem:[#allocation9 + $0x248] sm:$0xf]  ;;  %v5509_v20 = vor.u32 %v7548_v12, %v5508_v11  ;;  %v7626_v1 = vld [vmem:[#allocation9 + $0x2cc] sm:$0xf] }
  0xcf   : > { %1574 = vmatpush.bf16.msra.mxu1 %v5717_v21  ;;  %1543 = vmatmul.bf16.vlgmr.msrb.gmra.mxu2 %v8962_v57  ;;  %v7612_v17 = vld [vmem:[#allocation9 + $0x254] sm:$0xf0]  ;;  %v5892_v18 = vld [vmem:[#allocation9 + $0x348] sm:$0xf]  ;;  %v5637_v21 = vor.u32 %v7580_v15, %v5636_v13  ;;  %v5830_v2 = vld [vmem:[#allocation9 + $0x2d8] sm:$0xf0] }
  0xd0   : > { %1587 = vmatpush.bf16.msra.mxu2 %v5845_v22  ;;  %1556 = vmatmul.bf16.vlgmr.msrb.gmra.mxu3 %v8970_v6  ;;  %v7644_v19 = vld [vmem:[#allocation9 + $0x354] sm:$0xf0]  ;;  %v5765_v22 = vor.u32 %v7612_v17, %v5764_v16  ;;  %v5492_v23 = vld [vmem:[#allocation9 + $0x28] sm:$0xf]  ;;  %v7658_v3 = vld [vmem:[#allocation9 + $0x3cc] sm:$0xf] }
  0xd1   : > { %1600 = vmatpush.bf16.msra.mxu3 %v5973_v26  ;;  %v7544_v24 = vld [vmem:[#allocation9 + $0x34] sm:$0xf0]  ;;  %v5620_v25 = vld [vmem:[#allocation9 + $0x128] sm:$0xf]  ;;  %v5893_v26 = vor.u32 %v7644_v19, %v5892_v18  ;;  %v5958_v4 = vld [vmem:[#allocation9 + $0x3d8] sm:$0xf0] }
  0xd2   : > { %1562 = vmatpush.bf16.msra.mxu0 %v5573_v32  ;;  %v7576_v27 = vld [vmem:[#allocation9 + $0x134] sm:$0xf0]  ;;  %v5748_v28 = vld [vmem:[#allocation9 + $0x228] sm:$0xf]  ;;  %v5493_v32 = vor.u32 %v7544_v24, %v5492_v23  ;;  %v7558_v11 = vld [vmem:[#allocation9 + $0xac] sm:$0xf] }
  0xd3   : > { %1575 = vmatpush.bf16.msra.mxu1 %v5701_v33  ;;  %v7608_v29 = vld [vmem:[#allocation9 + $0x234] sm:$0xf0]  ;;  %v5876_v30 = vld [vmem:[#allocation9 + $0x328] sm:$0xf]  ;;  %v5621_v35 = vor.u32 %v7576_v27, %v5620_v25  ;;  %v5558_v12 = vld [vmem:[#allocation9 + $0xb8] sm:$0xf0] }
  0xd4   : > { %1588 = vmatpush.bf16.msra.mxu2 %v5829_v34  ;;  %v7640_v31 = vld [vmem:[#allocation9 + $0x334] sm:$0xf0]  ;;  %v5476_v33 = vld [vmem:[#allocation9 + $0x8] sm:$0xf]  ;;  %v5749_v36 = vor.u32 %v7608_v29, %v5748_v28  ;;  %v7590_v13 = vld [vmem:[#allocation9 + $0x1ac] sm:$0xf] }
  0xd5   : > { %1601 = vmatpush.bf16.msra.mxu3 %v5957_v38  ;;  %v7540_v34 = vld [vmem:[#allocation9 + $0x14] sm:$0xf0]  ;;  %v5604_v37 = vld [vmem:[#allocation9 + $0x108] sm:$0xf]  ;;  %v5877_v40 = vor.u32 %v7640_v31, %v5876_v30  ;;  %v5686_v15 = vld [vmem:[#allocation9 + $0x1b8] sm:$0xf0] }
  0xd6   : > { %1563 = vmatpush.bf16.msra.mxu0 %v5557_v44  ;;  %v7572_v38 = vld [vmem:[#allocation9 + $0x114] sm:$0xf0]  ;;  %v5732_v39 = vld [vmem:[#allocation9 + $0x208] sm:$0xf]  ;;  %v7566_v44 = vld [vmem:[#allocation9 + $0xec] sm:$0xf]  ;;  %v5477_v47 = vor.u32 %v7540_v34, %v5476_v33 }
  0xd7   : > { %1576 = vmatpush.bf16.msra.mxu1 %v5685_v45  ;;  %v7604_v41 = vld [vmem:[#allocation9 + $0x214] sm:$0xf0]  ;;  %v5860_v42 = vld [vmem:[#allocation9 + $0x308] sm:$0xf]  ;;  %v5590_v45 = vld [vmem:[#allocation9 + $0xf8] sm:$0xf0]  ;;  %v5605_v51 = vor.u32 %v7572_v38, %v5604_v37 }
  0xd8   : > { %1589 = vmatpush.bf16.msra.mxu2 %v5813_v46  ;;  %v7636_v43 = vld [vmem:[#allocation9 + $0x314] sm:$0xf0]  ;;  %v7598_v46 = vld [vmem:[#allocation9 + $0x1ec] sm:$0xf]  ;;  %v5733_v52 = vor.u32 %v7604_v41, %v5732_v39  ;;  %v5814_v17 = vld [vmem:[#allocation9 + $0x2b8] sm:$0xf0] }
  0xd9   : > { %1602 = vmatpush.bf16.msra.mxu3 %v5941_v50  ;;  %v5846_v50 = vld [vmem:[#allocation9 + $0x2f8] sm:$0xf0]  ;;  %v5861_v55 = vor.u32 %v7636_v43, %v5860_v42  ;;  %v7622_v16 = vld [vmem:[#allocation9 + $0x2ac] sm:$0xf] }
  0xda   : > { %1564 = vmatpush.bf16.msra.mxu0 %v5541_v56  ;;  %v5593_v56 = vor.u32 %v7566_v44, %v5590_v45  ;;  %v7654_v18 = vld [vmem:[#allocation9 + $0x3ac] sm:$0xf]  ;;  %v5942_v19 = vld [vmem:[#allocation9 + $0x3b8] sm:$0xf0] }
  0xdb   : > { %1577 = vmatpush.bf16.msra.mxu1 %v5669_v58  ;;  %v5721_v58 = vor.u32 %v7598_v46, %v5718_v48  ;;  %v7554_v23 = vld [vmem:[#allocation9 + $0x8c] sm:$0xf]  ;;  %v5542_v24 = vld [vmem:[#allocation9 + $0x98] sm:$0xf0] }
  0xdc   : > { %1590 = vmatpush.bf16.msra.mxu2 %v5797_v59  ;;  %v5849_v59 = vor.u32 %v7630_v49, %v5846_v50  ;;  %v7586_v25 = vld [vmem:[#allocation9 + $0x18c] sm:$0xf]  ;;  %v5670_v27 = vld [vmem:[#allocation9 + $0x198] sm:$0xf0] }
  0xdd   : > { %1603 = vmatpush.bf16.msra.mxu3 %v5925_v63  ;;  %v5977_v63 = vor.u32 %v7662_v53, %v5974_v54  ;;  %v7618_v28 = vld [vmem:[#allocation9 + $0x28c] sm:$0xf]  ;;  %v5798_v29 = vld [vmem:[#allocation9 + $0x298] sm:$0xf0]  ;;  %v5673_v33 = vor.u32 %v7586_v25, %v5670_v27  ;;  %v6348_v25 = vld [vmem:[#allocation12 + $0x2e0] sm:$0xf] }
  0xde   : > { %1565 = vmatpush.bf16.msra.mxu0 %v5525_v8  ;;  %v5577_v8 = vor.u32 %v7562_v60, %v5574_v61  ;;  %v7650_v30 = vld [vmem:[#allocation9 + $0x38c] sm:$0xf]  ;;  %v5926_v31 = vld [vmem:[#allocation9 + $0x398] sm:$0xf0]  ;;  %v5801_v34 = vor.u32 %v7618_v28, %v5798_v29  ;;  %v6476_v29 = vld [vmem:[#allocation12 + $0x3e0] sm:$0xf] }
  0xdf   : > { %1578 = vmatpush.bf16.msra.mxu1 %v5653_v9  ;;  %v5705_v9 = vor.u32 %v7594_v62, %v5702_v0  ;;  %v7582_v37 = vld [vmem:[#allocation9 + $0x16c] sm:$0xf]  ;;  %v5929_v38 = vor.u32 %v7650_v30, %v5926_v31  ;;  %v5654_v39 = vld [vmem:[#allocation9 + $0x178] sm:$0xf0]  ;;  %v7791_v30 = vld [vmem:[#allocation12 + $0x3ec] sm:$0xf0] }
  0xe0   : > { %1591 = vmatpush.bf16.msra.mxu2 %v5781_v10  ;;  %v5833_v10 = vor.u32 %v7626_v1, %v5830_v2  ;;  %v5782_v41 = vld [vmem:[#allocation9 + $0x278] sm:$0xf0]  ;;  %v7646_v42 = vld [vmem:[#allocation9 + $0x36c] sm:$0xf]  ;;  %v5657_v45 = vor.u32 %v7582_v37, %v5654_v39  ;;  %v6204_v37 = vld [vmem:[#allocation12 + $0x1c0] sm:$0xf] }
  0xe1   : > { %1604 = vmatpush.bf16.msra.mxu3 %v5909_v14  ;;  %v5961_v14 = vor.u32 %v7658_v3, %v5958_v4  ;;  %v5910_v43 = vld [vmem:[#allocation9 + $0x378] sm:$0xf0]  ;;  %v7578_v49 = vld [vmem:[#allocation9 + $0x14c] sm:$0xf]  ;;  %v7723_v39 = vld [vmem:[#allocation12 + $0x1cc] sm:$0xf0] }
  0xe2   : > { %1566 = vmatpush.bf16.msra.mxu0 %v5509_v20  ;;  %v5561_v20 = vor.u32 %v7558_v11, %v5558_v12  ;;  %v5510_v48 = vld [vmem:[#allocation9 + $0x58] sm:$0xf0]  ;;  %v5913_v50 = vor.u32 %v7646_v42, %v5910_v43  ;;  %v7642_v54 = vld [vmem:[#allocation9 + $0x34c] sm:$0xf]  ;;  %v6460_v42 = vld [vmem:[#allocation12 + $0x3c0] sm:$0xf] }
  0xe3   : > { %1579 = vmatpush.bf16.msra.mxu1 %v5637_v21  ;;  %v5689_v21 = vor.u32 %v7590_v13, %v5686_v15  ;;  %v5766_v53 = vld [vmem:[#allocation9 + $0x258] sm:$0xf0]  ;;  %v7542_v60 = vld [vmem:[#allocation9 + $0x2c] sm:$0xf]  ;;  %v7787_v43 = vld [vmem:[#allocation12 + $0x3cc] sm:$0xf0] }
  0xe4   : > { %1592 = vmatpush.bf16.msra.mxu2 %v5765_v22  ;;  %v5817_v22 = vor.u32 %v7622_v16, %v5814_v17  ;;  %v5494_v61 = vld [vmem:[#allocation9 + $0x38] sm:$0xf0]  ;;  %v7574_v62 = vld [vmem:[#allocation9 + $0x12c] sm:$0xf] }
  0xe5   : > { %1605 = vmatpush.bf16.msra.mxu3 %v5893_v26  ;;  %v5945_v26 = vor.u32 %v7654_v18, %v5942_v19  ;;  %v5622_v0 = vld [vmem:[#allocation9 + $0x138] sm:$0xf0]  ;;  %v7606_v1 = vld [vmem:[#allocation9 + $0x22c] sm:$0xf] }
  0xe6   : > { %1567 = vmatpush.bf16.msra.mxu0 %v5493_v32  ;;  %v5545_v32 = vor.u32 %v7554_v23, %v5542_v24  ;;  %v5750_v2 = vld [vmem:[#allocation9 + $0x238] sm:$0xf0]  ;;  %v7638_v3 = vld [vmem:[#allocation9 + $0x32c] sm:$0xf]  ;;  %v5625_v11 = vor.u32 %v7574_v62, %v5622_v0  ;;  %v7727_v24 = vld [vmem:[#allocation12 + $0x1ec] sm:$0xf0] }
  0xe7   : > { %1580 = vmatpush.bf16.msra.mxu1 %v5621_v35  ;;  %v7550_v35 = vld [vmem:[#allocation9 + $0x6c] sm:$0xf]  ;;  %v5878_v4 = vld [vmem:[#allocation9 + $0x338] sm:$0xf0]  ;;  %v5753_v12 = vor.u32 %v7606_v1, %v5750_v2  ;;  %v6300_v0 = vld [vmem:[#allocation12 + $0x280] sm:$0xf] }
  0xe8   : > { %1593 = vmatpush.bf16.msra.mxu2 %v5749_v36  ;;  %v5526_v36 = vld [vmem:[#allocation9 + $0x78] sm:$0xf0]  ;;  %v7570_v13 = vld [vmem:[#allocation9 + $0x10c] sm:$0xf]  ;;  %v5881_v16 = vor.u32 %v7638_v3, %v5878_v4  ;;  %v6428_v1 = vld [vmem:[#allocation12 + $0x380] sm:$0xf] }
  0xe9   : > { %1606 = vmatpush.bf16.msra.mxu3 %v5877_v40  ;;  %v7614_v40 = vld [vmem:[#allocation9 + $0x26c] sm:$0xf]  ;;  %v5529_v44 = vor.u32 %v7550_v35, %v5526_v36  ;;  %v5734_v17 = vld [vmem:[#allocation9 + $0x218] sm:$0xf0]  ;;  %v6076_v35 = vld [vmem:[#allocation12 + $0xc0] sm:$0xf] }
  0xea   : > { %1568 = vmatpush.bf16.msra.mxu0 %v5477_v47  ;;  %v5785_v46 = vor.u32 %v7614_v40, %v5782_v41  ;;  %v7546_v47 = vld [vmem:[#allocation9 + $0x4c] sm:$0xf]  ;;  %v5862_v19 = vld [vmem:[#allocation9 + $0x318] sm:$0xf0]  ;;  %v7691_v36 = vld [vmem:[#allocation12 + $0xcc] sm:$0xf0] }
  0xeb   : > { %1581 = vmatpush.bf16.msra.mxu1 %v5605_v51  ;;  %v5638_v51 = vld [vmem:[#allocation9 + $0x158] sm:$0xf0]  ;;  %v7602_v15 = vld [vmem:[#allocation9 + $0x20c] sm:$0xf]  ;;  %v6332_v40 = vld [vmem:[#allocation12 + $0x2c0] sm:$0xf] }
  0xec   : > { %1594 = vmatpush.bf16.msra.mxu2 %v5733_v52  ;;  %v7610_v52 = vld [vmem:[#allocation9 + $0x24c] sm:$0xf]  ;;  %v5737_v28 = vor.u32 %v7602_v15, %v5734_v17  ;;  %v7755_v41 = vld [vmem:[#allocation12 + $0x2cc] sm:$0xf0]  ;;  %v6028_v4 = vld [vmem:[#allocation12 + $0x60] sm:$0xf] }
  0xed   : > { %1607 = vmatpush.bf16.msra.mxu3 %v5861_v55  ;;  %1569 = vmatmul.bf16.vlgmr.msra.gmra.mxu0 %v8968_v5  ;;  %v5894_v55 = vld [vmem:[#allocation9 + $0x358] sm:$0xf0]  ;;  %v7634_v18 = vld [vmem:[#allocation9 + $0x30c] sm:$0xf]  ;;  %v7775_v15 = vld [vmem:[#allocation12 + $0x36c] sm:$0xf0] }
  0xee   : > { %1613 = vmatpush.bf16.msrb.mxu0 %v5593_v56  ;;  %1582 = vmatmul.bf16.vlgmr.msra.gmra.mxu1 %v8972_v7  ;;  %v5513_v56 = vor.u32 %v7546_v47, %v5510_v48  ;;  %v5865_v31 = vor.u32 %v7634_v18, %v5862_v19  ;;  %v6060_v47 = vld [vmem:[#allocation12 + $0xa0] sm:$0xf]  ;;  %v7687_v48 = vld [vmem:[#allocation12 + $0xac] sm:$0xf0] }
  0xef   : > { %1626 = vmatpush.bf16.msrb.mxu1 %v5721_v58  ;;  %1595 = vmatmul.bf16.vlgmr.msra.gmra.mxu2 %v8962_v57  ;;  %v5641_v58 = vor.u32 %v7578_v49, %v5638_v51  ;;  %v6188_v49 = vld [vmem:[#allocation12 + $0x1a0] sm:$0xf]  ;;  %v7719_v51 = vld [vmem:[#allocation12 + $0x1ac] sm:$0xf0] }
  0xf0   : > { %1639 = vmatpush.bf16.msrb.mxu2 %v5849_v59  ;;  %1608 = vmatmul.bf16.vlgmr.msra.gmra.mxu3 %v8970_v6  ;;  %v5769_v59 = vor.u32 %v7610_v52, %v5766_v53  ;;  %v6316_v52 = vld [vmem:[#allocation12 + $0x2a0] sm:$0xf]  ;;  %v7751_v53 = vld [vmem:[#allocation12 + $0x2ac] sm:$0xf0] }
  0xf1   : > { %1652 = vmatpush.bf16.msrb.mxu3 %v5977_v63  ;;  %v5897_v63 = vor.u32 %v7642_v54, %v5894_v55  ;;  %v6444_v54 = vld [vmem:[#allocation12 + $0x3a0] sm:$0xf]  ;;  %v7783_v55 = vld [vmem:[#allocation12 + $0x3ac] sm:$0xf0] }
  0xf2   : > { %1614 = vmatpush.bf16.msrb.mxu0 %v5577_v8  ;;  %v5497_v8 = vor.u32 %v7542_v60, %v5494_v61  ;;  %v6044_v60 = vld [vmem:[#allocation12 + $0x80] sm:$0xf]  ;;  %v6445_v62 = vor.u32 %v7783_v55, %v6444_v54  ;;  %v7725_v54 = vld [vmem:[#allocation12 + $0x1e4] sm:$0xf]  ;;  %v6222_v55 = vld [vmem:[#allocation12 + $0x1f0] sm:$0xf0] }
  0xf3   : > { %1627 = vmatpush.bf16.msrb.mxu1 %v5705_v9  ;;  %v7538_v9 = vld [vmem:[#allocation9 + $0xc] sm:$0xf]  ;;  %v6172_v61 = vld [vmem:[#allocation12 + $0x180] sm:$0xf] }
  0xf4   : > { %1640 = vmatpush.bf16.msrb.mxu2 %v5833_v10  ;;  %v5478_v10 = vld [vmem:[#allocation9 + $0x18] sm:$0xf0]  ;;  %v6012_v19 = vld [vmem:[#allocation12 + $0x40] sm:$0xf] }
  0xf5   : > { %1653 = vmatpush.bf16.msrb.mxu3 %v5961_v14  ;;  %v5606_v14 = vld [vmem:[#allocation9 + $0x118] sm:$0xf0]  ;;  %v5481_v23 = vor.u32 %v7538_v9, %v5478_v10  ;;  %v6156_v9 = vld [vmem:[#allocation12 + $0x160] sm:$0xf] }
  0xf6   : > { %1615 = vmatpush.bf16.msrb.mxu0 %v5561_v20  ;;  %v6092_v20 = vld [vmem:[#allocation12 + $0xe0] sm:$0xf]  ;;  %v5609_v27 = vor.u32 %v7570_v13, %v5606_v14  ;;  %v7743_v13 = vld [vmem:[#allocation12 + $0x26c] sm:$0xf0] }
  0xf7   : > { %1628 = vmatpush.bf16.msrb.mxu1 %v5689_v21  ;;  %v7695_v21 = vld [vmem:[#allocation12 + $0xec] sm:$0xf0]  ;;  %v6412_v14 = vld [vmem:[#allocation12 + $0x360] sm:$0xf] }
  0xf8   : > { %1641 = vmatpush.bf16.msrb.mxu2 %v5817_v22  ;;  %v6220_v22 = vld [vmem:[#allocation12 + $0x1e0] sm:$0xf] }
  0xf9   : > { %1654 = vmatpush.bf16.msrb.mxu3 %v5945_v26  ;;  %v7759_v26 = vld [vmem:[#allocation12 + $0x2ec] sm:$0xf0] }
  0xfa   : > { %1616 = vmatpush.bf16.msrb.mxu0 %v5545_v32  ;;  %v6093_v32 = vor.u32 %v7695_v21, %v6092_v20  ;;  %v7675_v20 = vld [vmem:[#allocation12 + $0x4c] sm:$0xf0]  ;;  %v6140_v21 = vld [vmem:[#allocation12 + $0x140] sm:$0xf] }
  0xfb   : > { %1629 = vmatpush.bf16.msrb.mxu1 %v5673_v33  ;;  %v6221_v33 = vor.u32 %v7727_v24, %v6220_v22  ;;  %v6413_v22 = vor.u32 %v7775_v15, %v6412_v14  ;;  %v6268_v24 = vld [vmem:[#allocation12 + $0x240] sm:$0xf]  ;;  %v6206_v15 = vld [vmem:[#allocation12 + $0x1d0] sm:$0xf0] }
  0xfc   : > { %1642 = vmatpush.bf16.msrb.mxu2 %v5801_v34  ;;  %v6349_v34 = vor.u32 %v7759_v26, %v6348_v25  ;;  %v7739_v25 = vld [vmem:[#allocation12 + $0x24c] sm:$0xf0]  ;;  %v6396_v26 = vld [vmem:[#allocation12 + $0x340] sm:$0xf] }
  0xfd   : > { %1655 = vmatpush.bf16.msrb.mxu3 %v5929_v38  ;;  %v6477_v38 = vor.u32 %v7791_v30, %v6476_v29  ;;  %v6269_v30 = vor.u32 %v7739_v25, %v6268_v24 }
  0xfe   : > { %1617 = vmatpush.bf16.msrb.mxu0 %v5529_v44  ;;  %v6077_v44 = vor.u32 %v7691_v36, %v6076_v35  ;;  %v7703_v35 = vld [vmem:[#allocation12 + $0x12c] sm:$0xf0]  ;;  %v6252_v36 = vld [vmem:[#allocation12 + $0x220] sm:$0xf] }
  0xff   : > { %1630 = vmatpush.bf16.msrb.mxu1 %v5657_v45  ;;  %v6205_v45 = vor.u32 %v7723_v39, %v6204_v37  ;;  %v7735_v37 = vld [vmem:[#allocation12 + $0x22c] sm:$0xf0] }
 0x100   : > { %1643 = vmatpush.bf16.msrb.mxu2 %v5785_v46  ;;  %v6333_v46 = vor.u32 %v7755_v41, %v6332_v40  ;;  %v7767_v39 = vld [vmem:[#allocation12 + $0x32c] sm:$0xf0]  ;;  %v5980_v40 = vld [vmem:[#allocation12] sm:$0xf] }
 0x101   : > { %1656 = vmatpush.bf16.msrb.mxu3 %v5913_v50  ;;  %v6461_v50 = vor.u32 %v7787_v43, %v6460_v42  ;;  %v7667_v42 = vld [vmem:[#allocation12 + $0xc] sm:$0xf0]  ;;  %v6108_v43 = vld [vmem:[#allocation12 + $0x100] sm:$0xf] }
 0x102   : > { %1618 = vmatpush.bf16.msrb.mxu0 %v5513_v56  ;;  %v6061_v56 = vor.u32 %v7687_v48, %v6060_v47  ;;  %v6236_v47 = vld [vmem:[#allocation12 + $0x200] sm:$0xf]  ;;  %v7731_v48 = vld [vmem:[#allocation12 + $0x20c] sm:$0xf0] }
 0x103   : > { %1631 = vmatpush.bf16.msrb.mxu1 %v5641_v58  ;;  %v6189_v58 = vor.u32 %v7719_v51, %v6188_v49  ;;  %v6364_v49 = vld [vmem:[#allocation12 + $0x300] sm:$0xf]  ;;  %v7763_v51 = vld [vmem:[#allocation12 + $0x30c] sm:$0xf0] }
 0x104   : > { %1644 = vmatpush.bf16.msrb.mxu2 %v5769_v59  ;;  %v6317_v59 = vor.u32 %v7751_v53, %v6316_v52  ;;  %v7693_v52 = vld [vmem:[#allocation12 + $0xe4] sm:$0xf]  ;;  %v6094_v53 = vld [vmem:[#allocation12 + $0xf0] sm:$0xf0] }
 0x105   : > { %1657 = vmatpush.bf16.msrb.mxu3 %v5897_v63  ;;  %v7715_v63 = vld [vmem:[#allocation12 + $0x18c] sm:$0xf0] }
 0x106   : > { %1619 = vmatpush.bf16.msrb.mxu0 %v5497_v8  ;;  %v7679_v8 = vld [vmem:[#allocation12 + $0x6c] sm:$0xf0] }
 0x107   : > { %1632 = vmatpush.bf16.msrb.mxu1 %v5625_v11  ;;  %v7711_v11 = vld [vmem:[#allocation12 + $0x16c] sm:$0xf0] }
 0x108   : > { %1645 = vmatpush.bf16.msrb.mxu2 %v5753_v12  ;;  %v6284_v12 = vld [vmem:[#allocation12 + $0x260] sm:$0xf]  ;;  %v6157_v17 = vor.u32 %v7711_v11, %v6156_v9  ;;  %v6225_v9 = vor.u32 %v7725_v54, %v6222_v55  ;;  %v7721_v11 = vld [vmem:[#allocation12 + $0x1c4] sm:$0xf]  ;;  %v6030_v54 = vld [vmem:[#allocation12 + $0x70] sm:$0xf0] }
 0x109   : > { %1658 = vmatpush.bf16.msrb.mxu3 %v5881_v16  ;;  %v6029_v16 = vor.u32 %v7679_v8, %v6028_v4  ;;  %v6285_v18 = vor.u32 %v7743_v13, %v6284_v12  ;;  %v665_v4 = vld [vmem:[%s8938_s19 + $0x18] sm:$0xff]  ;;  %v663_v12 = vld [vmem:[%s8938_s19 + $0x8] sm:$0xff]  ;;  %v6209_v25 = vor.u32 %v7721_v11, %v6206_v15 }
 0x10a   : > { %1620 = vmatpush.bf16.msrb.mxu0 %v5481_v23  ;;  %v7707_v23 = vld [vmem:[#allocation12 + $0x14c] sm:$0xf0]  ;;  %v667_v13 = vld [vmem:[%s8938_s19 + $0x28] sm:$0xff]  ;;  %v6270_v11 = vld [vmem:[#allocation12 + $0x250] sm:$0xf0] }
 0x10b   : > { %1633 = vmatpush.bf16.msrb.mxu1 %v5609_v27  ;;  %v7771_v27 = vld [vmem:[#allocation12 + $0x34c] sm:$0xf0]  ;;  %v6141_v29 = vor.u32 %v7707_v23, %v6140_v21  ;;  %v9003_v24 = vpack.c.bf16 %v667_v13, %v663_v12  ;;  %v7709_v55 = vld [vmem:[#allocation12 + $0x164] sm:$0xf] }
 0x10c   : > { %1646 = vmatpush.bf16.msrb.mxu2 %v5737_v28  ;;  %v6013_v28 = vor.u32 %v7675_v20, %v6012_v19  ;;  %v669_v8 = vld [vmem:[%s8938_s19 + $0x38] sm:$0xff]  ;;  %v7785_v19 = vld [vmem:[#allocation12 + $0x3c4] sm:$0xf] }
 0x10d   : > { %1659 = vmatpush.bf16.msrb.mxu3 %v5865_v31  ;;  %1621 = vmatmul.bf16.vlgmr.msrb.gmra.mxu0 %v8968_v5  ;;  %v7747_v5 = vld [vmem:[#allocation12 + $0x28c] sm:$0xf0]  ;;  %v5996_v31 = vld [vmem:[#allocation12 + $0x20] sm:$0xf]  ;;  %v6462_v20 = vld [vmem:[#allocation12 + $0x3d0] sm:$0xf0] }
 0x10e   : > { %2447 = vmatpush.bf16.msra.mxu0 %v6093_v32  ;;  %1634 = vmatmul.bf16.vlgmr.msrb.gmra.mxu1 %v8972_v7  ;;  %v6173_v7 = vor.u32 %v7715_v63, %v6172_v61  ;;  %v6301_v3 = vor.u32 %v7747_v5, %v6300_v0  ;;  %v7671_v32 = vld [vmem:[#allocation12 + $0x2c] sm:$0xf0]  ;;  %v7689_v63 = vld [vmem:[#allocation12 + $0xc4] sm:$0xf]  ;;  %v6078_v0 = vld [vmem:[#allocation12 + $0xd0] sm:$0xf0] }
 0x10f   : > { %2461 = vmatpush.bf16.msra.mxu1 %v6221_v33  ;;  %1647 = vmatmul.bf16.vlgmr.msrb.gmra.mxu2 %v8962_v57  ;;  %v7683_v57 = vld [vmem:[#allocation12 + $0x8c] sm:$0xf0]  ;;  %v6124_v33 = vld [vmem:[#allocation12 + $0x120] sm:$0xf]  ;;  %v5997_v41 = vor.u32 %v7671_v32, %v5996_v31  ;;  %v6081_v23 = vor.u32 %v7689_v63, %v6078_v0  ;;  %v6190_v31 = vld [vmem:[#allocation12 + $0x1b0] sm:$0xf0] }
 0x110   : > { %2475 = vmatpush.bf16.msra.mxu2 %v6349_v34  ;;  %1660 = vmatmul.bf16.vlgmr.msrb.gmra.mxu3 %v8970_v6  ;;  %v7779_v6 = vld [vmem:[#allocation12 + $0x38c] sm:$0xf0]  ;;  %v6045_v2 = vor.u32 %v7683_v57, %v6044_v60  ;;  %v6397_v34 = vor.u32 %v7771_v27, %v6396_v26  ;;  %v7789_v60 = vld [vmem:[#allocation12 + $0x3e4] sm:$0xf]  ;;  %v6478_v57 = vld [vmem:[#allocation12 + $0x3f0] sm:$0xf0] }
 0x111   : > { %2489 = vmatpush.bf16.msra.mxu3 %v6477_v38  ;;  %v6429_v10 = vor.u32 %v7779_v6, %v6428_v1  ;;  %v6380_v38 = vld [vmem:[#allocation12 + $0x320] sm:$0xf]  ;;  %v664_v5 = vld [vmem:[%s8938_s19 + $0x10] sm:$0xff]  ;;  %v6481_v14 = vor.u32 %v7789_v60, %v6478_v57  ;;  %v7685_v27 = vld [vmem:[#allocation12 + $0xa4] sm:$0xf] }
 0x112   : > { %2448 = vmatpush.bf16.msra.mxu0 %v6077_v44  ;;  %v7699_v44 = vld [vmem:[#allocation12 + $0x10c] sm:$0xf0]  ;;  %v662_v6 = vld [vmem:[%s8938_s19] sm:$0xff]  ;;  %v7749_v32 = vld [vmem:[#allocation12 + $0x2a4] sm:$0xf] }
 0x113   : > { %2462 = vmatpush.bf16.msra.mxu1 %v6205_v45  ;;  %v6125_v45 = vor.u32 %v7703_v35, %v6124_v33  ;;  %v6109_v61 = vor.u32 %v7699_v44, %v6108_v43  ;;  %v668_v1 = vld [vmem:[%s8938_s19 + $0x30] sm:$0xff]  ;;  %v6318_v33 = vld [vmem:[#allocation12 + $0x2b0] sm:$0xf0]  ;;  %v7773_v57 = vld [vmem:[#allocation12 + $0x364] sm:$0xf] }
 0x114   : > { %2476 = vmatpush.bf16.msra.mxu2 %v6333_v46  ;;  %v6253_v46 = vor.u32 %v7735_v37, %v6252_v36  ;;  %v6446_v35 = vld [vmem:[#allocation12 + $0x3b0] sm:$0xf0]  ;;  %v7681_v37 = vld [vmem:[#allocation12 + $0x84] sm:$0xf] }
 0x115   : > { %2490 = vmatpush.bf16.msra.mxu3 %v6461_v50  ;;  %v6381_v50 = vor.u32 %v7767_v39, %v6380_v38  ;;  %v6321_v39 = vor.u32 %v7749_v32, %v6318_v33  ;;  %v6174_v44 = vld [vmem:[#allocation12 + $0x190] sm:$0xf0]  ;;  %v7769_v13 = vld [vmem:[#allocation12 + $0x344] sm:$0xf] }
 0x116   : > { %2449 = vmatpush.bf16.msra.mxu0 %v6061_v56  ;;  %v7757_v56 = vld [vmem:[#allocation12 + $0x2e4] sm:$0xf]  ;;  %v6286_v60 = vld [vmem:[#allocation12 + $0x270] sm:$0xf0] }
 0x117   : > { %2463 = vmatpush.bf16.msra.mxu1 %v6189_v58  ;;  %v5981_v58 = vor.u32 %v7667_v42, %v5980_v40  ;;  %v6046_v40 = vld [vmem:[#allocation12 + $0x90] sm:$0xf0]  ;;  %v9009_v42 = vld [vmem:[#allocation11] sm:$0xf] }
 0x118   : > { %2477 = vmatpush.bf16.msra.mxu2 %v6317_v59  ;;  %v6350_v59 = vld [vmem:[#allocation12 + $0x2f0] sm:$0xf0] }
 0x119   : > { %2491 = vmatpush.bf16.msra.mxu3 %v6445_v62  ;;  %v6237_v62 = vor.u32 %v7731_v48, %v6236_v47  ;;  %v7777_v47 = vld [vmem:[#allocation12 + $0x384] sm:$0xf]  ;;  %v6430_v48 = vld [vmem:[#allocation12 + $0x390] sm:$0xf0] }
 0x11a   : > { %2450 = vmatpush.bf16.msra.mxu0 %v6045_v2  ;;  %v6365_v2 = vor.u32 %v7763_v51, %v6364_v49  ;;  %v6049_v49 = vor.u32 %v7681_v37, %v6046_v40  ;;  %v6382_v32 = vld [vmem:[#allocation12 + $0x330] sm:$0xf0] }
 0x11b   : > { %2464 = vmatpush.bf16.msra.mxu1 %v6173_v7  ;;  %v6097_v7 = vor.u32 %v7693_v52, %v6094_v53  ;;  %v7677_v53 = vld [vmem:[#allocation12 + $0x64] sm:$0xf]  ;;  %v5982_v40 = vld [vmem:[#allocation12 + $0x10] sm:$0xf0] }
 0x11c   : > { %2478 = vmatpush.bf16.msra.mxu2 %v6301_v3  ;;  %v666_v3 = vld [vmem:[%s8938_s19 + $0x20] sm:$0xff]  ;;  %v6033_v63 = vor.u32 %v7677_v53, %v6030_v54  ;;  %v6356_v53 = vld [vmem:[#allocation12 + $0x2e8] sm:$0xf] }
 0x11d   : > { %2492 = vmatpush.bf16.msra.mxu3 %v6429_v10  ;;  %v6353_v10 = vor.u32 %v7757_v56, %v6350_v59  ;;  %v8999_v21 = vpack.c.bf16 %v666_v3, %v662_v6  ;;  %v6433_v56 = vor.u32 %v7777_v47, %v6430_v48  ;;  %v7741_v59 = vld [vmem:[#allocation12 + $0x264] sm:$0xf]  ;;  %v6238_v47 = vld [vmem:[#allocation12 + $0x210] sm:$0xf0]  ;;  %v7760_v54 = vld [vmem:[#allocation12 + $0x2f4] sm:$0xf0] }
 0x11e   : > { %2451 = vmatpush.bf16.msra.mxu0 %v6029_v16  ;;  %v7753_v16 = vld [vmem:[#allocation12 + $0x2c4] sm:$0xf]  ;;  %v6289_v6 = vor.u32 %v7741_v59, %v6286_v60  ;;  %v6484_v60 = vld [vmem:[#allocation12 + $0x3e8] sm:$0xf] }
 0x11f   : > { %2465 = vmatpush.bf16.msra.mxu1 %v6157_v17  ;;  %v6334_v17 = vld [vmem:[#allocation12 + $0x2d0] sm:$0xf0]  ;;  %v7705_v3 = vld [vmem:[#allocation12 + $0x144] sm:$0xf] }
 0x120   : > { %2479 = vmatpush.bf16.msra.mxu2 %v6285_v18  ;;  %v8997_v18 = vpack.c.bf16 %v668_v1, %v664_v5  ;;  %v6337_v26 = vor.u32 %v7753_v16, %v6334_v17  ;;  %v7761_v48 = vld [vmem:[#allocation12 + $0x304] sm:$0xf] }
 0x121   : > { %2493 = vmatpush.bf16.msra.mxu3 %v6413_v22  ;;  %v9001_v22 = vpack.c.bf16 %v669_v8, %v665_v4 }
 0x122   : > { %2452 = vmatpush.bf16.msra.mxu0 %v6013_v28  ;;  %v6062_v28 = vld [vmem:[#allocation12 + $0xb0] sm:$0xf0] }
 0x123   : > { %2466 = vmatpush.bf16.msra.mxu1 %v6141_v29  ;;  %v7717_v29 = vld [vmem:[#allocation12 + $0x1a4] sm:$0xf]  ;;  %v6065_v36 = vor.u32 %v7685_v27, %v6062_v28  ;;  %v6126_v27 = vld [vmem:[#allocation12 + $0x130] sm:$0xf0] }
 0x124   : > { %2480 = vmatpush.bf16.msra.mxu2 %v6269_v30  ;;  %v6465_v30 = vor.u32 %v7785_v19, %v6462_v20  ;;  %v6193_v38 = vor.u32 %v7717_v29, %v6190_v31  ;;  %v7669_v20 = vld [vmem:[#allocation12 + $0x24] sm:$0xf]  ;;  %v6254_v29 = vld [vmem:[#allocation12 + $0x230] sm:$0xf0] }
 0x125   : > { %2494 = vmatpush.bf16.msra.mxu3 %v6397_v34  ;;  %v7781_v34 = vld [vmem:[#allocation12 + $0x3a4] sm:$0xf] }
 0x126   : > { %2453 = vmatpush.bf16.msra.mxu0 %v5997_v41  ;;  %v7713_v41 = vld [vmem:[#allocation12 + $0x184] sm:$0xf]  ;;  %v6449_v43 = vor.u32 %v7781_v34, %v6446_v35 }
 0x127   : > { %2467 = vmatpush.bf16.msra.mxu1 %v6125_v45  ;;  %v7745_v45 = vld [vmem:[#allocation12 + $0x284] sm:$0xf]  ;;  %v6177_v51 = vor.u32 %v7713_v41, %v6174_v44 }
 0x128   : > { %2481 = vmatpush.bf16.msra.mxu2 %v6253_v46  ;;  %v6302_v46 = vld [vmem:[#allocation12 + $0x290] sm:$0xf0]  ;;  %v7733_v28 = vld [vmem:[#allocation12 + $0x224] sm:$0xf] }
 0x129   : > { %2495 = vmatpush.bf16.msra.mxu3 %v6381_v50  ;;  %v809_v50 = vperm.slane %v9009_v42, 0  ;;  %v6305_v52 = vor.u32 %v7745_v45, %v6302_v46  ;;  %v7765_v31 = vld [vmem:[#allocation12 + $0x324] sm:$0xf] }
 0x12a   : > { %2454 = vmatpush.bf16.msra.mxu0 %v5981_v58  ;;  %v6158_v58 = vld [vmem:[#allocation12 + $0x170] sm:$0xf0]  ;;  %v7697_v41 = vld [vmem:[#allocation12 + $0x104] sm:$0xf]  ;;  %v6385_v45 = vor.u32 %v7765_v31, %v6382_v32  ;;  %v810_v31 = vperm.slane %v9009_v42, 1 }
 0x12b   : > { %2468 = vmatpush.bf16.msra.mxu1 %v6109_v61  ;;  %v6414_v61 = vld [vmem:[#allocation12 + $0x370] sm:$0xf0]  ;;  %v6161_v1 = vor.u32 %v7709_v55, %v6158_v58  ;;  %v7729_v46 = vld [vmem:[#allocation12 + $0x204] sm:$0xf]  ;;  %v6308_v32 = vld [vmem:[#allocation12 + $0x288] sm:$0xf] }
 0x12c   : > { %2482 = vmatpush.bf16.msra.mxu2 %v6237_v62  ;;  %v6417_v8 = vor.u32 %v7773_v57, %v6414_v61  ;;  %v6228_v57 = vld [vmem:[#allocation12 + $0x1e8] sm:$0xf]  ;;  %v7728_v61 = vld [vmem:[#allocation12 + $0x1f4] sm:$0xf0] }
 0x12d   : > { %2496 = vmatpush.bf16.msra.mxu3 %v6365_v2  ;;  %2455 = vmatmul.bf16.vlgmr.msra.gmra.mxu0 %v8999_v21  ;;  %v1466_v62 = vpop.f32.mrf.mxu0  ;;  %v7673_v2 = vld [vmem:[#allocation12 + $0x44] sm:$0xf] }
 0x12e   : > { %2503 = vmatpush.bf16.msrb.mxu0 %v6097_v7  ;;  %2469 = vmatmul.bf16.vlgmr.msra.gmra.mxu1 %v9003_v24  ;;  %v1467_v0 = vadd.f32 %v1466_v62, %v809_v50  ;;  %v1479_v5 = vpop.f32.mrf.mxu1  ;;  %v6014_v7 = vld [vmem:[#allocation12 + $0x50] sm:$0xf0]  ;;  %v6100_v50 = vld [vmem:[#allocation12 + $0xe8] sm:$0xf] }
 0x12f   : > { %2517 = vmatpush.bf16.msrb.mxu1 %v6225_v9  ;;  %2483 = vmatmul.bf16.vlgmr.msra.gmra.mxu2 %v8997_v18  ;;  %v6142_v9 = vld [vmem:[#allocation12 + $0x150] sm:$0xf0]  ;;  %v6017_v15 = vor.u32 %v7673_v2, %v6014_v7  ;;  %v7756_v2 = vld [vmem:[#allocation12 + $0x2d4] sm:$0xf0]  ;;  %v6229_v7 = vor.u32 %v7728_v61, %v6228_v57  ;;  %v6020_v61 = vld [vmem:[#allocation12 + $0x48] sm:$0xf] }
 0x130   : > { %2531 = vmatpush.bf16.msrb.mxu2 %v6353_v10  ;;  %2497 = vmatmul.bf16.vlgmr.msra.gmra.mxu3 %v9001_v22  ;;  %v7737_v10 = vld [vmem:[#allocation12 + $0x244] sm:$0xf]  ;;  %v1480_v12 = vadd.f32 %v1479_v5, %v1467_v0  ;;  %v6145_v17 = vor.u32 %v7705_v3, %v6142_v9  ;;  %v7792_v0 = vld [vmem:[#allocation12 + $0x3f4] sm:$0xf0]  ;;  %v6084_v5 = vld [vmem:[#allocation12 + $0xc8] sm:$0xf] }
 0x131   : > { %2545 = vmatpush.bf16.msrb.mxu3 %v6481_v14  ;;  %v6398_v14 = vld [vmem:[#allocation12 + $0x350] sm:$0xf0]  ;;  %v6273_v19 = vor.u32 %v7737_v10, %v6270_v11  ;;  %v6485_v3 = vor.u32 %v7792_v0, %v6484_v60  ;;  %v6212_v9 = vld [vmem:[#allocation12 + $0x1c8] sm:$0xf]  ;;  %v7724_v10 = vld [vmem:[#allocation12 + $0x1d4] sm:$0xf0] }
 0x132   : > { %2504 = vmatpush.bf16.msrb.mxu0 %v6081_v23  ;;  %v1492_v4 = vpop.f32.mrf.mxu2  ;;  %v5998_v23 = vld [vmem:[#allocation12 + $0x30] sm:$0xf0]  ;;  %v7776_v57 = vld [vmem:[#allocation12 + $0x374] sm:$0xf0] }
 0x133   : > { %2518 = vmatpush.bf16.msrb.mxu1 %v6209_v25  ;;  %v1493_v16 = vadd.f32 %v1492_v4, %v1480_v12  ;;  %v7701_v25 = vld [vmem:[#allocation12 + $0x124] sm:$0xf]  ;;  %v6001_v35 = vor.u32 %v7669_v20, %v5998_v23  ;;  %v7788_v12 = vld [vmem:[#allocation12 + $0x3d4] sm:$0xf0] }
 0x134   : > { %2532 = vmatpush.bf16.msrb.mxu2 %v6337_v26  ;;  %v6401_v26 = vor.u32 %v7769_v13, %v6398_v14  ;;  %v6068_v13 = vld [vmem:[#allocation12 + $0xa8] sm:$0xf]  ;;  %v7688_v14 = vld [vmem:[#allocation12 + $0xb4] sm:$0xf0] }
 0x135   : > { %2546 = vmatpush.bf16.msrb.mxu3 %v6465_v30  ;;  %v1505_v30 = vpop.f32.mrf.mxu3  ;;  %v1468_v34 = vpop.f32.mrf.mxu0  ;;  %v6069_v23 = vor.u32 %v7688_v14, %v6068_v13  ;;  %v6004_v13 = vld [vmem:[#allocation12 + $0x28] sm:$0xf]  ;;  %v7672_v14 = vld [vmem:[#allocation12 + $0x34] sm:$0xf0] }
 0x136   : > { %2505 = vmatpush.bf16.msrb.mxu0 %v6065_v36  ;;  %v9012_v33 = vadd.f32 %v1505_v30, %v1493_v16  ;;  %v7665_v36 = vld [vmem:[#allocation12 + $0x4] sm:$0xf]  ;;  %v1481_v37 = vpop.f32.mrf.mxu1  ;;  %v7752_v16 = vld [vmem:[#allocation12 + $0x2b4] sm:$0xf0] }
 0x137   : > { %2519 = vmatpush.bf16.msrb.mxu1 %v6193_v38  ;;  %v6129_v38 = vor.u32 %v7701_v25, %v6126_v27  ;;  %v7784_v25 = vld [vmem:[#allocation12 + $0x3b4] sm:$0xf0] }
 0x138   : > { %2533 = vmatpush.bf16.msrb.mxu2 %v6321_v39  ;;  %v6257_v39 = vor.u32 %v7733_v28, %v6254_v29  ;;  %v7720_v27 = vld [vmem:[#allocation12 + $0x1b4] sm:$0xf0]  ;;  %v6052_v29 = vld [vmem:[#allocation12 + $0x88] sm:$0xf] }
 0x139   : > { %2547 = vmatpush.bf16.msrb.mxu3 %v6449_v43  ;;  %v6110_v43 = vld [vmem:[#allocation12 + $0x110] sm:$0xf0]  ;;  %v7684_v30 = vld [vmem:[#allocation12 + $0x94] sm:$0xf0] }
 0x13a   : > { %2506 = vmatpush.bf16.msrb.mxu0 %v6049_v49  ;;  %v1494_v44 = vpop.f32.mrf.mxu2  ;;  %v6366_v49 = vld [vmem:[#allocation12 + $0x310] sm:$0xf0]  ;;  %v6113_v55 = vor.u32 %v7697_v41, %v6110_v43  ;;  %v7748_v34 = vld [vmem:[#allocation12 + $0x294] sm:$0xf0]  ;;  %v6053_v37 = vor.u32 %v7684_v30, %v6052_v29  ;;  %v6132_v30 = vld [vmem:[#allocation12 + $0x128] sm:$0xf] }
 0x13b   : > { %2520 = vmatpush.bf16.msrb.mxu1 %v6177_v51  ;;  %v7696_v51 = vld [vmem:[#allocation12 + $0xf4] sm:$0xf0]  ;;  %v6369_v58 = vor.u32 %v7761_v48, %v6366_v49  ;;  %v6309_v43 = vor.u32 %v7748_v34, %v6308_v32  ;;  %v6292_v49 = vld [vmem:[#allocation12 + $0x268] sm:$0xf] }
 0x13c   : > { %2534 = vmatpush.bf16.msrb.mxu2 %v6305_v52  ;;  %v5985_v52 = vor.u32 %v7665_v36, %v5982_v40  ;;  %v6101_v59 = vor.u32 %v7696_v51, %v6100_v50  ;;  %v6180_v40 = vld [vmem:[#allocation12 + $0x188] sm:$0xf]  ;;  %v7716_v41 = vld [vmem:[#allocation12 + $0x194] sm:$0xf0] }
 0x13d   : > { %2548 = vmatpush.bf16.msrb.mxu3 %v6433_v56  ;;  %v6241_v56 = vor.u32 %v7729_v46, %v6238_v47  ;;  %v1507_v62 = vpop.f32.mrf.mxu3  ;;  %v6036_v47 = vld [vmem:[#allocation12 + $0x68] sm:$0xf]  ;;  %v7680_v48 = vld [vmem:[#allocation12 + $0x74] sm:$0xf0] }
 0x13e   : > { %2507 = vmatpush.bf16.msrb.mxu0 %v6033_v63  ;;  %v6357_v63 = vor.u32 %v7760_v54, %v6356_v53  ;;  %v7744_v50 = vld [vmem:[#allocation12 + $0x274] sm:$0xf0]  ;;  %v6037_v54 = vor.u32 %v7680_v48, %v6036_v47  ;;  %v5988_v34 = vld [vmem:[#allocation12 + $0x8] sm:$0xf] }
 0x13f   : > { %2521 = vmatpush.bf16.msrb.mxu1 %v6161_v1  ;;  %v7692_v1 = vld [vmem:[#allocation12 + $0xd4] sm:$0xf0] }
 0x140   : > { %2535 = vmatpush.bf16.msrb.mxu2 %v6289_v6  ;;  %v6340_v6 = vld [vmem:[#allocation12 + $0x2c8] sm:$0xf]  ;;  %v6085_v4 = vor.u32 %v7692_v1, %v6084_v5  ;;  %v7676_v62 = vld [vmem:[#allocation12 + $0x54] sm:$0xf0] }
 0x141   : > { %2549 = vmatpush.bf16.msrb.mxu3 %v6417_v8  ;;  %v6468_v8 = vld [vmem:[#allocation12 + $0x3c8] sm:$0xf]  ;;  %v6341_v11 = vor.u32 %v7756_v2, %v6340_v6  ;;  %v7740_v1 = vld [vmem:[#allocation12 + $0x254] sm:$0xf0] }
 0x142   : > { %2508 = vmatpush.bf16.msrb.mxu0 %v6017_v15  ;;  %v6324_v15 = vld [vmem:[#allocation12 + $0x2a8] sm:$0xf]  ;;  %v6469_v20 = vor.u32 %v7788_v12, %v6468_v8  ;;  %v7772_v12 = vld [vmem:[#allocation12 + $0x354] sm:$0xf0] }
 0x143   : > { %2522 = vmatpush.bf16.msrb.mxu1 %v6145_v17  ;;  %v6213_v17 = vor.u32 %v7724_v10, %v6212_v9  ;;  %v6325_v28 = vor.u32 %v7752_v16, %v6324_v15  ;;  %v6276_v5 = vld [vmem:[#allocation12 + $0x248] sm:$0xf]  ;;  %v7708_v9 = vld [vmem:[#allocation12 + $0x154] sm:$0xf0]  ;;  %v1665_v16 = vmul.f32 0.125, %v9012_v33 }
 0x144   : > { %2536 = vmatpush.bf16.msrb.mxu2 %v6273_v19  ;;  %v6452_v19 = vld [vmem:[#allocation12 + $0x3a8] sm:$0xf]  ;;  %v7768_v29 = vld [vmem:[#allocation12 + $0x334] sm:$0xf0] }
 0x145   : > { %2550 = vmatpush.bf16.msrb.mxu3 %v6401_v26  ;;  %v6196_v26 = vld [vmem:[#allocation12 + $0x1a8] sm:$0xf]  ;;  %v6453_v36 = vor.u32 %v7784_v25, %v6452_v19  ;;  %v7764_v48 = vld [vmem:[#allocation12 + $0x314] sm:$0xf0] }
 0x146   : > { %2509 = vmatpush.bf16.msrb.mxu0 %v6001_v35  ;;  %v6197_v35 = vor.u32 %v7720_v27, %v6196_v26  ;;  %v6148_v8 = vld [vmem:[#allocation12 + $0x148] sm:$0xf] }
 0x147   : > { %2523 = vmatpush.bf16.msrb.mxu1 %v6129_v38  ;;  %v6260_v19 = vld [vmem:[#allocation12 + $0x228] sm:$0xf] }
 0x148   : > { %2537 = vmatpush.bf16.msrb.mxu2 %v6257_v39  ;;  %v6436_v39 = vld [vmem:[#allocation12 + $0x388] sm:$0xf] }
 0x149   : > { %2551 = vmatpush.bf16.msrb.mxu3 %v6385_v45  ;;  %v7780_v45 = vld [vmem:[#allocation12 + $0x394] sm:$0xf0]  ;;  %v6388_v25 = vld [vmem:[#allocation12 + $0x328] sm:$0xf] }
 0x14a   : > { %2510 = vmatpush.bf16.msrb.mxu0 %v5985_v52  ;;  %v1518_v38 = vpop.f32.mrf.mxu0  ;;  %v6181_v52 = vor.u32 %v7716_v41, %v6180_v40  ;;  %v6437_v53 = vor.u32 %v7780_v45, %v6436_v39  ;;  %v6244_v33 = vld [vmem:[#allocation12 + $0x208] sm:$0xf]  ;;  %v6102_v39 = vld [vmem:[#allocation12 + $0xf8] sm:$0xf0] }
 0x14b   : > { %2524 = vmatpush.bf16.msrb.mxu1 %v6113_v55  ;;  %v1519_v44 = vadd.f32 %v1518_v38, %v810_v31  ;;  %v1531_v46 = vpop.f32.mrf.mxu1  ;;  %v6420_v55 = vld [vmem:[#allocation12 + $0x368] sm:$0xf]  ;;  %v7704_v31 = vld [vmem:[#allocation12 + $0x134] sm:$0xf0]  ;;  %v7694_v38 = vld [vmem:[#allocation12 + $0xec] sm:$0xf] }
 0x14c   : > { %2538 = vmatpush.bf16.msrb.mxu2 %v6241_v56  ;;  %v6164_v56 = vld [vmem:[#allocation12 + $0x168] sm:$0xf]  ;;  %v6421_v2 = vor.u32 %v7776_v57, %v6420_v55  ;;  %v6133_v41 = vor.u32 %v7704_v31, %v6132_v30  ;;  %v6230_v55 = vld [vmem:[#allocation12 + $0x1f8] sm:$0xf0] }
 0x14d   : > { %2552 = vmatpush.bf16.msrb.mxu3 %v6369_v58  ;;  %2511 = vmatmul.bf16.vlgmr.msrb.gmra.mxu0 %v8999_v21  ;;  %v1532_v51 = vadd.f32 %v1531_v46, %v1519_v44  ;;  %v7712_v58 = vld [vmem:[#allocation12 + $0x174] sm:$0xf0]  ;;  %v6358_v44 = vld [vmem:[#allocation12 + $0x2f8] sm:$0xf0]  ;;  %v6372_v45 = vld [vmem:[#allocation12 + $0x308] sm:$0xf]  ;;  %v6389_v46 = vor.u32 %v7768_v29, %v6388_v25 }
 0x14e   : > { %2559 = vmatpush.bf16.msra.mxu0 %v6101_v59  ;;  %2525 = vmatmul.bf16.vlgmr.msrb.gmra.mxu1 %v9003_v24  ;;  %v6293_v59 = vor.u32 %v7744_v50, %v6292_v49  ;;  %v6165_v6 = vor.u32 %v7712_v58, %v6164_v56  ;;  %v6116_v49 = vld [vmem:[#allocation12 + $0x108] sm:$0xf]  ;;  %v7700_v50 = vld [vmem:[#allocation12 + $0x114] sm:$0xf0]  ;;  %v6486_v58 = vld [vmem:[#allocation12 + $0x3f8] sm:$0xf0] }
 0x14f   : > { %2539 = vmatmul.bf16.vlgmr.msrb.gmra.mxu2 %v8997_v18  ;;  %2573 = vmatpush.bf16.msra.mxu1 %v6229_v7  ;;  %v6117_v57 = vor.u32 %v7700_v50, %v6116_v49  ;;  %v6054_v25 = vld [vmem:[#allocation12 + $0x98] sm:$0xf0]  ;;  %v811_v29 = vperm.slane %v9009_v42, 2  ;;  %v7774_v49 = vld [vmem:[#allocation12 + $0x36c] sm:$0xf] }
 0x150   : > { %2587 = vmatpush.bf16.msra.mxu2 %v6357_v63  ;;  %2553 = vmatmul.bf16.vlgmr.msrb.gmra.mxu3 %v9001_v22  ;;  %v7710_v50 = vld [vmem:[#allocation12 + $0x16c] sm:$0xf] }
 0x151   : > { %2601 = vmatpush.bf16.msra.mxu3 %v6485_v3  ;;  %v6021_v3 = vor.u32 %v7676_v62, %v6020_v61  ;;  %v7754_v61 = vld [vmem:[#allocation12 + $0x2cc] sm:$0xf]  ;;  %v6342_v62 = vld [vmem:[#allocation12 + $0x2d8] sm:$0xf0] }
 0x152   : > { %2560 = vmatpush.bf16.msra.mxu0 %v6085_v4  ;;  %v1544_v60 = vpop.f32.mrf.mxu2  ;;  %v6404_v4 = vld [vmem:[#allocation12 + $0x348] sm:$0xf]  ;;  %v1520_v10 = vpop.f32.mrf.mxu0 }
 0x153   : > { %2574 = vmatpush.bf16.msra.mxu1 %v6213_v17  ;;  %v1545_v63 = vadd.f32 %v1544_v60, %v1532_v51  ;;  %v1557_v0 = vpop.f32.mrf.mxu3  ;;  %v1533_v15 = vpop.f32.mrf.mxu1  ;;  %v6405_v27 = vor.u32 %v7772_v12, %v6404_v4  ;;  %v6086_v60 = vld [vmem:[#allocation12 + $0xd8] sm:$0xf0]  ;;  %v7750_v10 = vld [vmem:[#allocation12 + $0x2ac] sm:$0xf] }
 0x154   : > { %2588 = vmatpush.bf16.msra.mxu2 %v6341_v11  ;;  %v6277_v11 = vor.u32 %v7740_v1, %v6276_v5  ;;  %v6470_v4 = vld [vmem:[#allocation12 + $0x3d8] sm:$0xf0]  ;;  %v7782_v15 = vld [vmem:[#allocation12 + $0x3ac] sm:$0xf] }
 0x155   : > { %2602 = vmatpush.bf16.msra.mxu3 %v6469_v20  ;;  %v1558_v7 = vadd.f32 %v1557_v0, %v1545_v63  ;;  %v7736_v20 = vld [vmem:[#allocation12 + $0x234] sm:$0xf0]  ;;  %v6373_v63 = vor.u32 %v7764_v48, %v6372_v45 }
 0x156   : > { %2561 = vmatpush.bf16.msra.mxu0 %v6069_v23  ;;  %v6149_v23 = vor.u32 %v7708_v9, %v6148_v8  ;;  %v6261_v32 = vor.u32 %v7736_v20, %v6260_v19  ;;  %v7686_v8 = vld [vmem:[#allocation12 + $0xac] sm:$0xf]  ;;  %v6070_v9 = vld [vmem:[#allocation12 + $0xb8] sm:$0xf0] }
 0x157   : > { %2575 = vmatpush.bf16.msra.mxu1 %v6197_v35  ;;  %v1666_v17 = vmul.f32 0.125, %v1558_v7  ;;  %v7668_v35 = vld [vmem:[#allocation12 + $0x14] sm:$0xf0]  ;;  %v6214_v7 = vld [vmem:[#allocation12 + $0x1d8] sm:$0xf0] }
 0x158   : > { %2589 = vmatpush.bf16.msra.mxu2 %v6325_v28  ;;  %v6005_v28 = vor.u32 %v7672_v14, %v6004_v13  ;;  %v5989_v47 = vor.u32 %v7668_v35, %v5988_v34  ;;  %v6073_v14 = vor.u32 %v7686_v8, %v6070_v9  ;;  %v6454_v20 = vld [vmem:[#allocation12 + $0x3b8] sm:$0xf0]  ;;  %v7778_v34 = vld [vmem:[#allocation12 + $0x38c] sm:$0xf] }
 0x159   : > { %2603 = vmatpush.bf16.msra.mxu3 %v6453_v36  ;;  %v9020_v26 = vpack.c.bf16 %v1666_v17, %v1665_v16  ;;  %v7718_v16 = vld [vmem:[#allocation12 + $0x1ac] sm:$0xf]  ;;  %v6198_v17 = vld [vmem:[#allocation12 + $0x1b8] sm:$0xf0]  ;;  %v6457_v31 = vor.u32 %v7782_v15, %v6454_v20 }
 0x15a   : > { %2562 = vmatpush.bf16.msra.mxu0 %v6053_v37  ;;  %v1546_v36 = vpop.f32.mrf.mxu2  ;;  %v7732_v37 = vld [vmem:[#allocation12 + $0x214] sm:$0xf0]  ;;  %v6201_v30 = vor.u32 %v7718_v16, %v6198_v17  ;;  %v7714_v35 = vld [vmem:[#allocation12 + $0x18c] sm:$0xf]  ;;  %v6390_v17 = vld [vmem:[#allocation12 + $0x338] sm:$0xf0] }
 0x15b   : > { %2576 = vmatpush.bf16.msra.mxu1 %v6181_v52  ;;  %v1559_v40 = vpop.f32.mrf.mxu3  ;;  %v6245_v51 = vor.u32 %v7732_v37, %v6244_v33  ;;  %v6105_v52 = vor.u32 %v7694_v38, %v6102_v39  ;;  %v6182_v33 = vld [vmem:[#allocation12 + $0x198] sm:$0xf0]  ;;  %v7678_v38 = vld [vmem:[#allocation12 + $0x6c] sm:$0xf] }
 0x15c   : > { %2590 = vmatpush.bf16.msra.mxu2 %v6309_v43  ;;  %v7758_v43 = vld [vmem:[#allocation12 + $0x2ec] sm:$0xf]  ;;  %v6438_v37 = vld [vmem:[#allocation12 + $0x398] sm:$0xf0] }
 0x15d   : > { %2604 = vmatpush.bf16.msra.mxu3 %v6437_v53  ;;  %v7790_v53 = vld [vmem:[#allocation12 + $0x3ec] sm:$0xf]  ;;  %v6361_v56 = vor.u32 %v7758_v43, %v6358_v44  ;;  %v6038_v39 = vld [vmem:[#allocation12 + $0x78] sm:$0xf0] }
 0x15e   : > { %2563 = vmatpush.bf16.msra.mxu0 %v6037_v54  ;;  %v7726_v54 = vld [vmem:[#allocation12 + $0x1ec] sm:$0xf]  ;;  %v6489_v5 = vor.u32 %v7790_v53, %v6486_v58  ;;  %v6294_v43 = vld [vmem:[#allocation12 + $0x278] sm:$0xf0]  ;;  %v6041_v48 = vor.u32 %v7678_v38, %v6038_v39 }
 0x15f   : > { %2577 = vmatpush.bf16.msra.mxu1 %v6165_v6  ;;  %v6233_v0 = vor.u32 %v7726_v54, %v6230_v55  ;;  %v7786_v6 = vld [vmem:[#allocation12 + $0x3cc] sm:$0xf]  ;;  %v6422_v54 = vld [vmem:[#allocation12 + $0x378] sm:$0xf0] }
 0x160   : > { %2591 = vmatpush.bf16.msra.mxu2 %v6293_v59  ;;  %v7690_v59 = vld [vmem:[#allocation12 + $0xcc] sm:$0xf]  ;;  %v6473_v13 = vor.u32 %v7786_v6, %v6470_v4  ;;  %v6150_v6 = vld [vmem:[#allocation12 + $0x158] sm:$0xf0] }
 0x161   : > { %2605 = vmatpush.bf16.msra.mxu3 %v6421_v2  ;;  %v6089_v1 = vor.u32 %v7690_v59, %v6086_v60  ;;  %v7722_v2 = vld [vmem:[#allocation12 + $0x1cc] sm:$0xf]  ;;  %v6278_v59 = vld [vmem:[#allocation12 + $0x258] sm:$0xf0] }
 0x162   : > { %2564 = vmatpush.bf16.msra.mxu0 %v6021_v3  ;;  %v6345_v3 = vor.u32 %v7754_v61, %v6342_v62  ;;  %v6217_v12 = vor.u32 %v7722_v2, %v6214_v7  ;;  %v7674_v55 = vld [vmem:[#allocation12 + $0x4c] sm:$0xf]  ;;  %v6406_v7 = vld [vmem:[#allocation12 + $0x358] sm:$0xf0] }
 0x163   : > { %2578 = vmatpush.bf16.msra.mxu1 %v6149_v23  ;;  %v7682_v23 = vld [vmem:[#allocation12 + $0x8c] sm:$0xf]  ;;  %v6006_v4 = vld [vmem:[#allocation12 + $0x38] sm:$0xf0] }
 0x164   : > { %2592 = vmatpush.bf16.msra.mxu2 %v6277_v11  ;;  %v6326_v11 = vld [vmem:[#allocation12 + $0x2b8] sm:$0xf0]  ;;  %v7738_v58 = vld [vmem:[#allocation12 + $0x24c] sm:$0xf] }
 0x165   : > { %2606 = vmatpush.bf16.msra.mxu3 %v6405_v27  ;;  %v6329_v19 = vor.u32 %v7750_v10, %v6326_v11  ;;  %v7746_v27 = vld [vmem:[#allocation12 + $0x28c] sm:$0xf]  ;;  %v6281_v2 = vor.u32 %v7738_v58, %v6278_v59  ;;  %v6262_v11 = vld [vmem:[#allocation12 + $0x238] sm:$0xf0]  ;;  %v7807_v58 = vld [vmem:[#allocation14 + $0x6c] sm:$0xf0] }
 0x166   : > { %2565 = vmatpush.bf16.msra.mxu0 %v6005_v28  ;;  %v6310_v28 = vld [vmem:[#allocation12 + $0x298] sm:$0xf0]  ;;  %v7734_v10 = vld [vmem:[#allocation12 + $0x22c] sm:$0xf] }
 0x167   : > { %2579 = vmatpush.bf16.msra.mxu1 %v6133_v41  ;;  %v6313_v36 = vor.u32 %v7746_v27, %v6310_v28  ;;  %v7742_v41 = vld [vmem:[#allocation12 + $0x26c] sm:$0xf]  ;;  %v6134_v20 = vld [vmem:[#allocation12 + $0x138] sm:$0xf0] }
 0x168   : > { %2593 = vmatpush.bf16.msra.mxu2 %v6261_v32  ;;  %v6057_v32 = vor.u32 %v7682_v23, %v6054_v25  ;;  %v6297_v53 = vor.u32 %v7742_v41, %v6294_v43  ;;  %v6265_v23 = vor.u32 %v7734_v10, %v6262_v11  ;;  %v7666_v25 = vld [vmem:[#allocation12 + $0xc] sm:$0xf]  ;;  %v5990_v27 = vld [vmem:[#allocation12 + $0x18] sm:$0xf0] }
 0x169   : > { %2607 = vmatpush.bf16.msra.mxu3 %v6389_v46  ;;  %v6185_v46 = vor.u32 %v7714_v35, %v6182_v33  ;;  %v7730_v28 = vld [vmem:[#allocation12 + $0x20c] sm:$0xf]  ;;  %v6118_v38 = vld [vmem:[#allocation12 + $0x118] sm:$0xf0] }
 0x16a   : > { %2566 = vmatpush.bf16.msra.mxu0 %v5989_v47  ;;  %v1570_v40 = vpop.f32.mrf.mxu0  ;;  %v6441_v47 = vor.u32 %v7778_v34, %v6438_v37  ;;  %v7698_v37 = vld [vmem:[#allocation12 + $0x10c] sm:$0xf]  ;;  %v6374_v43 = vld [vmem:[#allocation12 + $0x318] sm:$0xf0] }
 0x16b   : > { %2580 = vmatpush.bf16.msra.mxu1 %v6117_v57  ;;  %v1571_v44 = vadd.f32 %v1570_v40, %v811_v29  ;;  %v1583_v45 = vpop.f32.mrf.mxu1  ;;  %v6246_v29 = vld [vmem:[#allocation12 + $0x218] sm:$0xf0]  ;;  %v7762_v41 = vld [vmem:[#allocation12 + $0x30c] sm:$0xf] }
 0x16c   : > { %2594 = vmatpush.bf16.msra.mxu2 %v6245_v51  ;;  %v6166_v51 = vld [vmem:[#allocation12 + $0x178] sm:$0xf0]  ;;  %v6249_v39 = vor.u32 %v7730_v28, %v6246_v29  ;;  %v6590_v28 = vld [vmem:[#allocation14 + $0xd0] sm:$0xf0]  ;;  %v6860_v29 = vld [vmem:[#allocation14 + $0x2e0] sm:$0xf] }
 0x16d   : > { %2567 = vmatmul.bf16.vlgmr.msra.gmra.mxu0 %v8999_v21  ;;  %2608 = vmatpush.bf16.msra.mxu3 %v6373_v63  ;;  %v6169_v57 = vor.u32 %v7710_v50, %v6166_v51  ;;  %v6425_v63 = vor.u32 %v7774_v49, %v6422_v54  ;;  %v6572_v49 = vld [vmem:[#allocation14 + $0xa0] sm:$0xf]  ;;  %v7815_v50 = vld [vmem:[#allocation14 + $0xac] sm:$0xf0]  ;;  %v812_v54 = vperm.slane %v9009_v42, 3 }
 0x16e   : > { %2615 = vmatpush.bf16.msrb.mxu0 %v6105_v52  ;;  %2581 = vmatmul.bf16.vlgmr.msra.gmra.mxu1 %v9003_v24  ;;  %v1584_v52 = vadd.f32 %v1583_v45, %v1571_v44  ;;  %v6588_v44 = vld [vmem:[#allocation14 + $0xc0] sm:$0xf]  ;;  %v7819_v45 = vld [vmem:[#allocation14 + $0xcc] sm:$0xf0]  ;;  %v6573_v51 = vor.u32 %v7815_v50, %v6572_v49  ;;  %v6558_v49 = vld [vmem:[#allocation14 + $0x90] sm:$0xf0] }
 0x16f   : > { %2629 = vmatpush.bf16.msrb.mxu1 %v6233_v0  ;;  %2595 = vmatmul.bf16.vlgmr.msra.gmra.mxu2 %v8997_v18  ;;  %v6716_v50 = vld [vmem:[#allocation14 + $0x1c0] sm:$0xf] }
 0x170   : > { %2643 = vmatpush.bf16.msrb.mxu2 %v6361_v56  ;;  %2609 = vmatmul.bf16.vlgmr.msra.gmra.mxu3 %v9001_v22  ;;  %v6022_v56 = vld [vmem:[#allocation12 + $0x58] sm:$0xf0] }
 0x171   : > { %2657 = vmatpush.bf16.msrb.mxu3 %v6489_v5  ;;  %v6025_v0 = vor.u32 %v7674_v55, %v6022_v56  ;;  %v7770_v5 = vld [vmem:[#allocation12 + $0x34c] sm:$0xf]  ;;  %v6540_v56 = vld [vmem:[#allocation14 + $0x60] sm:$0xf] }
 0x172   : > { %2616 = vmatpush.bf16.msrb.mxu0 %v6089_v1  ;;  %v1596_v60 = vpop.f32.mrf.mxu2  ;;  %v7706_v1 = vld [vmem:[#allocation12 + $0x14c] sm:$0xf]  ;;  %v1572_v9 = vpop.f32.mrf.mxu0  ;;  %v6409_v15 = vor.u32 %v7770_v5, %v6406_v7  ;;  %v6508_v7 = vld [vmem:[#allocation14 + $0x20] sm:$0xf] }
 0x173   : > { %2630 = vmatpush.bf16.msrb.mxu1 %v6217_v12  ;;  %v1597_v61 = vadd.f32 %v1596_v60, %v1584_v52  ;;  %v1609_v62 = vpop.f32.mrf.mxu3  ;;  %v1585_v12 = vpop.f32.mrf.mxu1  ;;  %v6556_v52 = vld [vmem:[#allocation14 + $0x80] sm:$0xf] }
 0x174   : > { %2644 = vmatpush.bf16.msrb.mxu2 %v6345_v3  ;;  %v7670_v3 = vld [vmem:[#allocation12 + $0x2c] sm:$0xf] }
 0x175   : > { %2658 = vmatpush.bf16.msrb.mxu3 %v6473_v13  ;;  %v9027_v8 = vadd.f32 %v1609_v62, %v1597_v61  ;;  %v6153_v13 = vor.u32 %v7706_v1, %v6150_v6  ;;  %v6009_v16 = vor.u32 %v7670_v3, %v6006_v4  ;;  %v6541_v61 = vor.u32 %v7807_v58, %v6540_v56  ;;  %v7799_v3 = vld [vmem:[#allocation14 + $0x2c] sm:$0xf0]  ;;  %v6956_v56 = vld [vmem:[#allocation14 + $0x3a0] sm:$0xf] }
 0x176   : > { %2617 = vmatpush.bf16.msrb.mxu0 %v6073_v14  ;;  %v7766_v14 = vld [vmem:[#allocation12 + $0x32c] sm:$0xf]  ;;  %v6509_v12 = vor.u32 %v7799_v3, %v6508_v7  ;;  %v7911_v58 = vld [vmem:[#allocation14 + $0x3ac] sm:$0xf0] }
 0x177   : > { %2631 = vmatpush.bf16.msrb.mxu1 %v6201_v30  ;;  %v6604_v30 = vld [vmem:[#allocation14 + $0xe0] sm:$0xf]  ;;  %v6393_v33 = vor.u32 %v7766_v14, %v6390_v17  ;;  %v1667_v10 = vmul.f32 0.125, %v9027_v8  ;;  %v7795_v14 = vld [vmem:[#allocation14 + $0xc] sm:$0xf0] }
 0x178   : > { %2645 = vmatpush.bf16.msrb.mxu2 %v6329_v19  ;;  %v7702_v19 = vld [vmem:[#allocation12 + $0x12c] sm:$0xf]  ;;  %v6606_v17 = vld [vmem:[#allocation14 + $0xf0] sm:$0xf0] }
 0x179   : > { %2659 = vmatpush.bf16.msrb.mxu3 %v6457_v31  ;;  %v7823_v31 = vld [vmem:[#allocation14 + $0xec] sm:$0xf0]  ;;  %v6137_v34 = vor.u32 %v7702_v19, %v6134_v20 }
 0x17a   : > { %2618 = vmatpush.bf16.msrb.mxu0 %v6057_v32  ;;  %v1598_v32 = vpop.f32.mrf.mxu2  ;;  %v6605_v40 = vor.u32 %v7823_v31, %v6604_v30  ;;  %v7887_v30 = vld [vmem:[#allocation14 + $0x2ec] sm:$0xf0]  ;;  %v6988_v31 = vld [vmem:[#allocation14 + $0x3e0] sm:$0xf] }
 0x17b   : > { %2632 = vmatpush.bf16.msrb.mxu1 %v6185_v46  ;;  %v1611_v35 = vpop.f32.mrf.mxu3  ;;  %v6121_v46 = vor.u32 %v7698_v37, %v6118_v38  ;;  %v6861_v8 = vor.u32 %v7887_v30, %v6860_v29  ;;  %v7919_v32 = vld [vmem:[#allocation14 + $0x3ec] sm:$0xf0]  ;;  %v6732_v37 = vld [vmem:[#allocation14 + $0x1e0] sm:$0xf] }
 0x17c   : > { %2646 = vmatpush.bf16.msrb.mxu2 %v6313_v36  ;;  %v5993_v36 = vor.u32 %v7666_v25, %v5990_v27  ;;  %v7817_v27 = vld [vmem:[#allocation14 + $0xc4] sm:$0xf]  ;;  %v7855_v38 = vld [vmem:[#allocation14 + $0x1ec] sm:$0xf0]  ;;  %v6780_v30 = vld [vmem:[#allocation14 + $0x240] sm:$0xf] }
 0x17d   : > { %2660 = vmatpush.bf16.msrb.mxu3 %v6441_v47  ;;  %v6377_v47 = vor.u32 %v7762_v41, %v6374_v43  ;;  %v6593_v35 = vor.u32 %v7817_v27, %v6590_v28  ;;  %v7883_v41 = vld [vmem:[#allocation14 + $0x2cc] sm:$0xf0]  ;;  %v6972_v43 = vld [vmem:[#allocation14 + $0x3c0] sm:$0xf] }
 0x17e   : > { %2619 = vmatpush.bf16.msrb.mxu0 %v6041_v48  ;;  %v6589_v48 = vor.u32 %v7819_v45, %v6588_v44  ;;  %v7915_v44 = vld [vmem:[#allocation14 + $0x3cc] sm:$0xf0]  ;;  %v6668_v28 = vld [vmem:[#allocation14 + $0x160] sm:$0xf] }
 0x17f   : > { %2633 = vmatpush.bf16.msrb.mxu1 %v6169_v57  ;;  %v7839_v29 = vld [vmem:[#allocation14 + $0x16c] sm:$0xf0] }
 0x180   : > { %2647 = vmatpush.bf16.msrb.mxu2 %v6297_v53  ;;  %v7811_v53 = vld [vmem:[#allocation14 + $0x8c] sm:$0xf0] }
 0x181   : > { %2661 = vmatpush.bf16.msrb.mxu3 %v6425_v63  ;;  %v6557_v55 = vor.u32 %v7811_v53, %v6556_v52  ;;  %v6524_v63 = vld [vmem:[#allocation14 + $0x40] sm:$0xf] }
 0x182   : > { %2620 = vmatpush.bf16.msrb.mxu0 %v6025_v0  ;;  %v7803_v0 = vld [vmem:[#allocation14 + $0x4c] sm:$0xf0]  ;;  %v6828_v52 = vld [vmem:[#allocation14 + $0x2a0] sm:$0xf] }
 0x183   : > { %2634 = vmatpush.bf16.msrb.mxu1 %v6153_v13  ;;  %v6492_v13 = vld [vmem:[#allocation14] sm:$0xf] }
 0x184   : > { %2648 = vmatpush.bf16.msrb.mxu2 %v6281_v2  ;;  %v6525_v2 = vor.u32 %v7803_v0, %v6524_v63  ;;  %v6493_v20 = vor.u32 %v7795_v14, %v6492_v13  ;;  %v7847_v63 = vld [vmem:[#allocation14 + $0x1ac] sm:$0xf0]  ;;  %v6812_v0 = vld [vmem:[#allocation14 + $0x280] sm:$0xf] }
 0x185   : > { %2662 = vmatpush.bf16.msrb.mxu3 %v6409_v15  ;;  %v7871_v14 = vld [vmem:[#allocation14 + $0x26c] sm:$0xf0] }
 0x186   : > { %2621 = vmatpush.bf16.msrb.mxu0 %v6009_v16  ;;  %v7821_v16 = vld [vmem:[#allocation14 + $0xe4] sm:$0xf] }
 0x187   : > { %2635 = vmatpush.bf16.msrb.mxu1 %v6137_v34  ;;  %v6609_v25 = vor.u32 %v7821_v16, %v6606_v17  ;;  %v6989_v34 = vor.u32 %v7919_v32, %v6988_v31  ;;  %v6924_v17 = vld [vmem:[#allocation14 + $0x360] sm:$0xf]  ;;  %v6669_v31 = vor.u32 %v7839_v29, %v6668_v28  ;;  %v7913_v28 = vld [vmem:[#allocation14 + $0x3c4] sm:$0xf] }
 0x188   : > { %2649 = vmatpush.bf16.msrb.mxu2 %v6265_v23 }
 0x189   : > { %2663 = vmatpush.bf16.msrb.mxu3 %v6393_v33  ;;  %v7813_v33 = vld [vmem:[#allocation14 + $0xa4] sm:$0xf] }
 0x18a   : > { %2622 = vmatpush.bf16.msrb.mxu0 %v5993_v36  ;;  %v1622_v59 = vpop.f32.mrf.mxu0  ;;  %v6574_v36 = vld [vmem:[#allocation14 + $0xb0] sm:$0xf0] }
 0x18b   : > { %2636 = vmatpush.bf16.msrb.mxu1 %v6121_v46  ;;  %v1623_v60 = vadd.f32 %v1622_v59, %v812_v54  ;;  %v1635_v57 = vpop.f32.mrf.mxu1  ;;  %v6973_v46 = vor.u32 %v7915_v44, %v6972_v43  ;;  %v7879_v54 = vld [vmem:[#allocation14 + $0x2ac] sm:$0xf0]  ;;  %v6764_v43 = vld [vmem:[#allocation14 + $0x220] sm:$0xf]  ;;  %v6612_v44 = vld [vmem:[#allocation14 + $0xe8] sm:$0xf] }
 0x18c   : > { %2650 = vmatpush.bf16.msrb.mxu2 %v6249_v39  ;;  %v6844_v39 = vld [vmem:[#allocation14 + $0x2c0] sm:$0xf] }
 0x18d   : > { %2623 = vmatmul.bf16.vlgmr.msrb.gmra.mxu0 %v8999_v21  ;;  %2664 = vmatpush.bf16.msrb.mxu3 %v6377_v47  ;;  %v1636_v62 = vadd.f32 %v1635_v57, %v1623_v60  ;;  %v6845_v45 = vor.u32 %v7883_v41, %v6844_v39  ;;  %v6577_v47 = vor.u32 %v7813_v33, %v6574_v36  ;;  %v7805_v60 = vld [vmem:[#allocation14 + $0x64] sm:$0xf]  ;;  %v6542_v57 = vld [vmem:[#allocation14 + $0x70] sm:$0xf0]  ;;  %v7835_v41 = vld [vmem:[#allocation14 + $0x14c] sm:$0xf0] }
 0x18e   : > { %3449 = vmatpush.bf16.msra.mxu0 %v6605_v40  ;;  %2637 = vmatmul.bf16.vlgmr.msrb.gmra.mxu1 %v9003_v24  ;;  %v6733_v40 = vor.u32 %v7855_v38, %v6732_v37  ;;  %v7793_v36 = vld [vmem:[#allocation14 + $0x4] sm:$0xf]  ;;  %v6494_v37 = vld [vmem:[#allocation14 + $0x10] sm:$0xf0] }
 0x18f   : > { %2651 = vmatmul.bf16.vlgmr.msrb.gmra.mxu2 %v8997_v18 }
 0x190   : > { %2665 = vmatmul.bf16.vlgmr.msrb.gmra.mxu3 %v9001_v22  ;;  %3477 = vmatpush.bf16.msra.mxu2 %v6861_v8  ;;  %v7867_v8 = vld [vmem:[#allocation14 + $0x24c] sm:$0xf0] }
 0x191   : > { %3491 = vmatpush.bf16.msra.mxu3 %v6989_v34  ;;  %3463 = vmatpush.bf16.msra.mxu1 %v6733_v40  ;;  %v6781_v32 = vor.u32 %v7867_v8, %v6780_v30  ;;  %v6908_v34 = vld [vmem:[#allocation14 + $0x340] sm:$0xf]  ;;  %v6974_v30 = vld [vmem:[#allocation14 + $0x3d0] sm:$0xf0] }
 0x192   : > { %3450 = vmatpush.bf16.msra.mxu0 %v6589_v48  ;;  %v1648_v5 = vpop.f32.mrf.mxu2  ;;  %v1624_v4 = vpop.f32.mrf.mxu0  ;;  %v7809_v48 = vld [vmem:[#allocation14 + $0x84] sm:$0xf]  ;;  %v6652_v40 = vld [vmem:[#allocation14 + $0x140] sm:$0xf] }
 0x193   : > { %v1649_v1 = vadd.f32 %v1648_v5, %v1636_v62  ;;  %v1661_v6 = vpop.f32.mrf.mxu3  ;;  %v1637_v9 = vpop.f32.mrf.mxu1  ;;  %v6561_v59 = vor.u32 %v7809_v48, %v6558_v49  ;;  %v6700_v62 = vld [vmem:[#allocation14 + $0x1a0] sm:$0xf]  ;;  %v7801_v4 = vld [vmem:[#allocation14 + $0x44] sm:$0xf] }
 0x194   : > { %3478 = vmatpush.bf16.msra.mxu2 %v6845_v45  ;;  %v6701_v5 = vor.u32 %v7847_v63, %v6700_v62  ;;  %v6526_v9 = vld [vmem:[#allocation14 + $0x50] sm:$0xf0]  ;;  %v7824_v45 = vld [vmem:[#allocation14 + $0xf4] sm:$0xf0]  ;;  %v6892_v49 = vld [vmem:[#allocation14 + $0x320] sm:$0xf] }
 0x195   : > { %v1662_v42 = vadd.f32 %v1661_v6, %v1649_v1  ;;  %3492 = vmatpush.bf16.msra.mxu3 %v6973_v46  ;;  %v7875_v1 = vld [vmem:[#allocation14 + $0x28c] sm:$0xf0]  ;;  %v6940_v6 = vld [vmem:[#allocation14 + $0x380] sm:$0xf]  ;;  %v6653_v46 = vor.u32 %v7835_v41, %v6652_v40  ;;  %v7885_v63 = vld [vmem:[#allocation14 + $0x2e4] sm:$0xf] }
 0x196   : > { %3451 = vmatpush.bf16.msra.mxu0 %v6573_v51  ;;  %v7851_v51 = vld [vmem:[#allocation14 + $0x1cc] sm:$0xf0]  ;;  %v6813_v7 = vor.u32 %v7875_v1, %v6812_v0  ;;  %v6862_v0 = vld [vmem:[#allocation14 + $0x2f0] sm:$0xf0] }
 0x197   : > { %v1668_v11 = vmul.f32 0.125, %v1662_v42  ;;  %v6717_v53 = vor.u32 %v7851_v51, %v6716_v50  ;;  %v6545_v42 = vor.u32 %v7805_v60, %v6542_v57  ;;  %v7895_v50 = vld [vmem:[#allocation14 + $0x32c] sm:$0xf0]  ;;  %v7820_v60 = vld [vmem:[#allocation14 + $0xd4] sm:$0xf0] }
 0x198   : > { %v6830_v41 = vld [vmem:[#allocation14 + $0x2b0] sm:$0xf0] }
 0x199   : > { %v9035_v15 = vpack.c.bf16 %v1668_v11, %v1667_v10  ;;  %3464 = vmatpush.bf16.msra.mxu1 %v6717_v53  ;;  %v6684_v10 = vld [vmem:[#allocation14 + $0x180] sm:$0xf]  ;;  %v7843_v11 = vld [vmem:[#allocation14 + $0x18c] sm:$0xf0]  ;;  %v6893_v53 = vor.u32 %v7895_v50, %v6892_v49  ;;  %v6548_v50 = vld [vmem:[#allocation14 + $0x68] sm:$0xf] }
 0x19a   : > { %3452 = vmatpush.bf16.msra.mxu0 %v6557_v55  ;;  %v1650_v19 = vpop.f32.mrf.mxu2  ;;  %v6829_v55 = vor.u32 %v7879_v54, %v6828_v52  ;;  %v6685_v13 = vor.u32 %v7843_v11, %v6684_v10  ;;  %v6497_v52 = vor.u32 %v7793_v36, %v6494_v37  ;;  %v6613_v54 = vor.u32 %v7824_v45, %v6612_v44  ;;  %v7849_v36 = vld [vmem:[#allocation14 + $0x1c4] sm:$0xf]  ;;  %v6718_v37 = vld [vmem:[#allocation14 + $0x1d0] sm:$0xf0] }
 0x19b   : > { %v1663_v23 = vpop.f32.mrf.mxu3  ;;  %v7903_v19 = vld [vmem:[#allocation14 + $0x36c] sm:$0xf0]  ;;  %v6721_v40 = vor.u32 %v7849_v36, %v6718_v37  ;;  %v6958_v44 = vld [vmem:[#allocation14 + $0x3b0] sm:$0xf0] }
 0x19c   : > { %3479 = vmatpush.bf16.msra.mxu2 %v6829_v55  ;;  %v7797_v23 = vld [vmem:[#allocation14 + $0x24] sm:$0xf]  ;;  %v6925_v27 = vor.u32 %v7903_v19, %v6924_v17  ;;  %v6636_v55 = vld [vmem:[#allocation14 + $0x120] sm:$0xf]  ;;  %v6734_v19 = vld [vmem:[#allocation14 + $0x1f0] sm:$0xf0] }
 0x19d   : > { %3465 = vmatpush.bf16.msra.mxu1 %v6701_v5  ;;  %v6876_v5 = vld [vmem:[#allocation14 + $0x300] sm:$0xf]  ;;  %v7853_v17 = vld [vmem:[#allocation14 + $0x1e4] sm:$0xf] }
 0x19e   : > { %3453 = vmatpush.bf16.msra.mxu0 %v6541_v61  ;;  %v6957_v61 = vor.u32 %v7911_v58, %v6956_v56  ;;  %v7831_v56 = vld [vmem:[#allocation14 + $0x12c] sm:$0xf0]  ;;  %v6748_v58 = vld [vmem:[#allocation14 + $0x200] sm:$0xf] }
 0x19f   : > { %v6637_v57 = vor.u32 %v7831_v56, %v6636_v55  ;;  %v6702_v55 = vld [vmem:[#allocation14 + $0x1b0] sm:$0xf0]  ;;  %v7873_v56 = vld [vmem:[#allocation14 + $0x284] sm:$0xf] }
 0x1a0   : > { %3493 = vmatpush.bf16.msra.mxu3 %v6957_v61  ;;  %3480 = vmatpush.bf16.msra.mxu2 %v6813_v7  ;;  %v7859_v61 = vld [vmem:[#allocation14 + $0x20c] sm:$0xf0]  ;;  %v7917_v7 = vld [vmem:[#allocation14 + $0x3e4] sm:$0xf] }
 0x1a1   : > { %3466 = vmatpush.bf16.msra.mxu1 %v6685_v13  ;;  %v6749_v62 = vor.u32 %v7859_v61, %v6748_v58  ;;  %v7827_v13 = vld [vmem:[#allocation14 + $0x10c] sm:$0xf0]  ;;  %v7905_v61 = vld [vmem:[#allocation14 + $0x384] sm:$0xf] }
 0x1a2   : > { %3454 = vmatpush.bf16.msra.mxu0 %v6525_v2  ;;  %v7907_v2 = vld [vmem:[#allocation14 + $0x38c] sm:$0xf0] }
 0x1a3   : > { %v6941_v3 = vor.u32 %v7907_v2, %v6940_v6  ;;  %v6865_v6 = vor.u32 %v7885_v63, %v6862_v0  ;;  %v7891_v2 = vld [vmem:[#allocation14 + $0x30c] sm:$0xf0] }
 0x1a4   : > { %v6877_v10 = vor.u32 %v7891_v2, %v6876_v5  ;;  %v6532_v2 = vld [vmem:[#allocation14 + $0x48] sm:$0xf] }
 0x1a5   : > { %3494 = vmatpush.bf16.msra.mxu3 %v6941_v3  ;;  %3467 = vmatpush.bf16.msra.mxu1 %v6669_v31  ;;  %v6990_v3 = vld [vmem:[#allocation14 + $0x3f0] sm:$0xf0]  ;;  %v9052_v31 = vld [vmem:[%s9290_s6] sm:$0xf] }
 0x1a6   : > { %3455 = vmatpush.bf16.msra.mxu0 %v6509_v12  ;;  %v6796_v12 = vld [vmem:[#allocation14 + $0x260] sm:$0xf]  ;;  %v6993_v11 = vor.u32 %v7917_v7, %v6990_v3  ;;  %v7804_v7 = vld [vmem:[#allocation14 + $0x54] sm:$0xf0] }
 0x1a7   : > { %v6797_v16 = vor.u32 %v7871_v14, %v6796_v12  ;;  %v6620_v12 = vld [vmem:[#allocation14 + $0x100] sm:$0xf]  ;;  %v7816_v14 = vld [vmem:[#allocation14 + $0xb4] sm:$0xf0] }
 0x1a9   : > { %3481 = vmatpush.bf16.msra.mxu2 %v6797_v16  ;;  %3495 = vmatpush.bf16.msra.mxu3 %v6925_v27  ;;  %v6621_v16 = vor.u32 %v7827_v13, %v6620_v12  ;;  %v6846_v27 = vld [vmem:[#allocation14 + $0x2d0] sm:$0xf0] }
 0x1aa   : > { %3456 = vmatpush.bf16.msra.mxu0 %v6493_v20  ;;  %v6529_v20 = vor.u32 %v7801_v4, %v6526_v9  ;;  %v9038_v39 = vpop.f32.mrf.mxu0  ;;  %3468 = vmatpush.bf16.msra.mxu1 %v6653_v46  ;;  %v6580_v9 = vld [vmem:[#allocation14 + $0xa8] sm:$0xf]  ;;  %v6798_v13 = vld [vmem:[#allocation14 + $0x270] sm:$0xf0] }
 0x1ab   : > { %v9040_v51 = vpop.f32.mrf.mxu1  ;;  %v6581_v8 = vor.u32 %v7816_v14, %v6580_v9  ;;  %v6686_v9 = vld [vmem:[#allocation14 + $0x190] sm:$0xf0]  ;;  %v7901_v14 = vld [vmem:[#allocation14 + $0x364] sm:$0xf] }
 0x1ad   : > { %3457 = vmatmul.bf16.vlgmr.msra.gmra.mxu0 %v8999_v21  ;;  %3482 = vmatpush.bf16.msra.mxu2 %v6781_v32  ;;  %v6564_v32 = vld [vmem:[#allocation14 + $0x88] sm:$0xf] }
 0x1ae   : > { %3505 = vmatpush.bf16.msrb.mxu0 %v6609_v25  ;;  %v6510_v25 = vld [vmem:[#allocation14 + $0x30] sm:$0xf0]  ;;  %3469 = vmatpush.bf16.msra.mxu1 %v6637_v57 }
 0x1af   : > { %v6513_v33 = vor.u32 %v7797_v23, %v6510_v25  ;;  %v6737_v23 = vor.u32 %v7853_v17, %v6734_v19  ;;  %v7881_v25 = vld [vmem:[#allocation14 + $0x2c4] sm:$0xf]  ;;  %v6814_v57 = vld [vmem:[#allocation14 + $0x290] sm:$0xf0] }
 0x1b0   : > { %v6849_v29 = vor.u32 %v7881_v25, %v6846_v27  ;;  %v6817_v63 = vor.u32 %v7873_v56, %v6814_v57  ;;  %v6533_v27 = vor.u32 %v7804_v7, %v6532_v2  ;;  %v7893_v57 = vld [vmem:[#allocation14 + $0x324] sm:$0xf]  ;;  %v7818_v2 = vld [vmem:[#allocation14 + $0xcc] sm:$0xf]  ;;  %v6598_v7 = vld [vmem:[#allocation14 + $0xd8] sm:$0xf0] }
 0x1b2   : > { %3506 = vmatpush.bf16.msrb.mxu0 %v6593_v35  ;;  %v7899_v35 = vld [vmem:[#allocation14 + $0x34c] sm:$0xf0]  ;;  %v9042_v1 = vpop.f32.mrf.mxu2  ;;  %3470 = vmatpush.bf16.msra.mxu1 %v6621_v16  ;;  %v6926_v16 = vld [vmem:[#allocation14 + $0x370] sm:$0xf0] }
 0x1b3   : > { %v6909_v38 = vor.u32 %v7899_v35, %v6908_v34  ;;  %v7812_v34 = vld [vmem:[#allocation14 + $0x94] sm:$0xf0]  ;;  %v6977_v35 = vor.u32 %v7913_v28, %v6974_v30  ;;  %v6516_v28 = vld [vmem:[#allocation14 + $0x28] sm:$0xf] }
 0x1b4   : > { %v6565_v49 = vor.u32 %v7812_v34, %v6564_v32  ;;  %v6670_v32 = vld [vmem:[#allocation14 + $0x170] sm:$0xf0] }
 0x1b5   : > { %3496 = vmatpush.bf16.msra.mxu3 %v6909_v38  ;;  %v7877_v38 = vld [vmem:[#allocation14 + $0x2a4] sm:$0xf]  ;;  %3471 = vmatmul.bf16.vlgmr.msra.gmra.mxu1 %v9003_v24 }
 0x1b6   : > { %3507 = vmatpush.bf16.msrb.mxu0 %v6577_v47  ;;  %v7863_v47 = vld [vmem:[#allocation14 + $0x22c] sm:$0xf0]  ;;  %3519 = vmatpush.bf16.msrb.mxu1 %v6737_v23  ;;  %v6833_v45 = vor.u32 %v7877_v38, %v6830_v41  ;;  %v6929_v23 = vor.u32 %v7901_v14, %v6926_v16  ;;  %v7897_v38 = vld [vmem:[#allocation14 + $0x344] sm:$0xf]  ;;  %v6750_v14 = vld [vmem:[#allocation14 + $0x210] sm:$0xf0] }
 0x1b7   : > { %v6765_v48 = vor.u32 %v7863_v47, %v6764_v43  ;;  %v7909_v43 = vld [vmem:[#allocation14 + $0x3a4] sm:$0xf]  ;;  %v1799_v47 = vperm.slane %v9052_v31, 0  ;;  %v6868_v16 = vld [vmem:[#allocation14 + $0x2e8] sm:$0xf] }
 0x1b8   : > { %v6961_v46 = vor.u32 %v7909_v43, %v6958_v44 }
 0x1b9   : > { %3483 = vmatpush.bf16.msra.mxu2 %v6765_v48  ;;  %3497 = vmatpush.bf16.msra.mxu3 %v6893_v53  ;;  %v1800_v48 = vperm.slane %v9052_v31, 1 }
 0x1ba   : > { %3508 = vmatpush.bf16.msrb.mxu0 %v6561_v59  ;;  %v6596_v59 = vld [vmem:[#allocation14 + $0xc8] sm:$0xf]  ;;  %3520 = vmatpush.bf16.msrb.mxu1 %v6721_v40  ;;  %v9061_v53 = vpop.f32.mrf.mxu2  ;;  %v6910_v40 = vld [vmem:[#allocation14 + $0x350] sm:$0xf0] }
 0x1bb   : > { %v6597_v4 = vor.u32 %v7820_v60, %v6596_v59  ;;  %v6913_v44 = vor.u32 %v7897_v38, %v6910_v40  ;;  %v6740_v38 = vld [vmem:[#allocation14 + $0x1e8] sm:$0xf] }
 0x1bd   : > { %3484 = vmatpush.bf16.msra.mxu2 %v6749_v62  ;;  %3498 = vmatpush.bf16.msra.mxu3 %v6877_v10  ;;  %v6942_v62 = vld [vmem:[#allocation14 + $0x390] sm:$0xf0]  ;;  %v7869_v10 = vld [vmem:[#allocation14 + $0x264] sm:$0xf] }
 0x1be   : > { %3509 = vmatpush.bf16.msrb.mxu0 %v6545_v42  ;;  %v9044_v42 = vpop.f32.mrf.mxu3  ;;  %v6945_v0 = vor.u32 %v7905_v61, %v6942_v62  ;;  %v6801_v19 = vor.u32 %v7869_v10, %v6798_v13  ;;  %v6638_v10 = vld [vmem:[#allocation14 + $0x130] sm:$0xf0] }
 0x1c0   : > { %3499 = vmatmul.bf16.vlgmr.msra.gmra.mxu3 %v9001_v22  ;;  %3485 = vmatmul.bf16.vlgmr.msra.gmra.mxu2 %v8997_v18 }
 0x1c1   : > { %3533 = vmatpush.bf16.msrb.mxu2 %v6865_v6  ;;  %3547 = vmatpush.bf16.msrb.mxu3 %v6993_v11  ;;  %v2457_v11 = vadd.f32 %v9038_v39, %v1799_v47  ;;  %v7865_v39 = vld [vmem:[#allocation14 + $0x244] sm:$0xf] }
 0x1c2   : > { %3510 = vmatpush.bf16.msrb.mxu0 %v6529_v20  ;;  %v9046_v20 = vpop.f32.mrf.mxu0 }
 0x1c3   : > { %v2459_v17 = vadd.f32 %v9046_v20, %v1799_v47  ;;  %v2471_v34 = vadd.f32 %v9040_v51, %v2457_v11  ;;  %v6782_v20 = vld [vmem:[#allocation14 + $0x250] sm:$0xf0]  ;;  %v7833_v51 = vld [vmem:[#allocation14 + $0x144] sm:$0xf] }
 0x1c4   : > { %v6785_v43 = vor.u32 %v7865_v39, %v6782_v20  ;;  %v7857_v11 = vld [vmem:[#allocation14 + $0x204] sm:$0xf]  ;;  %v6582_v39 = vld [vmem:[#allocation14 + $0xb8] sm:$0xf0]  ;;  %v6622_v20 = vld [vmem:[#allocation14 + $0x110] sm:$0xf0] }
 0x1c5   : > { %3534 = vmatpush.bf16.msrb.mxu2 %v6849_v29  ;;  %3548 = vmatpush.bf16.msrb.mxu3 %v6977_v35  ;;  %v7800_v29 = vld [vmem:[#allocation14 + $0x34] sm:$0xf0]  ;;  %v2485_v56 = vadd.f32 %v9042_v1, %v2471_v34  ;;  %v6996_v34 = vld [vmem:[#allocation14 + $0x3e8] sm:$0xf] }
 0x1c6   : > { %3511 = vmatpush.bf16.msrb.mxu0 %v6513_v33  ;;  %v9054_v33 = vpop.f32.mrf.mxu1  ;;  %v9063_v58 = vpop.f32.mrf.mxu3  ;;  %v6517_v47 = vor.u32 %v7800_v29, %v6516_v28  ;;  %v7889_v28 = vld [vmem:[#allocation14 + $0x304] sm:$0xf]  ;;  %v6878_v29 = vld [vmem:[#allocation14 + $0x310] sm:$0xf0] }
 0x1c7   : > { %v2473_v41 = vadd.f32 %v9054_v33, %v2459_v17  ;;  %v6766_v33 = vld [vmem:[#allocation14 + $0x230] sm:$0xf0]  ;;  %v7888_v17 = vld [vmem:[#allocation14 + $0x2f4] sm:$0xf0] }
 0x1c9   : > { %3535 = vmatpush.bf16.msrb.mxu2 %v6833_v45  ;;  %3549 = vmatpush.bf16.msrb.mxu3 %v6961_v46  ;;  %v2487_v61 = vadd.f32 %v9061_v53, %v2473_v41  ;;  %v2499_v53 = vadd.f32 %v9044_v42, %v2485_v56  ;;  %v6881_v42 = vor.u32 %v7889_v28, %v6878_v29  ;;  %v6534_v28 = vld [vmem:[#allocation14 + $0x58] sm:$0xf0] }
 0x1ca   : > { %3512 = vmatpush.bf16.msrb.mxu0 %v6497_v52  ;;  %v7808_v52 = vld [vmem:[#allocation14 + $0x74] sm:$0xf0]  ;;  %v2512_v59 = vpop.f32.mrf.mxu0 }
 0x1cb   : > { %v2513_v5 = vadd.f32 %v2512_v59, %v1800_v48  ;;  %v6549_v6 = vor.u32 %v7808_v52, %v6548_v50  ;;  %v7796_v50 = vld [vmem:[#allocation14 + $0x14] sm:$0xf0]  ;;  %v7822_v52 = vld [vmem:[#allocation14 + $0xec] sm:$0xf]  ;;  %v6614_v59 = vld [vmem:[#allocation14 + $0xf8] sm:$0xf0] }
 0x1cc   : > { %v6617_v1 = vor.u32 %v7822_v52, %v6614_v59  ;;  %v6724_v52 = vld [vmem:[#allocation14 + $0x1c8] sm:$0xf]  ;;  %v7852_v59 = vld [vmem:[#allocation14 + $0x1d4] sm:$0xf0] }
 0x1cd   : > { %3513 = vmatmul.bf16.vlgmr.msrb.gmra.mxu0 %v8999_v21  ;;  %3536 = vmatpush.bf16.msrb.mxu2 %v6817_v63 }
 0x1ce   : > { %3561 = vmatpush.bf16.msra.mxu0 %v6613_v54  ;;  %v7845_v54 = vld [vmem:[#allocation14 + $0x1a4] sm:$0xf]  ;;  %v2526_v3 = vpop.f32.mrf.mxu1  ;;  %3550 = vmatpush.bf16.msrb.mxu3 %v6945_v0  ;;  %v6894_v0 = vld [vmem:[#allocation14 + $0x330] sm:$0xf0] }
 0x1cf   : > { %v6705_v60 = vor.u32 %v7845_v54, %v6702_v55  ;;  %v2527_v25 = vadd.f32 %v2526_v3, %v2513_v5  ;;  %v6654_v54 = vld [vmem:[#allocation14 + $0x150] sm:$0xf0]  ;;  %v7861_v55 = vld [vmem:[#allocation14 + $0x224] sm:$0xf]  ;;  %v6897_v3 = vor.u32 %v7893_v57, %v6894_v0 }
 0x1d0   : > { %v6769_v63 = vor.u32 %v7861_v55, %v6766_v33  ;;  %v7880_v33 = vld [vmem:[#allocation14 + $0x2b4] sm:$0xf0] }
 0x1d1   : > { %3521 = vmatpush.bf16.msrb.mxu1 %v6705_v60  ;;  %3537 = vmatpush.bf16.msrb.mxu2 %v6801_v19  ;;  %v6657_v60 = vor.u32 %v7833_v51, %v6654_v54  ;;  %v2501_v19 = vadd.f32 %v9063_v58, %v2487_v61  ;;  %v7825_v58 = vld [vmem:[#allocation14 + $0x104] sm:$0xf]  ;;  %v7810_v61 = vld [vmem:[#allocation14 + $0x8c] sm:$0xf] }
 0x1d2   : > { %3562 = vmatpush.bf16.msra.mxu0 %v6597_v4  ;;  %v7841_v4 = vld [vmem:[#allocation14 + $0x184] sm:$0xf]  ;;  %v2540_v30 = vpop.f32.mrf.mxu2  ;;  %v2514_v36 = vpop.f32.mrf.mxu0  ;;  %3551 = vmatpush.bf16.msrb.mxu3 %v6929_v23  ;;  %v6625_v41 = vor.u32 %v7825_v58, %v6622_v20  ;;  %v7904_v58 = vld [vmem:[#allocation14 + $0x374] sm:$0xf0] }
 0x1d3   : > { %v6689_v12 = vor.u32 %v7841_v4, %v6686_v9  ;;  %v2554_v35 = vpop.f32.mrf.mxu3  ;;  %v2541_v45 = vadd.f32 %v2540_v30, %v2527_v25  ;;  %v2515_v46 = vadd.f32 %v2514_v36, %v1800_v48  ;;  %v7829_v9 = vld [vmem:[#allocation14 + $0x124] sm:$0xf]  ;;  %v6753_v25 = vor.u32 %v7857_v11, %v6750_v14 }
 0x1d4   : > { %v6641_v13 = vor.u32 %v7829_v9, %v6638_v10  ;;  %v6601_v36 = vor.u32 %v7818_v2, %v6598_v7  ;;  %v6964_v2 = vld [vmem:[#allocation14 + $0x3a8] sm:$0xf]  ;;  %v7912_v7 = vld [vmem:[#allocation14 + $0x3b4] sm:$0xf0]  ;;  %v3810_v10 = vunpack.c.h.b16 %v9020_v26  ;;  %v3748_v11 = vunpack.c.l.b16 %v9020_v26 }
 0x1d5   : > { %3522 = vmatpush.bf16.msrb.mxu1 %v6689_v12  ;;  %3538 = vmatpush.bf16.msrb.mxu2 %v6785_v43  ;;  %v2555_v5 = vadd.f32 %v2554_v35, %v2541_v45  ;;  %v7920_v35 = vld [vmem:[#allocation14 + $0x3f4] sm:$0xf0]  ;;  %v6965_v9 = vor.u32 %v7912_v7, %v6964_v2  ;;  %v6900_v7 = vld [vmem:[#allocation14 + $0x328] sm:$0xf] }
 0x1d6   : > { %3563 = vmatpush.bf16.msra.mxu0 %v6581_v8  ;;  %v7837_v8 = vld [vmem:[#allocation14 + $0x164] sm:$0xf]  ;;  %v2528_v62 = vpop.f32.mrf.mxu1  ;;  %3552 = vmatpush.bf16.msrb.mxu3 %v6913_v44  ;;  %v7856_v43 = vld [vmem:[#allocation14 + $0x1f4] sm:$0xf0]  ;;  %v6852_v44 = vld [vmem:[#allocation14 + $0x2c8] sm:$0xf] }
 0x1d7   : > { %v6673_v37 = vor.u32 %v7837_v8, %v6670_v32  ;;  %v3675_v30 = vpack.c.bf16 %v2555_v5, %v2499_v53  ;;  %v7814_v32 = vld [vmem:[#allocation14 + $0xac] sm:$0xf]  ;;  %v7884_v45 = vld [vmem:[#allocation14 + $0x2d4] sm:$0xf0]  ;;  %v6566_v5 = vld [vmem:[#allocation14 + $0x98] sm:$0xf0] }
 0x1d8   : > { %v6585_v57 = vor.u32 %v7814_v32, %v6582_v39  ;;  %v6708_v53 = vld [vmem:[#allocation14 + $0x1a8] sm:$0xf]  ;;  %v7844_v39 = vld [vmem:[#allocation14 + $0x194] sm:$0xf0] }
 0x1d9   : > { %3523 = vmatpush.bf16.msrb.mxu1 %v6673_v37  ;;  %3539 = vmatpush.bf16.msrb.mxu2 %v6769_v63  ;;  %v6997_v37 = vor.u32 %v7920_v35, %v6996_v34  ;;  %v3812_v51 = vunpack.c.h.b16 %v3675_v30  ;;  %v3688_v55 = vunpack.c.l.b16 %v3675_v30  ;;  %v9087_v30 = vpack.c.b16 %v3810_v10, %v3810_v10  ;;  %v6692_v32 = vld [vmem:[#allocation14 + $0x188] sm:$0xf]  ;;  %v7872_v35 = vld [vmem:[#allocation14 + $0x274] sm:$0xf0] }
 0x1da   : > { %3564 = vmatpush.bf16.msra.mxu0 %v6565_v49  ;;  %v6500_v49 = vld [vmem:[#allocation14 + $0x8] sm:$0xf]  ;;  %v2542_v4 = vpop.f32.mrf.mxu2  ;;  %3553 = vmatpush.bf16.msrb.mxu3 %v6897_v3  ;;  %v6569_v3 = vor.u32 %v7810_v61, %v6566_v5  ;;  %v6693_v34 = vor.u32 %v7844_v39, %v6692_v32  ;;  %v7836_v61 = vld [vmem:[#allocation14 + $0x154] sm:$0xf0] }
 0x1db   : > { %v6501_v48 = vor.u32 %v7796_v50, %v6500_v49  ;;  %v2556_v23 = vpop.f32.mrf.mxu3  ;;  %v6980_v49 = vld [vmem:[#allocation14 + $0x3c8] sm:$0xf]  ;;  %v7916_v50 = vld [vmem:[#allocation14 + $0x3d4] sm:$0xf0] }
 0x1dc   : > { %v7864_v5 = vld [vmem:[#allocation14 + $0x234] sm:$0xf0] }
 0x1dd   : > { %3524 = vmatpush.bf16.msrb.mxu1 %v6657_v60  ;;  %3540 = vmatpush.bf16.msrb.mxu2 %v6753_v25  ;;  %v6836_v60 = vld [vmem:[#allocation14 + $0x2a8] sm:$0xf]  ;;  %v7832_v10 = vld [vmem:[#allocation14 + $0x134] sm:$0xf0] }
 0x1de   : > { %3565 = vmatpush.bf16.msra.mxu0 %v6549_v6  ;;  %v2529_v6 = vadd.f32 %v2528_v62, %v2515_v46  ;;  %3554 = vmatpush.bf16.msrb.mxu3 %v6881_v42  ;;  %v6741_v46 = vor.u32 %v7856_v43, %v6740_v38  ;;  %v6981_v62 = vor.u32 %v7916_v50, %v6980_v49  ;;  %v6804_v42 = vld [vmem:[#allocation14 + $0x268] sm:$0xf]  ;;  %v7798_v38 = vld [vmem:[#allocation14 + $0x2c] sm:$0xf]  ;;  %v4047_v43 = vunpack.c.h.b16 %v9035_v15  ;;  %v7868_v49 = vld [vmem:[#allocation14 + $0x254] sm:$0xf0] }
 0x1e0   : > { %v2543_v12 = vadd.f32 %v2542_v4, %v2529_v6  ;;  %v6837_v6 = vor.u32 %v7880_v33, %v6836_v60  ;;  %3541 = vmatmul.bf16.vlgmr.msrb.gmra.mxu2 %v8997_v18  ;;  %v7806_v4 = vld [vmem:[#allocation14 + $0x6c] sm:$0xf]  ;;  %v9095_v33 = vpack.c.b16 %v4047_v43, %v4047_v43 }
 0x1e1   : > { %3525 = vmatpush.bf16.msrb.mxu1 %v6641_v13  ;;  %3555 = vmatmul.bf16.vlgmr.msrb.gmra.mxu3 %v9001_v22  ;;  %v6820_v13 = vld [vmem:[#allocation14 + $0x288] sm:$0xf] }
 0x1e2   : > { %3566 = vmatpush.bf16.msra.mxu0 %v6533_v27  ;;  %v6869_v27 = vor.u32 %v7888_v17, %v6868_v16  ;;  %v2557_v8 = vadd.f32 %v2556_v23, %v2543_v12  ;;  %3603 = vmatpush.bf16.msra.mxu3 %v6997_v37  ;;  %v7848_v12 = vld [vmem:[#allocation14 + $0x1b4] sm:$0xf0]  ;;  %v6932_v37 = vld [vmem:[#allocation14 + $0x368] sm:$0xf] }
 0x1e3   : > { %v6709_v14 = vor.u32 %v7848_v12, %v6708_v53  ;;  %v7876_v16 = vld [vmem:[#allocation14 + $0x294] sm:$0xf0] }
 0x1e4   : > { %v3677_v40 = vpack.c.bf16 %v2557_v8, %v2501_v19  ;;  %3589 = vmatpush.bf16.msra.mxu2 %v6869_v27  ;;  %v6821_v17 = vor.u32 %v7876_v16, %v6820_v13  ;;  %v6948_v19 = vld [vmem:[#allocation14 + $0x388] sm:$0xf]  ;;  %v7908_v23 = vld [vmem:[#allocation14 + $0x394] sm:$0xf0]  ;;  %v7802_v27 = vld [vmem:[#allocation14 + $0x4c] sm:$0xf]  ;;  %v3749_v8 = vpack.c.b16 %v3748_v11, %v3748_v11 }
 0x1e5   : > { %3526 = vmatpush.bf16.msrb.mxu1 %v6625_v41  ;;  %v6949_v29 = vor.u32 %v7908_v23, %v6948_v19  ;;  %v6537_v20 = vor.u32 %v7802_v27, %v6534_v28  ;;  %v6933_v41 = vor.u32 %v7904_v58, %v6932_v37  ;;  %v6756_v11 = vld [vmem:[#allocation14 + $0x208] sm:$0xf]  ;;  %v7860_v12 = vld [vmem:[#allocation14 + $0x214] sm:$0xf0]  ;;  %v7886_v13 = vld [vmem:[#allocation14 + $0x2ec] sm:$0xf] }
 0x1e6   : > { %3567 = vmatpush.bf16.msra.mxu0 %v6517_v47  ;;  %v6853_v47 = vor.u32 %v7884_v45, %v6852_v44  ;;  %v3813_v54 = vunpack.c.h.b16 %v3677_v40  ;;  %v3689_v56 = vunpack.c.l.b16 %v3677_v40  ;;  %3604 = vmatpush.bf16.msra.mxu3 %v6981_v62  ;;  %v6518_v40 = vld [vmem:[#allocation14 + $0x38] sm:$0xf0]  ;;  %v6676_v44 = vld [vmem:[#allocation14 + $0x168] sm:$0xf]  ;;  %v7840_v45 = vld [vmem:[#allocation14 + $0x174] sm:$0xf0] }
 0x1e7   : > { %v6772_v62 = vld [vmem:[#allocation14 + $0x228] sm:$0xf]  ;;  %v7854_v58 = vld [vmem:[#allocation14 + $0x1ec] sm:$0xf] }
 0x1e8   : > { %v9074_v63 = vpack.c.b16 %v3813_v54, %v3812_v51  ;;  %v9076_v0 = vpack.c.b16 %v3689_v56, %v3688_v55  ;;  %3590 = vmatpush.bf16.msra.mxu2 %v6853_v47  ;;  %3527 = vmatmul.bf16.vlgmr.msrb.gmra.mxu1 %v9003_v24  ;;  %v6677_v47 = vor.u32 %v7840_v45, %v6676_v44  ;;  %v7900_v51 = vld [vmem:[#allocation14 + $0x354] sm:$0xf0]  ;;  %v7794_v56 = vld [vmem:[#allocation14 + $0xc] sm:$0xf]  ;;  %v6884_v23 = vld [vmem:[#allocation14 + $0x308] sm:$0xf] }
 0x1e9   : > { %3575 = vmatpush.bf16.msra.mxu1 %v6741_v46  ;;  %v6788_v46 = vld [vmem:[#allocation14 + $0x248] sm:$0xf]  ;;  %v6521_v54 = vor.u32 %v7798_v38, %v6518_v40  ;;  %v6773_v2 = vor.u32 %v7864_v5, %v6772_v62  ;;  %v6854_v40 = vld [vmem:[#allocation14 + $0x2d8] sm:$0xf0]  ;;  %v7874_v62 = vld [vmem:[#allocation14 + $0x28c] sm:$0xf] }
 0x1ea   : > { %3568 = vmatpush.bf16.msra.mxu0 %v6501_v48  ;;  %v6725_v48 = vor.u32 %v7852_v59, %v6724_v52  ;;  %3869 = vrot.lane.b32.xlu1 %v9074_v63, %s8664_s27  ;;  %v6789_v50 = vor.u32 %v7868_v49, %v6788_v46  ;;  %v6916_v52 = vld [vmem:[#allocation14 + $0x348] sm:$0xf]  ;;  %v9093_v55 = vpop.f32.mrf.mxu0  ;;  %v6502_v59 = vld [vmem:[#allocation14 + $0x18] sm:$0xf0]  ;;  %v3696_v27 = vsel %vm3691_vm0, %v9076_v0, 0  ;;  %v3819_v32 = vsel %vm3691_vm0, %v9074_v63, 0 }
 0x1eb   : > { %3752 = vrot.lane.b32.xlu0 %v9076_v0, %s8664_s27  ;;  %3605 = vmatpush.bf16.msra.mxu3 %v6965_v9  ;;  %v6917_v60 = vor.u32 %v7900_v51, %v6916_v52  ;;  %v6644_v9 = vld [vmem:[#allocation14 + $0x128] sm:$0xf]  ;;  %v6742_v0 = vld [vmem:[#allocation14 + $0x1f8] sm:$0xf0]  ;;  %v7850_v46 = vld [vmem:[#allocation14 + $0x1cc] sm:$0xf] }
 0x1ec   : > { %3591 = vmatpush.bf16.msra.mxu2 %v6837_v6  ;;  %v9099_v6 = vpop.f32.mrf.mxu1  ;;  %v6645_v53 = vor.u32 %v7832_v10, %v6644_v9  ;;  %v6745_v38 = vor.u32 %v7854_v58, %v6742_v0  ;;  %v6982_v63 = vld [vmem:[#allocation14 + $0x3d8] sm:$0xf0]  ;;  %v7878_v49 = vld [vmem:[#allocation14 + $0x2ac] sm:$0xf]  ;;  %v1801_v52 = vperm.slane %v9052_v31, 2 }
 0x1ed   : > { %3569 = vmatmul.bf16.vlgmr.msra.gmra.mxu0 %v8999_v21  ;;  %3576 = vmatpush.bf16.msra.mxu1 %v6725_v48  ;;  %v6822_v5 = vld [vmem:[#allocation14 + $0x298] sm:$0xf0] }
 0x1ee   : > { %3617 = vmatpush.bf16.msrb.mxu0 %v6617_v1  ;;  %v6550_v1 = vld [vmem:[#allocation14 + $0x78] sm:$0xf0] }
 0x1ef   : > { %v6553_v25 = vor.u32 %v7806_v4, %v6550_v1  ;;  %3606 = vmatpush.bf16.msra.mxu3 %v6949_v29  ;;  %v6505_v4 = vor.u32 %v7794_v56, %v6502_v59  ;;  %v7918_v29 = vld [vmem:[#allocation14 + $0x3ec] sm:$0xf]  ;;  %v6966_v56 = vld [vmem:[#allocation14 + $0x3b8] sm:$0xf0] }
 0x1f0   : > { %3592 = vmatpush.bf16.msra.mxu2 %v6821_v17  ;;  %v6757_v17 = vor.u32 %v7860_v12, %v6756_v11  ;;  %v2569_v11 = vadd.f32 %v9093_v55, %v1801_v52  ;;  %v6694_v12 = vld [vmem:[#allocation14 + $0x198] sm:$0xf0] }
 0x1f1   : > { %3577 = vmatpush.bf16.msra.mxu1 %v6709_v14  ;;  %v6870_v14 = vld [vmem:[#allocation14 + $0x2f8] sm:$0xf0] }
 0x1f2   : > { %3618 = vmatpush.bf16.msrb.mxu0 %v6601_v36  ;;  %3867 = vrot.lane.b32.xlu1 %v9087_v30, %s8664_s27  ;;  %v6805_v36 = vor.u32 %v7872_v35, %v6804_v42  ;;  %v9101_v16 = vpop.f32.mrf.mxu2  ;;  %v6873_v19 = vor.u32 %v7886_v13, %v6870_v14  ;;  %v6628_v42 = vld [vmem:[#allocation14 + $0x108] sm:$0xf]  ;;  %v7870_v13 = vld [vmem:[#allocation14 + $0x26c] sm:$0xf]  ;;  %v2583_v55 = vadd.f32 %v9099_v6, %v2569_v11  ;;  %v6630_v11 = vld [vmem:[#allocation14 + $0x118] sm:$0xf0] }
 0x1f3   : > { %3750 = vrot.lane.b32.xlu0 %v3749_v8, %s8664_s27  ;;  %3607 = vmatpush.bf16.msra.mxu3 %v6933_v41  ;;  %v6998_v8 = vld [vmem:[#allocation14 + $0x3f8] sm:$0xf0]  ;;  %v9107_v35 = vpop.f32.mrf.mxu3  ;;  %v7914_v41 = vld [vmem:[#allocation14 + $0x3cc] sm:$0xf] }
 0x1f4   : > { %3593 = vmatpush.bf16.msra.mxu2 %v6805_v36  ;;  %v7001_v39 = vor.u32 %v7918_v29, %v6998_v8  ;;  %v9109_v36 = vpop.f32.mrf.mxu0  ;;  %v9112_v44 = vpop.f32.mrf.mxu1  ;;  %v6985_v45 = vor.u32 %v7914_v41, %v6982_v63  ;;  %v6678_v29 = vld [vmem:[#allocation14 + $0x178] sm:$0xf0]  ;;  %v7866_v8 = vld [vmem:[#allocation14 + $0x24c] sm:$0xf] }
 0x1f5   : > { %3578 = vmatpush.bf16.msra.mxu1 %v6693_v34  ;;  %v7828_v34 = vld [vmem:[#allocation14 + $0x114] sm:$0xf0]  ;;  %v6662_v63 = vld [vmem:[#allocation14 + $0x158] sm:$0xf0] }
 0x1f6   : > { %3619 = vmatpush.bf16.msrb.mxu0 %v6585_v57  ;;  %v6660_v57 = vld [vmem:[#allocation14 + $0x148] sm:$0xf]  ;;  %v6629_v37 = vor.u32 %v7828_v34, %v6628_v42  ;;  %v2571_v34 = vadd.f32 %v9109_v36, %v1801_v52 }
 0x1f7   : > { %v6661_v48 = vor.u32 %v7836_v61, %v6660_v57  ;;  %3608 = vmatpush.bf16.msra.mxu3 %v6917_v60  ;;  %v7846_v57 = vld [vmem:[#allocation14 + $0x1ac] sm:$0xf]  ;;  %v6710_v61 = vld [vmem:[#allocation14 + $0x1b8] sm:$0xf0] }
 0x1f8   : > { %3594 = vmatpush.bf16.msra.mxu2 %v6789_v50  ;;  %v6838_v50 = vld [vmem:[#allocation14 + $0x2b8] sm:$0xf0] }
 0x1f9   : > { %3579 = vmatpush.bf16.msra.mxu1 %v6677_v47  ;;  %v6726_v47 = vld [vmem:[#allocation14 + $0x1d8] sm:$0xf0]  ;;  %v6841_v51 = vor.u32 %v7878_v49, %v6838_v50  ;;  %v7894_v49 = vld [vmem:[#allocation14 + $0x32c] sm:$0xf]  ;;  %v2597_v50 = vadd.f32 %v9101_v16, %v2583_v55 }
 0x1fa   : > { %3620 = vmatpush.bf16.msrb.mxu0 %v6569_v3  ;;  %4104 = vrot.lane.b32.xlu1 %v9095_v33, %s8664_s27  ;;  %v7896_v3 = vld [vmem:[#allocation14 + $0x334] sm:$0xf0]  ;;  %v9118_v59 = vpop.f32.mrf.mxu2 }
 0x1fb   : > { %v6901_v1 = vor.u32 %v7896_v3, %v6900_v7  ;;  %v6950_v7 = vld [vmem:[#allocation14 + $0x398] sm:$0xf0]  ;;  %v1802_v3 = vperm.slane %v9052_v31, 3 }
 0x1fc   : > { %3595 = vmatpush.bf16.msra.mxu2 %v6773_v2  ;;  %v7906_v2 = vld [vmem:[#allocation14 + $0x38c] sm:$0xf]  ;;  %v6934_v31 = vld [vmem:[#allocation14 + $0x378] sm:$0xf0] }
 0x1fd   : > { %3580 = vmatpush.bf16.msra.mxu1 %v6661_v48  ;;  %3609 = vmatpush.bf16.msra.mxu3 %v6901_v1  ;;  %v6713_v48 = vor.u32 %v7846_v57, %v6710_v61  ;;  %v9121_v1 = vpop.f32.mrf.mxu3  ;;  %v6953_v10 = vor.u32 %v7906_v2, %v6950_v7  ;;  %v7858_v61 = vld [vmem:[#allocation14 + $0x20c] sm:$0xf]  ;;  %v6886_v7 = vld [vmem:[#allocation14 + $0x318] sm:$0xf0] }
 0x1fe   : > { %3621 = vmatpush.bf16.msrb.mxu0 %v6553_v25  ;;  %v7892_v25 = vld [vmem:[#allocation14 + $0x314] sm:$0xf0]  ;;  %v7890_v2 = vld [vmem:[#allocation14 + $0x30c] sm:$0xf] }
 0x1ff   : > { %v6885_v28 = vor.u32 %v7892_v25, %v6884_v23  ;;  %v6806_v23 = vld [vmem:[#allocation14 + $0x278] sm:$0xf0]  ;;  %v7902_v25 = vld [vmem:[#allocation14 + $0x36c] sm:$0xf] }
 0x200   : > { %3596 = vmatpush.bf16.msra.mxu2 %v6757_v17 }
 0x201   : > { %3581 = vmatpush.bf16.msra.mxu1 %v6645_v53  ;;  %3610 = vmatpush.bf16.msra.mxu3 %v6885_v28  ;;  %v7842_v53 = vld [vmem:[#allocation14 + $0x18c] sm:$0xf] }
 0x202   : > { %3622 = vmatpush.bf16.msrb.mxu0 %v6537_v20  ;;  %v7882_v20 = vld [vmem:[#allocation14 + $0x2cc] sm:$0xf] }
 0x203   : > { %v6857_v43 = vor.u32 %v7882_v20, %v6854_v40  ;;  %3597 = vmatmul.bf16.vlgmr.msra.gmra.mxu2 %v8997_v18  ;;  %v7838_v28 = vld [vmem:[#allocation14 + $0x16c] sm:$0xf] }
 0x204   : > { %3645 = vmatpush.bf16.msrb.mxu2 %v6873_v19  ;;  %3611 = vmatmul.bf16.vlgmr.msra.gmra.mxu3 %v9001_v22  ;;  %v6697_v19 = vor.u32 %v7842_v53, %v6694_v12  ;;  %v6681_v42 = vor.u32 %v7838_v28, %v6678_v29  ;;  %v7898_v20 = vld [vmem:[#allocation14 + $0x34c] sm:$0xf]  ;;  %v6889_v12 = vor.u32 %v7890_v2, %v6886_v7 }
 0x205   : > { %3659 = vmatpush.bf16.msrb.mxu3 %v7001_v39  ;;  %3582 = vmatpush.bf16.msra.mxu1 %v6629_v37  ;;  %v6790_v39 = vld [vmem:[#allocation14 + $0x258] sm:$0xf0]  ;;  %v7834_v40 = vld [vmem:[#allocation14 + $0x14c] sm:$0xf] }
 0x206   : > { %3623 = vmatpush.bf16.msrb.mxu0 %v6521_v54  ;;  %v7910_v54 = vld [vmem:[#allocation14 + $0x3ac] sm:$0xf]  ;;  %v6793_v0 = vor.u32 %v7866_v8, %v6790_v39  ;;  %v6665_v36 = vor.u32 %v7834_v40, %v6662_v63 }
 0x207   : > { %v6969_v60 = vor.u32 %v7910_v54, %v6966_v56  ;;  %v7830_v56 = vld [vmem:[#allocation14 + $0x12c] sm:$0xf] }
 0x208   : > { %3646 = vmatpush.bf16.msrb.mxu2 %v6857_v43  ;;  %3583 = vmatmul.bf16.vlgmr.msra.gmra.mxu1 %v9003_v24  ;;  %v7862_v43 = vld [vmem:[#allocation14 + $0x22c] sm:$0xf] }
 0x209   : > { %3631 = vmatpush.bf16.msrb.mxu1 %v6745_v38  ;;  %3660 = vmatpush.bf16.msrb.mxu3 %v6985_v45  ;;  %v6918_v38 = vld [vmem:[#allocation14 + $0x358] sm:$0xf0] }
 0x20a   : > { %3624 = vmatpush.bf16.msrb.mxu0 %v6505_v4  ;;  %v6825_v4 = vor.u32 %v7874_v62, %v6822_v5  ;;  %v2624_v9 = vpop.f32.mrf.mxu0  ;;  %v6774_v45 = vld [vmem:[#allocation14 + $0x238] sm:$0xf0]  ;;  %v6921_v6 = vor.u32 %v7898_v20, %v6918_v38 }
 0x20b   : > { %v2625_v14 = vadd.f32 %v2624_v9, %v1802_v3  ;;  %v2638_v17 = vpop.f32.mrf.mxu1  ;;  %v6777_v54 = vor.u32 %v7862_v43, %v6774_v45  ;;  %v6758_v62 = vld [vmem:[#allocation14 + $0x218] sm:$0xf0] }
 0x20c   : > { %3647 = vmatpush.bf16.msrb.mxu2 %v6841_v51  ;;  %v6761_v9 = vor.u32 %v7858_v61, %v6758_v62 }
 0x20d   : > { %3625 = vmatmul.bf16.vlgmr.msrb.gmra.mxu0 %v8999_v21  ;;  %v6729_v21 = vor.u32 %v7850_v46, %v6726_v47  ;;  %3661 = vmatpush.bf16.msrb.mxu3 %v6969_v60  ;;  %v2639_v37 = vadd.f32 %v2638_v17, %v2625_v14  ;;  %v6646_v60 = vld [vmem:[#allocation14 + $0x138] sm:$0xf0] }
 0x20e   : > { %3705 = vmatpush.bf16.xpose.msra.mxu0 %v3696_v27  ;;  %v6809_v27 = vor.u32 %v7870_v13, %v6806_v23  ;;  %v6649_v5 = vor.u32 %v7830_v56, %v6646_v60 }
 0x20f   : > { %3632 = vmatpush.bf16.msrb.mxu1 %v6729_v21  ;;  %v6902_v21 = vld [vmem:[#allocation14 + $0x338] sm:$0xf0] }
 0x210   : > { %3648 = vmatpush.bf16.msrb.mxu2 %v6825_v4 }
 0x211   : > { %3662 = vmatpush.bf16.msrb.mxu3 %v6953_v10  ;;  %v7826_v10 = vld [vmem:[#allocation14 + $0x10c] sm:$0xf] }
 0x212   : > { %v2652_v58 = vpop.f32.mrf.mxu2  ;;  %v2626_v41 = vpop.f32.mrf.mxu0  ;;  %v6633_v14 = vor.u32 %v7826_v10, %v6630_v11 }
 0x213   : > { %3633 = vmatpush.bf16.msrb.mxu1 %v6713_v48  ;;  %v2627_v46 = vadd.f32 %v2626_v41, %v1802_v3  ;;  %v2666_v47 = vpop.f32.mrf.mxu3  ;;  %v2653_v52 = vadd.f32 %v2652_v58, %v2639_v37  ;;  %v2640_v51 = vpop.f32.mrf.mxu1  ;;  %v6905_v48 = vor.u32 %v7894_v49, %v6902_v21  ;;  %v2611_v3 = vadd.f32 %v9107_v35, %v2597_v50  ;;  %v2799_v58 = vld [vmem:[#allocation15] sm:$0xf] }
 0x214   : > { %3649 = vmatpush.bf16.msrb.mxu2 %v6809_v27 }
 0x215   : > { %v2641_v57 = vadd.f32 %v2640_v51, %v2627_v46  ;;  %v2802_v46 = vperm.slane %v2799_v58, 1 }
 0x216   : > { %3828 = vmatpush.bf16.xpose.msrb.mxu0 %v3819_v32  ;;  %v6937_v32 = vor.u32 %v7902_v25, %v6934_v31 }
 0x217   : > { %3634 = vmatpush.bf16.msrb.mxu1 %v6697_v19 }
 0x218   : > { %3663 = vmatpush.bf16.msrb.mxu3 %v6937_v32  ;;  %3650 = vmatpush.bf16.msrb.mxu2 %v6793_v0  ;;  %v2803_v0 = vperm.slane %v2799_v58, 2 }
 0x21a   : > { %v2654_v4 = vpop.f32.mrf.mxu2 }
 0x21b   : > { %3635 = vmatpush.bf16.msrb.mxu1 %v6681_v42  ;;  %v2655_v53 = vadd.f32 %v2654_v4, %v2641_v57  ;;  %v2668_v13 = vpop.f32.mrf.mxu3  ;;  %v2804_v4 = vperm.slane %v2799_v58, 3 }
 0x21c   : > { %3664 = vmatpush.bf16.msrb.mxu3 %v6921_v6  ;;  %3651 = vmatpush.bf16.msrb.mxu2 %v6777_v54 }
 0x21d   : > { %7002 = vmatmul.msk.bf16.vlgmr.msra.gmra.mxu0 %vm3691_vm0, %v9020_v26  ;;  %v2585_v26 = vadd.f32 %v9112_v44, %v2571_v34  ;;  %v2667_v44 = vadd.f32 %v2666_v47, %v2653_v52  ;;  %v2669_v23 = vadd.f32 %v2668_v13, %v2655_v53 }
 0x21f   : > { %3636 = vmatpush.bf16.msrb.mxu1 %v6665_v36  ;;  %v2599_v16 = vadd.f32 %v9118_v59, %v2585_v26  ;;  %v3676_v19 = vpack.c.bf16 %v2667_v44, %v2611_v3 }
 0x220   : > { %3665 = vmatpush.bf16.msrb.mxu3 %v6905_v48  ;;  %3652 = vmatpush.bf16.msrb.mxu2 %v6761_v9 }
 0x221   : > { %v2613_v17 = vadd.f32 %v9121_v1, %v2599_v16  ;;  %v4049_v59 = vunpack.c.h.b16 %v3676_v19  ;;  %v3928_v31 = vunpack.c.l.b16 %v3676_v19 }
 0x223   : > { %3637 = vmatpush.bf16.msrb.mxu1 %v6649_v5  ;;  %v3678_v35 = vpack.c.bf16 %v2669_v23, %v2613_v17  ;;  %3653 = vmatmul.bf16.vlgmr.msrb.gmra.mxu2 %v8997_v18 }
 0x224   : > { %3666 = vmatpush.bf16.msrb.mxu3 %v6889_v12 }
 0x225   : > { %v4050_v25 = vunpack.c.h.b16 %v3678_v35  ;;  %v3929_v27 = vunpack.c.l.b16 %v3678_v35 }
 0x227   : > { %3638 = vmatpush.bf16.msrb.mxu1 %v6633_v14  ;;  %3667 = vmatmul.bf16.vlgmr.msrb.gmra.mxu3 %v9001_v22  ;;  %v3930_v28 = vpack.c.b16 %v3929_v27, %v3928_v31  ;;  %v4051_v29 = vpack.c.b16 %v4050_v25, %v4049_v59 }
 0x229   : > { %3990 = vrot.lane.b32.xlu2 %v3930_v28, %s8664_s27  ;;  %4106 = vrot.lane.b32.xlu0 %v4051_v29, %s8664_s27  ;;  %v3935_v18 = vsel %vm3691_vm0, %v3930_v28, 0  ;;  %v4056_v1 = vsel %vm3691_vm0, %v4051_v29, 0 }
 0x22a   : > { %3639 = vmatmul.bf16.vlgmr.msrb.gmra.mxu1 %v9003_v24  ;;  %3944 = vmatpush.bf16.xpose.msra.mxu0 %v3935_v18  ;;  %v3458_v22 = vpop.f32.mrf.mxu0 }
 0x22d   : > { %7006 = vmatmul.msk.bf16.vlgmr.msrb.gmra.mxu0 %vm3691_vm0, %v9087_v30  ;;  %v3986_v30 = vunpack.c.l.b16 %v9035_v15 }
 0x22f   : > { %v3987_v8 = vpack.c.b16 %v3986_v30, %v3986_v30 }
 0x231   : > { %3988 = vrot.lane.b32.xlu2 %v3987_v8, %s8664_s27 }
 0x232   : > { %4065 = vmatpush.bf16.xpose.msrb.mxu0 %v4056_v1  ;;  %v3460_v24 = vpop.f32.mrf.mxu0  ;;  %v3472_v38 = vpop.f32.mrf.mxu1 }
 0x23a   : > { %v3474_v45 = vpop.f32.mrf.mxu1 }
 0x23d   : > { %7010 = vmatmul.msk.bf16.vlgmr.msra.gmra.mxu0 %vm3691_vm0, %v9035_v15 }
 0x243   : > { %v3486_v40 = vpop.f32.mrf.mxu2  ;;  %v3500_v41 = vpop.f32.mrf.mxu3 }
 0x24a   : > { %v3514_v32 = vpop.f32.mrf.mxu0 }
 0x24b   : > { %v3488_v47 = vpop.f32.mrf.mxu2  ;;  %v3502_v36 = vpop.f32.mrf.mxu3  ;;  %v3515_v21 = vadd.f32 %v3514_v32, %v2802_v46 }
 0x24d   : > { %7014 = vmatmul.msk.bf16.vlgmr.msrb.gmra.mxu0 %vm3691_vm0, %v9095_v33  ;;  %v2801_v33 = vperm.slane %v2799_v58, 0 }
 0x24f   : > { %v3459_v49 = vadd.f32 %v3458_v22, %v2801_v33  ;;  %v3461_v50 = vadd.f32 %v3460_v24, %v2801_v33 }
 0x251   : > { %v3473_v26 = vadd.f32 %v3472_v38, %v3459_v49  ;;  %v3475_v61 = vadd.f32 %v3474_v45, %v3461_v50 }
 0x252   : > { %v3516_v39 = vpop.f32.mrf.mxu0 }
 0x253   : > { %v3487_v57 = vadd.f32 %v3486_v40, %v3473_v26  ;;  %v3517_v48 = vadd.f32 %v3516_v39, %v2802_v46  ;;  %v3489_v2 = vadd.f32 %v3488_v47, %v3475_v61 }
 0x255   : > { %v3501_v5 = vadd.f32 %v3500_v41, %v3487_v57  ;;  %v3503_v10 = vadd.f32 %v3502_v36, %v3489_v2 }
 0x25c   : > { %v3870_v55 = vpop.permute.xlu1 %3869 }
 0x25d   : > { %v3753_v42 = vpop.permute.xlu0 %3752  ;;  %v3875_v34 = vsel %vm3691_vm0, %v3870_v55, 0 }
 0x25e   : > { %v3758_v37 = vsel %vm3691_vm0, %v3753_v42, 0 }
 0x25f   : > { %3767 = vmatpush.bf16.xpose.msra.mxu2 %v3758_v37 }
 0x263   : > { %v3542_v54 = vpop.f32.mrf.mxu2 }
 0x264   : > { %v3556_v56 = vpop.f32.mrf.mxu3  ;;  %v3868_v60 = vpop.permute.xlu1 %3867 }
 0x265   : > { %v3751_v63 = vpop.permute.xlu0 %3750  ;;  %v3528_v52 = vpop.f32.mrf.mxu1 }
 0x266   : > { %7004 = vmatmul.msk.bf16.vlgmr.msra.gmra.mxu2 %vm3691_vm0, %v3751_v63  ;;  %v3529_v51 = vadd.f32 %v3528_v52, %v3515_v21 }
 0x267   : > { %3884 = vmatpush.bf16.xpose.msrb.mxu2 %v3875_v34 }
 0x268   : > { %v3543_v62 = vadd.f32 %v3542_v54, %v3529_v51 }
 0x26a   : > { %v3570_v20 = vpop.f32.mrf.mxu0  ;;  %v3557_v7 = vadd.f32 %v3556_v56, %v3543_v62 }
 0x26b   : > { %v3571_v15 = vadd.f32 %v3570_v20, %v2803_v0  ;;  %v3544_v44 = vpop.f32.mrf.mxu2 }
 0x26c   : > { %v3558_v9 = vpop.f32.mrf.mxu3  ;;  %v3679_v11 = vpack.c.bf16 %v3557_v7, %v3501_v5  ;;  %v4105_v41 = vpop.permute.xlu1 %4104 }
 0x26d   : > { %v3530_v3 = vpop.f32.mrf.mxu1 }
 0x26e   : > { %v3531_v16 = vadd.f32 %v3530_v3, %v3517_v48  ;;  %v3726_v23 = vunpack.c.l.b16 %v3679_v11  ;;  %v3846_v35 = vunpack.c.h.b16 %v3679_v11 }
 0x270   : > { %v3545_v53 = vadd.f32 %v3544_v44, %v3531_v16  ;;  %v8193_v44 = vld [vmem:[%s564_s21] ss:$0 sm:$0xff] }
 0x272   : > { %v3572_v43 = vpop.f32.mrf.mxu0  ;;  %v3559_v13 = vadd.f32 %v3558_v9, %v3545_v53 }
 0x273   : > { %v3573_v6 = vadd.f32 %v3572_v43, %v2803_v0 }
 0x274   : > { %v3681_v59 = vpack.c.bf16 %v3559_v13, %v3503_v10 }
 0x276   : > { %7008 = vmatmul.msk.bf16.vlgmr.msrb.gmra.mxu2 %vm3691_vm0, %v3868_v60  ;;  %v3727_v25 = vunpack.c.l.b16 %v3681_v59  ;;  %v3847_v31 = vunpack.c.h.b16 %v3681_v59 }
 0x278   : > { %v9153_v27 = vpack.c.b16 %v3727_v25, %v3726_v23  ;;  %v9155_v28 = vpack.c.b16 %v3847_v31, %v3846_v35 }
 0x27a   : > { %3740 = vmatpush.bf16.msra.mxu1 %v9153_v27 }
 0x27e   : > { %3860 = vmatpush.bf16.msrb.mxu1 %v9155_v28 }
 0x283   : > { %v3991_v14 = vpop.permute.xlu2 %3990 }
 0x284   : > { %v3996_v19 = vsel %vm3691_vm0, %v3991_v14, 0 }
 0x285   : > { %4005 = vmatpush.bf16.xpose.msra.mxu2 %v3996_v19  ;;  %v3584_v30 = vpop.f32.mrf.mxu1 }
 0x286   : > { %v3585_v8 = vadd.f32 %v3584_v30, %v3571_v15  ;;  %v3598_v24 = vpop.f32.mrf.mxu2 }
 0x287   : > { %v3612_v39 = vpop.f32.mrf.mxu3 }
 0x288   : > { %v3599_v32 = vadd.f32 %v3598_v24, %v3585_v8 }
 0x28a   : > { %v3626_v12 = vpop.f32.mrf.mxu0  ;;  %v3613_v43 = vadd.f32 %v3612_v39, %v3599_v32 }
 0x28b   : > { %v3627_v17 = vadd.f32 %v3626_v12, %v2804_v4  ;;  %v3989_v18 = vpop.permute.xlu2 %3988 }
 0x28c   : > { %7012 = vmatmul.msk.bf16.vlgmr.msra.gmra.mxu2 %vm3691_vm0, %v3989_v18 }
 0x28d   : > { %v3586_v55 = vpop.f32.mrf.mxu1 }
 0x28e   : > { %v3587_v42 = vadd.f32 %v3586_v55, %v3573_v6  ;;  %v3600_v58 = vpop.f32.mrf.mxu2 }
 0x28f   : > { %v3614_v38 = vpop.f32.mrf.mxu3 }
 0x290   : > { %v3601_v20 = vadd.f32 %v3600_v58, %v3587_v42 }
 0x292   : > { %v3628_v29 = vpop.f32.mrf.mxu0  ;;  %v3615_v26 = vadd.f32 %v3614_v38, %v3601_v20 }
 0x293   : > { %v3629_v1 = vadd.f32 %v3628_v29, %v2804_v4 }
 0x29a   : > { %v3707_v22 = vpop.f32.mrf.mxu0 }
 0x29b   : > { %v4107_v37 = vpop.permute.xlu0 %4106  ;;  %v3708_v11 = vadd.f32 %v8193_v44, %v3707_v22 }
 0x29c   : > { %v4112_v0 = vsel %vm3691_vm0, %v4107_v37, 0 }
 0x29d   : > { %4121 = vmatpush.bf16.xpose.msrb.mxu2 %v4112_v0  ;;  %v3712_v12 = vsel %vm3711_vm1, %v3708_v11, -inf }
 0x2a2   : > { %v3709_v34 = vpop.f32.mrf.mxu0 }
 0x2a4   : > { %7016 = vmatmul.msk.bf16.vlgmr.msrb.gmra.mxu2 %vm3691_vm0, %v4105_v41 }
 0x2a6   : > { %v3654_v33 = vpop.f32.mrf.mxu2 }
 0x2a7   : > { %v3640_v63 = vpop.f32.mrf.mxu1 }
 0x2a8   : > { %v3641_v15 = vadd.f32 %v3640_v63, %v3627_v17 }
 0x2aa   : > { %v3830_v40 = vpop.f32.mrf.mxu0  ;;  %v3655_v45 = vadd.f32 %v3654_v33, %v3641_v15  ;;  %v3668_v46 = vpop.f32.mrf.mxu3 }
 0x2ab   : > { %v3831_v25 = vadd.f32 %v8193_v44, %v3830_v40 }
 0x2ac   : > { %v3669_v6 = vadd.f32 %v3668_v46, %v3655_v45 }
 0x2ad   : > { %v3834_v29 = vsel %vm3711_vm1, %v3831_v25, -inf }
 0x2ae   : > { %v3680_v36 = vpack.c.bf16 %v3669_v6, %v3613_v43  ;;  %v3656_v50 = vpop.f32.mrf.mxu2 }
 0x2af   : > { %v3642_v49 = vpop.f32.mrf.mxu1 }
 0x2b0   : > { %v3643_v21 = vadd.f32 %v3642_v49, %v3629_v1  ;;  %v3964_v60 = vunpack.c.l.b16 %v3680_v36  ;;  %v4083_v57 = vunpack.c.h.b16 %v3680_v36 }
 0x2b2   : > { %v3832_v47 = vpop.f32.mrf.mxu0  ;;  %v3657_v52 = vadd.f32 %v3656_v50, %v3643_v21  ;;  %v3670_v51 = vpop.f32.mrf.mxu3 }
 0x2b4   : > { %v3671_v56 = vadd.f32 %v3670_v51, %v3657_v52 }
 0x2b6   : > { %v3682_v61 = vpack.c.bf16 %v3671_v56, %v3615_v26 }
 0x2b8   : > { %v3965_v62 = vunpack.c.l.b16 %v3682_v61  ;;  %v4084_v48 = vunpack.c.h.b16 %v3682_v61 }
 0x2ba   : > { %v3946_v54 = vpop.f32.mrf.mxu0  ;;  %v9162_v5 = vpack.c.b16 %v3965_v62, %v3964_v60  ;;  %v9164_v2 = vpack.c.b16 %v4084_v48, %v4083_v57 }
 0x2bb   : > { %v3947_v18 = vadd.f32 %v8193_v44, %v3946_v54 }
 0x2bd   : > { %v3950_v1 = vsel %vm3711_vm1, %v3947_v18, -inf }
 0x2c2   : > { %v3948_v7 = vpop.f32.mrf.mxu0 }
 0x2ca   : > { %v4067_v3 = vpop.f32.mrf.mxu0 }
 0x2cb   : > { %v4068_v47 = vadd.f32 %v8193_v44, %v4067_v3 }
 0x2cd   : > { %v4071_v50 = vsel %vm3711_vm1, %v4068_v47, -inf }
 0x2d2   : > { %v4069_v16 = vpop.f32.mrf.mxu0 }
 0x2e9   : > { %v3769_v4 = vpop.f32.mrf.mxu2 }
 0x2ea   : > { %v3770_v9 = vadd.f32 %v8193_v44, %v3769_v4 }
 0x2ec   : > { %v3773_v10 = vsel %vm3711_vm1, %v3770_v9, -inf }
 0x2ed   : > { %3774 = vmax.xlane.f32.xlu2 %v3773_v10 }
 0x2f1   : > { %v3771_v53 = vpop.f32.mrf.mxu2 }
 0x2f5   : > { %3713 = vmax.xlane.f32.xlu2 %v3712_v12 }
 0x2f9   : > { %v3886_v13 = vpop.f32.mrf.mxu2 }
 0x2fa   : > { %v3887_v14 = vadd.f32 %v8193_v44, %v3886_v13 }
 0x2fc   : > { %v3890_v17 = vsel %vm3711_vm1, %v3887_v14, -inf }
 0x2fd   : > { %3891 = vmax.xlane.f32.xlu0 %v3890_v17 }
 0x301   : > { %v3888_v19 = vpop.f32.mrf.mxu2 }
 0x30f   : > { %v4007_v23 = vpop.f32.mrf.mxu2 }
 0x310   : > { %v4008_v35 = vadd.f32 %v8193_v44, %v4007_v23 }
 0x312   : > { %v4011_v59 = vsel %vm3711_vm1, %v4008_v35, -inf }
 0x313   : > { %4012 = vmax.xlane.f32.xlu1 %v4011_v59 }
 0x317   : > { %v4009_v31 = vpop.f32.mrf.mxu2 }
 0x31b   : > { %3835 = vmax.xlane.f32.xlu1 %v3834_v29 }
 0x323   : > { %3951 = vmax.xlane.f32.xlu1 %v3950_v1 }
 0x327   : > { %v4123_v30 = vpop.f32.mrf.mxu2 }
 0x328   : > { %v4124_v8 = vadd.f32 %v8193_v44, %v4123_v30 }
 0x32a   : > { %v4127_v22 = vsel %vm3711_vm1, %v4124_v8, -inf }
 0x32b   : > { %4128 = vmax.xlane.f32.xlu2 %v4127_v22 }
 0x32f   : > { %v4125_v24 = vpop.f32.mrf.mxu2 }
 0x343   : > { %3785 = vrot.lane.b32.xlu2 %v9153_v27, %s8664_s27 }
 0x34b   : > { %4023 = vrot.lane.b32.xlu2 %v9162_v5, %s8664_s27 }
 0x353   : > { %4139 = vrot.lane.b32.xlu2 %v9164_v2, %s8664_s27 }
 0x360   : > { %v3775_v32 = vpop.xlane.xlu2 %3774 }
 0x361   : > { %v3776_v39 = vsub.f32 %v3770_v9, %v3775_v32 }
 0x363   : > { %v3777_v55 = vmul.f32 1.442695, %v3776_v39 }
 0x365   : > { %8194 = vpow2.f32 %v3777_v55 }
 0x368   : > { %v3714_v63 = vpop.xlane.xlu2 %3713 }
 0x369   : > { %v3715_v43 = vsub.f32 %v3708_v11, %v3714_v63 }
 0x36b   : > { %v8195_v42 = vpop.eup %8194  ;;  %v3716_v46 = vmul.f32 1.442695, %v3715_v43  ;;  %v7132_v43 = vld [vmem:[#allocation17 + $0xe0] sm:$0xf] }
 0x36c   : > { %v3779_v34 = vsel %vm3711_vm1, %v8195_v42, 0.0 }
 0x36d   : > { %3780 = vadd.xlane.f32.xlu0 %v3779_v34 }
 0x370   : > { %v3892_v37 = vpop.xlane.xlu0 %3891 }
 0x371   : > { %v3893_v58 = vsub.f32 %v3887_v14, %v3892_v37 }
 0x373   : > { %v3894_v0 = vmul.f32 1.442695, %v3893_v58 }
 0x375   : > { %8196 = vpow2.f32 %v3894_v0 }
 0x37b   : > { %v8197_v20 = vpop.eup %8196 }
 0x37c   : > { %v3896_v27 = vsel %vm3711_vm1, %v8197_v20, 0.0 }
 0x37d   : > { %3897 = vadd.xlane.f32.xlu0 %v3896_v27 }
 0x386   : > { %v4013_v38 = vpop.xlane.xlu1 %4012 }
 0x387   : > { %v4014_v40 = vsub.f32 %v4008_v35, %v4013_v38 }
 0x389   : > { %v4015_v41 = vmul.f32 1.442695, %v4014_v40 }
 0x38b   : > { %8198 = vpow2.f32 %v4015_v41 }
 0x38c   : > { %8200 = vpow2.f32 %v3716_v46 }
 0x38e   : > { %v3836_v15 = vpop.xlane.xlu1 %3835 }
 0x38f   : > { %v3837_v49 = vsub.f32 %v3831_v25, %v3836_v15 }
 0x391   : > { %v8199_v33 = vpop.eup %8198  ;;  %3902 = vrot.lane.b32.xlu0 %v9155_v28, %s8664_s27  ;;  %v3838_v26 = vmul.f32 1.442695, %v3837_v49  ;;  %v7116_v49 = vld [vmem:[#allocation17 + $0xc0] sm:$0xf] }
 0x392   : > { %v4017_v45 = vsel %vm3711_vm1, %v8199_v33, 0.0  ;;  %v8201_v51 = vpop.eup %8200 }
 0x393   : > { %4018 = vadd.xlane.f32.xlu1 %v4017_v45  ;;  %v3718_v56 = vsel %vm3711_vm1, %v8201_v51, 0.0  ;;  %v7951_v45 = vld [vmem:[#allocation17 + $0xec] sm:$0xf0] }
 0x396   : > { %v3952_v6 = vpop.xlane.xlu1 %3951 }
 0x397   : > { %v3953_v36 = vsub.f32 %v3947_v18, %v3952_v6  ;;  %v7260_v6 = vld [vmem:[#allocation17 + $0x1e0] sm:$0xf] }
 0x399   : > { %v3954_v21 = vmul.f32 1.442695, %v3953_v36  ;;  %v7983_v36 = vld [vmem:[#allocation17 + $0x1ec] sm:$0xf0] }
 0x39b   : > { %8202 = vpow2.f32 %v3954_v21  ;;  %4072 = vmax.xlane.f32.xlu1 %v4071_v50  ;;  %v7261_v50 = vor.u32 %v7983_v36, %v7260_v6 }
 0x39c   : > { %8204 = vpow2.f32 %v3838_v26  ;;  %v7947_v26 = vld [vmem:[#allocation17 + $0xcc] sm:$0xf0] }
 0x39e   : > { %v4129_v52 = vpop.xlane.xlu2 %4128 }
 0x39f   : > { %v4130_v62 = vsub.f32 %v4124_v8, %v4129_v52  ;;  %v7244_v52 = vld [vmem:[#allocation17 + $0x1c0] sm:$0xf] }
 0x3a1   : > { %v9187_v54 = vpop.eup %8202  ;;  %v4131_v48 = vmul.f32 1.442695, %v4130_v62 }
 0x3a2   : > { %v3956_v28 = vsel %vm3711_vm1, %v9187_v54, 0.0  ;;  %v8205_v57 = vpop.eup %8204 }
 0x3a3   : > { %3957 = vadd.xlane.f32.xlu2 %v3956_v28  ;;  %3719 = vadd.xlane.f32.xlu1 %v3718_v56  ;;  %v3840_v61 = vsel %vm3711_vm1, %v8205_v57, 0.0  ;;  %8206 = vpow2.f32 %v4131_v48  ;;  %v7228_v48 = vld [vmem:[#allocation17 + $0x1a0] sm:$0xf] }
 0x3a6   : > { %v3786_v60 = vpop.permute.xlu2 %3785 }
 0x3a7   : > { %3798 = vmatpush.bf16.msra.mxu3 %v3786_v60  ;;  %v7100_v60 = vld [vmem:[#allocation17 + $0xa0] sm:$0xf] }
 0x3a9   : > { %v8207_v7 = vpop.eup %8206 }
 0x3aa   : > { %v4133_v3 = vsel %vm3711_vm1, %v8207_v7, 0.0 }
 0x3ab   : > { %3841 = vadd.xlane.f32.xlu1 %v3840_v61 }
 0x3ae   : > { %v4024_v11 = vpop.permute.xlu2 %4023 }
 0x3b6   : > { %v4140_v19 = vpop.permute.xlu2 %4139 }
 0x3bb   : > { %4134 = vadd.xlane.f32.xlu0 %v4133_v3 }
 0x3e0   : > { %v3781_v16 = vpop.xlane.xlu0 %3780 }
 0x3e1   : > { %8208 = vrcp.f32 %v3781_v16  ;;  %v7084_v16 = vld [vmem:[#allocation17 + $0x80] sm:$0xf] }
 0x3e7   : > { %v8209_v44 = vpop.eup %8208 }
 0x3e8   : > { %v3783_v4 = vmul.f32 %v8209_v44, %v8195_v42  ;;  %v7939_v44 = vld [vmem:[#allocation17 + $0x8c] sm:$0xf0] }
 0x3ea   : > { %v3784_v9 = vpack.c.bf16 %v3783_v4, %v3783_v4  ;;  %v7212_v4 = vld [vmem:[#allocation17 + $0x180] sm:$0xf] }
 0x3ec   : > { %7005 = vmatmul.msk.bf16.vlgmr.msra.gmra.mxu3 %vm3711_vm1, %v3784_v9  ;;  %v7085_v9 = vor.u32 %v7939_v44, %v7084_v16  ;;  %v7070_v16 = vld [vmem:[#allocation17 + $0x70] sm:$0xf0] }
 0x3f0   : > { %v3898_v10 = vpop.xlane.xlu0 %3897 }
 0x3f1   : > { %8210 = vrcp.f32 %v3898_v10  ;;  %v7971_v10 = vld [vmem:[#allocation17 + $0x18c] sm:$0xf0] }
 0x3f7   : > { %v8211_v53 = vpop.eup %8210 }
 0x3f8   : > { %v3900_v12 = vmul.f32 %v8211_v53, %v8197_v20 }
 0x3fa   : > { %v3901_v17 = vpack.c.bf16 %v3900_v12, %v3900_v12  ;;  %v7068_v12 = vld [vmem:[#allocation17 + $0x60] sm:$0xf] }
 0x403   : > { %v3903_v13 = vpop.permute.xlu0 %3902 }
 0x404   : > { %3915 = vmatpush.bf16.msrb.mxu3 %v3903_v13  ;;  %v7935_v13 = vld [vmem:[#allocation17 + $0x6c] sm:$0xf0] }
 0x406   : > { %v4019_v14 = vpop.xlane.xlu1 %4018 }
 0x407   : > { %7009 = vmatmul.msk.bf16.vlgmr.msrb.gmra.mxu3 %vm3711_vm1, %v3901_v17  ;;  %8212 = vrcp.f32 %v4019_v14  ;;  %v7069_v14 = vor.u32 %v7935_v13, %v7068_v12  ;;  %v7929_v12 = vld [vmem:[#allocation17 + $0x44] sm:$0xf] }
 0x408   : > { %4036 = vmatpush.bf16.msra.mxu3 %v4024_v11  ;;  %v7213_v11 = vor.u32 %v7971_v10, %v7212_v4 }
 0x40c   : > { %4152 = vmatpush.bf16.msrb.mxu3 %v4140_v19  ;;  %v7196_v19 = vld [vmem:[#allocation17 + $0x160] sm:$0xf] }
 0x40d   : > { %v8213_v59 = vpop.eup %8212 }
 0x40e   : > { %v4073_v23 = vpop.xlane.xlu1 %4072  ;;  %v4021_v31 = vmul.f32 %v8213_v59, %v8199_v33 }
 0x40f   : > { %v4074_v35 = vsub.f32 %v4068_v47, %v4073_v23  ;;  %v7133_v47 = vor.u32 %v7951_v45, %v7132_v43  ;;  %v7967_v23 = vld [vmem:[#allocation17 + $0x16c] sm:$0xf0]  ;;  %v7372_v43 = vld [vmem:[#allocation17 + $0x2c0] sm:$0xf] }
 0x410   : > { %v4022_v18 = vpack.c.bf16 %v4021_v31, %v4021_v31  ;;  %v7197_v59 = vor.u32 %v7967_v23, %v7196_v19  ;;  %v7180_v31 = vld [vmem:[#allocation17 + $0x140] sm:$0xf] }
 0x411   : > { %v4075_v25 = vmul.f32 1.442695, %v4074_v35  ;;  %4949 = vmatpush.bf16.msra.mxu0 %v7133_v47  ;;  %v7052_v35 = vld [vmem:[#allocation17 + $0x40] sm:$0xf] }
 0x413   : > { %8214 = vpow2.f32 %v4075_v25  ;;  %v7931_v25 = vld [vmem:[#allocation17 + $0x4c] sm:$0xf0] }
 0x416   : > { %v3720_v29 = vpop.xlane.xlu1 %3719  ;;  %v3958_v42 = vpop.xlane.xlu2 %3957 }
 0x417   : > { %8216 = vrcp.f32 %v3720_v29  ;;  %7013 = vmatmul.msk.bf16.vlgmr.msra.gmra.mxu3 %vm3711_vm1, %v4022_v18  ;;  %v7963_v29 = vld [vmem:[#allocation17 + $0x14c] sm:$0xf0]  ;;  %v7053_v18 = vor.u32 %v7931_v25, %v7052_v35  ;;  %v7356_v35 = vld [vmem:[#allocation17 + $0x2a0] sm:$0xf]  ;;  %v7961_v25 = vld [vmem:[#allocation17 + $0x144] sm:$0xf] }
 0x419   : > { %v8215_v1 = vpop.eup %8214 }
 0x41a   : > { %v4077_v30 = vsel %vm3711_vm1, %v8215_v1, 0.0 }
 0x41b   : > { %4078 = vadd.xlane.f32.xlu1 %v4077_v30  ;;  %v7927_v30 = vld [vmem:[#allocation17 + $0x2c] sm:$0xf0] }
 0x41d   : > { %v8217_v8 = vpop.eup %8216 }
 0x41e   : > { %v3722_v22 = vmul.f32 %v8217_v8, %v8201_v51  ;;  %v3842_v32 = vpop.xlane.xlu1 %3841  ;;  %v7979_v51 = vld [vmem:[#allocation17 + $0x1cc] sm:$0xf0]  ;;  %v7181_v8 = vor.u32 %v7963_v29, %v7180_v31  ;;  %v7182_v29 = vld [vmem:[#allocation17 + $0x150] sm:$0xf0] }
 0x41f   : > { %8218 = vrcp.f32 %v3842_v32  ;;  %v7245_v28 = vor.u32 %v7979_v51, %v7244_v52  ;;  %v7959_v32 = vld [vmem:[#allocation17 + $0x12c] sm:$0xf0] }
 0x420   : > { %v3723_v24 = vpack.c.bf16 %v3722_v22, %v3722_v22 }
 0x422   : > { %7003 = vmatmul.msk.bf16.vlgmr.msra.gmra.mxu1 %vm3711_vm1, %v3723_v24  ;;  %v7164_v24 = vld [vmem:[#allocation17 + $0x120] sm:$0xf] }
 0x423   : > { %3978 = vmatpush.bf16.msra.mxu1 %v9162_v5 }
 0x425   : > { %v8219_v39 = vpop.eup %8218 }
 0x426   : > { %v3844_v55 = vmul.f32 %v8219_v39, %v8205_v57  ;;  %v7943_v57 = vld [vmem:[#allocation17 + $0xac] sm:$0xf0]  ;;  %v7020_v39 = vld [vmem:[#allocation17] sm:$0xf] }
 0x427   : > { %v7101_v61 = vor.u32 %v7943_v57, %v7100_v60  ;;  %v7937_v60 = vld [vmem:[#allocation17 + $0x84] sm:$0xf]  ;;  %v7086_v57 = vld [vmem:[#allocation17 + $0x90] sm:$0xf0] }
 0x428   : > { %v3845_v34 = vpack.c.bf16 %v3844_v55, %v3844_v55  ;;  %v7923_v55 = vld [vmem:[#allocation17 + $0xc] sm:$0xf0] }
 0x42e   : > { %v4135_v37 = vpop.xlane.xlu0 %4134 }
 0x42f   : > { %8220 = vrcp.f32 %v4135_v37 }
 0x430   : > { %8222 = vrcp.f32 %v3958_v42  ;;  %v7949_v42 = vld [vmem:[#allocation17 + $0xe4] sm:$0xf] }
 0x432   : > { %7007 = vmatmul.msk.bf16.vlgmr.msrb.gmra.mxu1 %vm3711_vm1, %v3845_v34  ;;  %v7134_v34 = vld [vmem:[#allocation17 + $0xf0] sm:$0xf0] }
 0x433   : > { %4097 = vmatpush.bf16.msrb.mxu1 %v9164_v2 }
 0x435   : > { %v8221_v58 = vpop.eup %8220 }
 0x436   : > { %v4137_v0 = vmul.f32 %v8221_v58, %v8207_v7  ;;  %v8223_v20 = vpop.eup %8222  ;;  %v7975_v7 = vld [vmem:[#allocation17 + $0x1ac] sm:$0xf0]  ;;  %v7165_v58 = vor.u32 %v7959_v32, %v7164_v24  ;;  %v7957_v32 = vld [vmem:[#allocation17 + $0x124] sm:$0xf] }
 0x437   : > { %v3960_v38 = vmul.f32 %v8223_v20, %v9187_v54  ;;  %v7117_v54 = vor.u32 %v7947_v26, %v7116_v49  ;;  %v7229_v3 = vor.u32 %v7975_v7, %v7228_v48  ;;  %v7021_v20 = vor.u32 %v7923_v55, %v7020_v39  ;;  %v7977_v49 = vld [vmem:[#allocation17 + $0x1c4] sm:$0xf]  ;;  %v7102_v26 = vld [vmem:[#allocation17 + $0xb0] sm:$0xf0]  ;;  %v8003_v24 = vld [vmem:[#allocation17 + $0x28c] sm:$0xf0] }
 0x438   : > { %v4138_v27 = vpack.c.bf16 %v4137_v0, %v4137_v0  ;;  %v7148_v0 = vld [vmem:[#allocation17 + $0x100] sm:$0xf]  ;;  %v7969_v48 = vld [vmem:[#allocation17 + $0x184] sm:$0xf]  ;;  %v7214_v7 = vld [vmem:[#allocation17 + $0x190] sm:$0xf0] }
 0x439   : > { %v3961_v5 = vpack.c.bf16 %v3960_v38, %v3960_v38  ;;  %4950 = vmatpush.bf16.msra.mxu0 %v7117_v54  ;;  %v7388_v38 = vld [vmem:[#allocation17 + $0x2e0] sm:$0xf]  ;;  %v7166_v55 = vld [vmem:[#allocation17 + $0x130] sm:$0xf0] }
 0x43a   : > { %7017 = vmatmul.msk.bf16.vlgmr.msrb.gmra.mxu3 %vm3711_vm1, %v4138_v27  ;;  %v7955_v27 = vld [vmem:[#allocation17 + $0x10c] sm:$0xf0] }
 0x43b   : > { %v7149_v45 = vor.u32 %v7955_v27, %v7148_v0  ;;  %v7324_v0 = vld [vmem:[#allocation17 + $0x260] sm:$0xf]  ;;  %v7953_v27 = vld [vmem:[#allocation17 + $0x104] sm:$0xf] }
 0x43d   : > { %4951 = vmatpush.bf16.msra.mxu0 %v7101_v61 }
 0x441   : > { %4952 = vmatpush.bf16.msra.mxu0 %v7085_v9  ;;  %v7217_v9 = vor.u32 %v7969_v48, %v7214_v7  ;;  %v8043_v48 = vld [vmem:[#allocation17 + $0x3cc] sm:$0xf0] }
 0x442   : > { %7011 = vmatmul.msk.bf16.vlgmr.msra.gmra.mxu1 %vm3711_vm1, %v3961_v5  ;;  %v7137_v5 = vor.u32 %v7949_v42, %v7134_v34  ;;  %v7921_v42 = vld [vmem:[#allocation17 + $0x4] sm:$0xf]  ;;  %v7022_v34 = vld [vmem:[#allocation17 + $0x10] sm:$0xf0] }
 0x443   : > { %4962 = vmatpush.bf16.msra.mxu1 %v7261_v50  ;;  %v7941_v50 = vld [vmem:[#allocation17 + $0xa4] sm:$0xf] }
 0x444   : > { %v7105_v54 = vor.u32 %v7941_v50, %v7102_v26  ;;  %v7374_v50 = vld [vmem:[#allocation17 + $0x2d0] sm:$0xf0] }
 0x445   : > { %4953 = vmatpush.bf16.msra.mxu0 %v7069_v14  ;;  %v7054_v14 = vld [vmem:[#allocation17 + $0x50] sm:$0xf0] }
 0x446   : > { %v7057_v23 = vor.u32 %v7929_v12, %v7054_v14  ;;  %v7984_v14 = vld [vmem:[#allocation17 + $0x1f4] sm:$0xf0] }
 0x447   : > { %4963 = vmatpush.bf16.msra.mxu1 %v7245_v28  ;;  %v7973_v28 = vld [vmem:[#allocation17 + $0x1a4] sm:$0xf] }
 0x449   : > { %4954 = vmatpush.bf16.msra.mxu0 %v7053_v18  ;;  %v7925_v18 = vld [vmem:[#allocation17 + $0x24] sm:$0xf] }
 0x44b   : > { %4964 = vmatpush.bf16.msra.mxu1 %v7229_v3  ;;  %v7933_v3 = vld [vmem:[#allocation17 + $0x64] sm:$0xf] }
 0x44c   : > { %v7073_v10 = vor.u32 %v7933_v3, %v7070_v16  ;;  %v8001_v3 = vld [vmem:[#allocation17 + $0x284] sm:$0xf]  ;;  %v7140_v16 = vld [vmem:[#allocation17 + $0xe8] sm:$0xf] }
 0x44f   : > { %4965 = vmatpush.bf16.msra.mxu1 %v7213_v11  ;;  %v7965_v11 = vld [vmem:[#allocation17 + $0x164] sm:$0xf] }
 0x453   : > { %4966 = vmatpush.bf16.msra.mxu1 %v7197_v59  ;;  %v8007_v59 = vld [vmem:[#allocation17 + $0x2ac] sm:$0xf0] }
 0x454   : > { %v7357_v31 = vor.u32 %v8007_v59, %v7356_v35  ;;  %v7948_v35 = vld [vmem:[#allocation17 + $0xd4] sm:$0xf0]  ;;  %v7997_v59 = vld [vmem:[#allocation17 + $0x264] sm:$0xf] }
 0x457   : > { %4967 = vmatpush.bf16.msra.mxu1 %v7181_v8 }
 0x45b   : > { %4968 = vmatpush.bf16.msra.mxu1 %v7165_v58  ;;  %v7025_v58 = vor.u32 %v7921_v42, %v7022_v34  ;;  %v7944_v42 = vld [vmem:[#allocation17 + $0xb4] sm:$0xf0]  ;;  %v7993_v34 = vld [vmem:[#allocation17 + $0x244] sm:$0xf] }
 0x45f   : > { %4969 = vmatpush.bf16.msra.mxu1 %v7149_v45  ;;  %v7276_v45 = vld [vmem:[#allocation17 + $0x200] sm:$0xf] }
 0x46f   : > { %v3800_v40 = vpop.f32.mrf.mxu3 }
 0x470   : > { %3805 = vrot.lane.b32.xlu0 %v3800_v40, %s8664_s27  ;;  %v7981_v40 = vld [vmem:[#allocation17 + $0x1e4] sm:$0xf] }
 0x477   : > { %v3802_v41 = vpop.f32.mrf.mxu3 }
 0x478   : > { %v7262_v41 = vld [vmem:[#allocation17 + $0x1f0] sm:$0xf0] }
 0x479   : > { %v7265_v47 = vor.u32 %v7981_v40, %v7262_v41  ;;  %v7308_v41 = vld [vmem:[#allocation17 + $0x240] sm:$0xf] }
 0x48a   : > { %v3917_v63 = vpop.f32.mrf.mxu3 }
 0x48b   : > { %3922 = vrot.lane.b32.xlu2 %v3917_v63, %s8664_s27  ;;  %v8015_v63 = vld [vmem:[#allocation17 + $0x2ec] sm:$0xf0] }
 0x48e   : > { %v4079_v15 = vpop.xlane.xlu1 %4078 }
 0x48f   : > { %8224 = vrcp.f32 %v4079_v15  ;;  %v7945_v15 = vld [vmem:[#allocation17 + $0xc4] sm:$0xf] }
 0x492   : > { %v3919_v2 = vpop.f32.mrf.mxu3 }
 0x493   : > { %v7118_v2 = vld [vmem:[#allocation17 + $0xd0] sm:$0xf0] }
 0x494   : > { %v7121_v36 = vor.u32 %v7945_v15, %v7118_v2  ;;  %v7292_v2 = vld [vmem:[#allocation17 + $0x220] sm:$0xf] }
 0x495   : > { %v8225_v33 = vpop.eup %8224 }
 0x496   : > { %v4081_v46 = vmul.f32 %v8225_v33, %v8215_v1  ;;  %v7036_v1 = vld [vmem:[#allocation17 + $0x20] sm:$0xf]  ;;  %v7389_v33 = vor.u32 %v8015_v63, %v7388_v38  ;;  %v7995_v63 = vld [vmem:[#allocation17 + $0x24c] sm:$0xf0] }
 0x497   : > { %v7037_v22 = vor.u32 %v7927_v30, %v7036_v1  ;;  %v7038_v1 = vld [vmem:[#allocation17 + $0x30] sm:$0xf0]  ;;  %v7185_v30 = vor.u32 %v7961_v25, %v7182_v29  ;;  %v7309_v15 = vor.u32 %v7995_v63, %v7308_v41  ;;  %v7976_v41 = vld [vmem:[#allocation17 + $0x1b4] sm:$0xf0]  ;;  %v7092_v63 = vld [vmem:[#allocation17 + $0x88] sm:$0xf] }
 0x498   : > { %v4082_v21 = vpack.c.bf16 %v4081_v46, %v4081_v46  ;;  %v8011_v46 = vld [vmem:[#allocation17 + $0x2cc] sm:$0xf0]  ;;  %4975 = vmatpush.bf16.msra.mxu2 %v7389_v33  ;;  %v7041_v8 = vor.u32 %v7925_v18, %v7038_v1  ;;  %v7326_v25 = vld [vmem:[#allocation17 + $0x270] sm:$0xf0]  ;;  %v7468_v1 = vld [vmem:[#allocation17 + $0x380] sm:$0xf] }
 0x499   : > { %4955 = vmatpush.bf16.msra.mxu0 %v7037_v22  ;;  %v7373_v6 = vor.u32 %v8011_v46, %v7372_v43  ;;  %v7340_v22 = vld [vmem:[#allocation17 + $0x280] sm:$0xf]  ;;  %v7991_v33 = vld [vmem:[#allocation17 + $0x22c] sm:$0xf0] }
 0x49a   : > { %7015 = vmatmul.msk.bf16.vlgmr.msrb.gmra.mxu1 %vm3711_vm1, %v4082_v21  ;;  %v4038_v56 = vpop.f32.mrf.mxu3  ;;  %v7246_v21 = vld [vmem:[#allocation17 + $0x1d0] sm:$0xf0]  ;;  %v7341_v39 = vor.u32 %v8003_v24, %v7340_v22  ;;  %v7293_v43 = vor.u32 %v7991_v33, %v7292_v2  ;;  %v7987_v46 = vld [vmem:[#allocation17 + $0x20c] sm:$0xf0]  ;;  %v7252_v24 = vld [vmem:[#allocation17 + $0x1c8] sm:$0xf] }
 0x49b   : > { %4043 = vrot.lane.b32.xlu1 %v4038_v56, %s8664_s27  ;;  %5014 = vmatpush.bf16.msrb.mxu1 %v7265_v47  ;;  %v7249_v51 = vor.u32 %v7977_v49, %v7246_v21  ;;  %v7230_v56 = vld [vmem:[#allocation17 + $0x1b0] sm:$0xf0]  ;;  %v8013_v47 = vld [vmem:[#allocation17 + $0x2e4] sm:$0xf] }
 0x49c   : > { %4976 = vmatpush.bf16.msra.mxu2 %v7373_v6  ;;  %v7233_v61 = vor.u32 %v7973_v28, %v7230_v56  ;;  %v7277_v6 = vor.u32 %v7987_v46, %v7276_v45  ;;  %v8009_v21 = vld [vmem:[#allocation17 + $0x2c4] sm:$0xf]  ;;  %v7294_v33 = vld [vmem:[#allocation17 + $0x230] sm:$0xf0]  ;;  %v7436_v46 = vld [vmem:[#allocation17 + $0x340] sm:$0xf] }
 0x49d   : > { %4956 = vmatpush.bf16.msra.mxu0 %v7021_v20  ;;  %v7999_v20 = vld [vmem:[#allocation17 + $0x26c] sm:$0xf0]  ;;  %v7377_v26 = vor.u32 %v8009_v21, %v7374_v50  ;;  %v8005_v56 = vld [vmem:[#allocation17 + $0x2a4] sm:$0xf]  ;;  %v7076_v21 = vld [vmem:[#allocation17 + $0x68] sm:$0xf] }
 0x49e   : > { %v7325_v38 = vor.u32 %v7999_v20, %v7324_v0  ;;  %v7452_v0 = vld [vmem:[#allocation17 + $0x360] sm:$0xf]  ;;  %v8031_v20 = vld [vmem:[#allocation17 + $0x36c] sm:$0xf0]  ;;  %v7989_v2 = vld [vmem:[#allocation17 + $0x224] sm:$0xf] }
 0x49f   : > { %v3742_v62 = vpop.f32.mrf.mxu1  ;;  %5015 = vmatpush.bf16.msrb.mxu1 %v7249_v51  ;;  %v8047_v51 = vld [vmem:[#allocation17 + $0x3ec] sm:$0xf0] }
 0x4a0   : > { %3746 = vst.msk [vmem:[#allocation2] sm:$0xff] %vm3691_vm0, %v3742_v62  ;;  %v7089_v62 = vor.u32 %v7937_v60, %v7086_v57  ;;  %4977 = vmatpush.bf16.msra.mxu2 %v7357_v31  ;;  %v7358_v60 = vld [vmem:[#allocation17 + $0x2b0] sm:$0xf0]  ;;  %v7329_v31 = vor.u32 %v7997_v59, %v7326_v25  ;;  %v7172_v59 = vld [vmem:[#allocation17 + $0x128] sm:$0xf] }
 0x4a1   : > { %5001 = vmatpush.bf16.msrb.mxu0 %v7137_v5  ;;  %v7150_v5 = vld [vmem:[#allocation17 + $0x110] sm:$0xf0]  ;;  %v7361_v57 = vor.u32 %v8005_v56, %v7358_v60  ;;  %v7420_v56 = vld [vmem:[#allocation17 + $0x320] sm:$0xf]  ;;  %v8023_v60 = vld [vmem:[#allocation17 + $0x32c] sm:$0xf0] }
 0x4a2   : > { %v4040_v53 = vpop.f32.mrf.mxu3  ;;  %v7153_v40 = vor.u32 %v7953_v27, %v7150_v5 }
 0x4a3   : > { %5016 = vmatpush.bf16.msrb.mxu1 %v7233_v61  ;;  %v7198_v53 = vld [vmem:[#allocation17 + $0x170] sm:$0xf0] }
 0x4a4   : > { %v7201_v13 = vor.u32 %v7965_v11, %v7198_v53  ;;  %4978 = vmatpush.bf16.msra.mxu2 %v7341_v39  ;;  %v7484_v11 = vld [vmem:[#allocation17 + $0x3a0] sm:$0xf]  ;;  %v8039_v53 = vld [vmem:[#allocation17 + $0x3ac] sm:$0xf0]  ;;  %v7108_v39 = vld [vmem:[#allocation17 + $0xa8] sm:$0xf] }
 0x4a5   : > { %5002 = vmatpush.bf16.msrb.mxu0 %v7121_v36  ;;  %v7390_v36 = vld [vmem:[#allocation17 + $0x2f0] sm:$0xf0]  ;;  %v7109_v5 = vor.u32 %v7944_v42, %v7108_v39 }
 0x4a6   : > { %v7393_v49 = vor.u32 %v8013_v47, %v7390_v36  ;;  %v8027_v47 = vld [vmem:[#allocation17 + $0x34c] sm:$0xf0]  ;;  %v7220_v36 = vld [vmem:[#allocation17 + $0x188] sm:$0xf] }
 0x4a7   : > { %v3744_v17 = vpop.f32.mrf.mxu1  ;;  %5017 = vmatpush.bf16.msrb.mxu1 %v7217_v9  ;;  %v7437_v50 = vor.u32 %v8027_v47, %v7436_v46  ;;  %v7942_v47 = vld [vmem:[#allocation17 + $0xac] sm:$0xf] }
 0x4a8   : > { %4979 = vmatpush.bf16.msra.mxu2 %v7325_v38  ;;  %v7453_v38 = vor.u32 %v8031_v20, %v7452_v0  ;;  %v7982_v20 = vld [vmem:[#allocation17 + $0x1ec] sm:$0xf] }
 0x4a9   : > { %5003 = vmatpush.bf16.msrb.mxu0 %v7105_v54 }
 0x4ab   : > { %5018 = vmatpush.bf16.msrb.mxu1 %v7201_v13 }
 0x4ac   : > { %4980 = vmatpush.bf16.msra.mxu2 %v7309_v15  ;;  %v7940_v15 = vld [vmem:[#allocation17 + $0x94] sm:$0xf0] }
 0x4ad   : > { %5004 = vmatpush.bf16.msrb.mxu0 %v7089_v62  ;;  %v7500_v62 = vld [vmem:[#allocation17 + $0x3c0] sm:$0xf] }
 0x4ae   : > { %v7501_v7 = vor.u32 %v8043_v48, %v7500_v62  ;;  %v7968_v62 = vld [vmem:[#allocation17 + $0x174] sm:$0xf0]  ;;  %v7421_v48 = vor.u32 %v8023_v60, %v7420_v56  ;;  %v7094_v56 = vld [vmem:[#allocation17 + $0x98] sm:$0xf0]  ;;  %v8025_v60 = vld [vmem:[#allocation17 + $0x344] sm:$0xf] }
 0x4af   : > { %v3862_v37 = vpop.f32.mrf.mxu1  ;;  %5019 = vmatpush.bf16.msrb.mxu1 %v7185_v30  ;;  %v8035_v30 = vld [vmem:[#allocation17 + $0x38c] sm:$0xf0] }
 0x4b0   : > { %3866 = vst.msk [vmem:[#allocation2 + $0x8] sm:$0xff] %vm3691_vm0, %v3862_v37  ;;  %v7169_v37 = vor.u32 %v7957_v32, %v7166_v55  ;;  %4981 = vmatpush.bf16.msra.mxu2 %v7293_v43  ;;  %v7980_v32 = vld [vmem:[#allocation17 + $0x1d4] sm:$0xf0]  ;;  %v7469_v55 = vor.u32 %v8035_v30, %v7468_v1  ;;  %v7297_v43 = vor.u32 %v7989_v2, %v7294_v33  ;;  %v7028_v1 = vld [vmem:[#allocation17 + $0x8] sm:$0xf] }
 0x4b1   : > { %5005 = vmatpush.bf16.msrb.mxu0 %v7073_v10  ;;  %v7268_v10 = vld [vmem:[#allocation17 + $0x1e8] sm:$0xf]  ;;  %v7253_v27 = vor.u32 %v7980_v32, %v7252_v24  ;;  %v7924_v30 = vld [vmem:[#allocation17 + $0x14] sm:$0xf0]  ;;  %v7950_v24 = vld [vmem:[#allocation17 + $0xec] sm:$0xf] }
 0x4b2   : > { %v7269_v18 = vor.u32 %v7984_v14, %v7268_v10  ;;  %v7044_v14 = vld [vmem:[#allocation17 + $0x28] sm:$0xf]  ;;  %v7142_v32 = vld [vmem:[#allocation17 + $0xf8] sm:$0xf0]  ;;  %v7029_v42 = vor.u32 %v7924_v30, %v7028_v1  ;;  %v7470_v2 = vld [vmem:[#allocation17 + $0x390] sm:$0xf0] }
 0x4b3   : > { %5020 = vmatpush.bf16.msrb.mxu1 %v7169_v37  ;;  %v7310_v37 = vld [vmem:[#allocation17 + $0x250] sm:$0xf0]  ;;  %v7145_v0 = vor.u32 %v7950_v24, %v7142_v32  ;;  %v7062_v1 = vld [vmem:[#allocation17 + $0x58] sm:$0xf0]  ;;  %v8008_v32 = vld [vmem:[#allocation17 + $0x2b4] sm:$0xf0] }
 0x4b4   : > { %4982 = vmatpush.bf16.msra.mxu2 %v7277_v6  ;;  %v7093_v6 = vor.u32 %v7940_v15, %v7092_v63  ;;  %v8033_v15 = vld [vmem:[#allocation17 + $0x384] sm:$0xf] }
 0x4b5   : > { %5006 = vmatpush.bf16.msrb.mxu0 %v7057_v23  ;;  %v7473_v46 = vor.u32 %v8033_v15, %v7470_v2  ;;  %v7958_v15 = vld [vmem:[#allocation17 + $0x12c] sm:$0xf]  ;;  %v7174_v2 = vld [vmem:[#allocation17 + $0x138] sm:$0xf0] }
 0x4b7   : > { %v3864_v52 = vpop.f32.mrf.mxu1  ;;  %5021 = vmatpush.bf16.msrb.mxu1 %v7153_v40  ;;  %v7236_v40 = vld [vmem:[#allocation17 + $0x1a8] sm:$0xf] }
 0x4b8   : > { %5027 = vmatpush.bf16.msrb.mxu2 %v7393_v49  ;;  %v7516_v52 = vld [vmem:[#allocation17 + $0x3e0] sm:$0xf]  ;;  %v7237_v45 = vor.u32 %v7976_v41, %v7236_v40  ;;  %v7972_v49 = vld [vmem:[#allocation17 + $0x194] sm:$0xf0]  ;;  %v7126_v40 = vld [vmem:[#allocation17 + $0xd8] sm:$0xf0] }
 0x4b9   : > { %5007 = vmatpush.bf16.msrb.mxu0 %v7041_v8  ;;  %v7517_v28 = vor.u32 %v8047_v51, %v7516_v52  ;;  %v7985_v52 = vld [vmem:[#allocation17 + $0x204] sm:$0xf]  ;;  %v7278_v51 = vld [vmem:[#allocation17 + $0x210] sm:$0xf0] }
 0x4bb   : > { %4988 = vmatpush.bf16.msra.mxu3 %v7517_v28  ;;  %v7221_v28 = vor.u32 %v7972_v49, %v7220_v36  ;;  %v8029_v49 = vld [vmem:[#allocation17 + $0x364] sm:$0xf] }
 0x4bc   : > { %5028 = vmatpush.bf16.msrb.mxu2 %v7377_v26  ;;  %v7936_v26 = vld [vmem:[#allocation17 + $0x74] sm:$0xf0] }
 0x4bd   : > { %v4154_v4 = vpop.f32.mrf.mxu3  ;;  %5008 = vmatpush.bf16.msrb.mxu0 %v7025_v58  ;;  %v7313_v58 = vor.u32 %v7993_v34, %v7310_v37  ;;  %v7956_v34 = vld [vmem:[#allocation17 + $0x114] sm:$0xf0]  ;;  %v8037_v37 = vld [vmem:[#allocation17 + $0x3a4] sm:$0xf] }
 0x4be   : > { %4159 = vrot.lane.b32.xlu1 %v4154_v4, %s8664_s27  ;;  %v7342_v4 = vld [vmem:[#allocation17 + $0x290] sm:$0xf0] }
 0x4bf   : > { %v3980_v44 = vpop.f32.mrf.mxu1  ;;  %4989 = vmatpush.bf16.msra.mxu3 %v7501_v7  ;;  %v7345_v9 = vor.u32 %v8001_v3, %v7342_v4  ;;  %v7060_v7 = vld [vmem:[#allocation17 + $0x48] sm:$0xf]  ;;  %v7932_v3 = vld [vmem:[#allocation17 + $0x54] sm:$0xf0]  ;;  %v7404_v4 = vld [vmem:[#allocation17 + $0x300] sm:$0xf] }
 0x4c0   : > { %3984 = vst.msk [vmem:[#allocation2 + $0x10] sm:$0xff] %vm3691_vm0, %v3980_v44  ;;  %5029 = vmatpush.bf16.msrb.mxu2 %v7361_v57  ;;  %v7952_v44 = vld [vmem:[#allocation17 + $0xf4] sm:$0xf0]  ;;  %v7077_v57 = vor.u32 %v7936_v26, %v7076_v21  ;;  %v7061_v10 = vor.u32 %v7932_v3, %v7060_v7  ;;  %v7454_v21 = vld [vmem:[#allocation17 + $0x370] sm:$0xf0] }
 0x4c1   : > { %v7141_v13 = vor.u32 %v7952_v44, %v7140_v16  ;;  %v7188_v44 = vld [vmem:[#allocation17 + $0x148] sm:$0xf]  ;;  %v7457_v26 = vor.u32 %v8029_v49, %v7454_v21  ;;  %v7954_v49 = vld [vmem:[#allocation17 + $0x10c] sm:$0xf]  ;;  %v7158_v21 = vld [vmem:[#allocation17 + $0x118] sm:$0xf0] }
 0x4c4   : > { %5030 = vmatpush.bf16.msrb.mxu2 %v7345_v9  ;;  %v8019_v9 = vld [vmem:[#allocation17 + $0x30c] sm:$0xf0] }
 0x4c5   : > { %v4156_v19 = vpop.f32.mrf.mxu3 }
 0x4c6   : > { %v7485_v19 = vor.u32 %v8039_v53, %v7484_v11  ;;  %v7964_v11 = vld [vmem:[#allocation17 + $0x154] sm:$0xf0]  ;;  %v7405_v53 = vor.u32 %v8019_v9, %v7404_v4  ;;  %v7934_v4 = vld [vmem:[#allocation17 + $0x6c] sm:$0xf]  ;;  %v7078_v9 = vld [vmem:[#allocation17 + $0x78] sm:$0xf0] }
 0x4c7   : > { %v3982_v17 = vpop.f32.mrf.mxu1 }
 0x4c8   : > { %v7124_v17 = vld [vmem:[#allocation17 + $0xc8] sm:$0xf]  ;;  %4990 = vmatpush.bf16.msra.mxu3 %v7485_v19  ;;  %5031 = vmatpush.bf16.msrb.mxu2 %v7329_v31  ;;  %v7960_v31 = vld [vmem:[#allocation17 + $0x134] sm:$0xf0] }
 0x4c9   : > { %v7125_v22 = vor.u32 %v7948_v35, %v7124_v17  ;;  %v7928_v17 = vld [vmem:[#allocation17 + $0x34] sm:$0xf0]  ;;  %v7189_v35 = vor.u32 %v7964_v11, %v7188_v44  ;;  %v7173_v39 = vor.u32 %v7960_v31, %v7172_v59  ;;  %v7222_v44 = vld [vmem:[#allocation17 + $0x198] sm:$0xf0]  ;;  %v7081_v59 = vor.u32 %v7934_v4, %v7078_v9 }
 0x4ca   : > { %v7045_v25 = vor.u32 %v7928_v17, %v7044_v14  ;;  %v7206_v31 = vld [vmem:[#allocation17 + $0x178] sm:$0xf0]  ;;  %v8048_v9 = vld [vmem:[#allocation17 + $0x3f4] sm:$0xf0] }
 0x4cb   : > { %v7382_v4 = vld [vmem:[#allocation17 + $0x2d8] sm:$0xf0] }
 0x4cc   : > { %4991 = vmatpush.bf16.msra.mxu3 %v7469_v55  ;;  %5032 = vmatpush.bf16.msrb.mxu2 %v7313_v58  ;;  %v7156_v55 = vld [vmem:[#allocation17 + $0x108] sm:$0xf]  ;;  %v7486_v58 = vld [vmem:[#allocation17 + $0x3b0] sm:$0xf0] }
 0x4cd   : > { %v7157_v41 = vor.u32 %v7956_v34, %v7156_v55  ;;  %v7406_v55 = vld [vmem:[#allocation17 + $0x310] sm:$0xf0]  ;;  %v7962_v34 = vld [vmem:[#allocation17 + $0x14c] sm:$0xf] }
 0x4d0   : > { %4992 = vmatpush.bf16.msra.mxu3 %v7453_v38  ;;  %5033 = vmatpush.bf16.msrb.mxu2 %v7297_v43  ;;  %v7489_v38 = vor.u32 %v8037_v37, %v7486_v58  ;;  %v7978_v43 = vld [vmem:[#allocation17 + $0x1cc] sm:$0xf]  ;;  %v7190_v37 = vld [vmem:[#allocation17 + $0x158] sm:$0xf0] }
 0x4d4   : > { %4993 = vmatpush.bf16.msra.mxu3 %v7437_v50 }
 0x4d8   : > { %4994 = vmatpush.bf16.msra.mxu3 %v7421_v48  ;;  %v8016_v48 = vld [vmem:[#allocation17 + $0x2f4] sm:$0xf0] }
 0x4dc   : > { %4995 = vmatpush.bf16.msra.mxu3 %v7405_v53 }
 0x4e2   : > { %v3806_v54 = vpop.permute.xlu0 %3805 }
 0x4e3   : > { %3809 = vst.msk [vmem:[#allocation2] sm:$0xff] %vm3808_vm2, %v3806_v54  ;;  %v7281_v54 = vor.u32 %v7985_v52, %v7278_v51  ;;  %v7974_v51 = vld [vmem:[#allocation17 + $0x1ac] sm:$0xf] }
 0x4e5   : > { %v3923_v61 = vpop.permute.xlu2 %3922  ;;  %5034 = vmatpush.bf16.msrb.mxu2 %v7281_v54  ;;  %v7238_v54 = vld [vmem:[#allocation17 + $0x1b8] sm:$0xf0] }
 0x4e6   : > { %3925 = vst.msk [vmem:[#allocation2 + $0x8] sm:$0xff] %vm3808_vm2, %v3923_v61  ;;  %v7204_v61 = vld [vmem:[#allocation17 + $0x168] sm:$0xf] }
 0x4e7   : > { %v7205_v16 = vor.u32 %v7968_v62, %v7204_v61  ;;  %v7241_v61 = vor.u32 %v7974_v51, %v7238_v54  ;;  %v7396_v62 = vld [vmem:[#allocation17 + $0x2e8] sm:$0xf]  ;;  %v7996_v51 = vld [vmem:[#allocation17 + $0x254] sm:$0xf0] }
 0x4e8   : > { %v7397_v53 = vor.u32 %v8016_v48, %v7396_v62  ;;  %v8014_v62 = vld [vmem:[#allocation17 + $0x2ec] sm:$0xf]  ;;  %v7398_v48 = vld [vmem:[#allocation17 + $0x2f8] sm:$0xf0] }
 0x4ea   : > { %v4163_v12 = vld [vmem:[#allocation2] sm:$0xff] }
 0x4eb   : > { %v9215_v23 = vpack.c.bf16 %v4163_v12, %v4163_v12  ;;  %v8045_v12 = vld [vmem:[#allocation17 + $0x3e4] sm:$0xf] }
 0x4ed   : > { %4957 = vmatmul.bf16.vlgmr.msra.gmra.mxu0 %v9215_v23  ;;  %v4164_v29 = vld [vmem:[#allocation2 + $0x8] sm:$0xff] }
 0x4ee   : > { %5053 = vmatpush.bf16.msra.mxu0 %v7141_v13  ;;  %v9218_v8 = vpack.c.bf16 %v4164_v29, %v4164_v29  ;;  %v7518_v13 = vld [vmem:[#allocation17 + $0x3f0] sm:$0xf0]  ;;  %v8041_v29 = vld [vmem:[#allocation17 + $0x3c4] sm:$0xf] }
 0x4ef   : > { %v7521_v19 = vor.u32 %v8045_v12, %v7518_v13  ;;  %v7380_v12 = vld [vmem:[#allocation17 + $0x2c8] sm:$0xf]  ;;  %v8012_v13 = vld [vmem:[#allocation17 + $0x2d4] sm:$0xf0] }
 0x4f0   : > { %4970 = vmatmul.bf16.vlgmr.msra.gmra.mxu1 %v9218_v8  ;;  %v7381_v30 = vor.u32 %v8012_v13, %v7380_v12 }
 0x4f1   : > { %5066 = vmatpush.bf16.msra.mxu1 %v7269_v18  ;;  %5040 = vmatpush.bf16.msrb.mxu3 %v7521_v19  ;;  %v7502_v18 = vld [vmem:[#allocation17 + $0x3d0] sm:$0xf0]  ;;  %v8021_v19 = vld [vmem:[#allocation17 + $0x324] sm:$0xf] }
 0x4f2   : > { %5054 = vmatpush.bf16.msra.mxu0 %v7125_v22  ;;  %v7505_v22 = vor.u32 %v8041_v29, %v7502_v18  ;;  %v7930_v18 = vld [vmem:[#allocation17 + $0x4c] sm:$0xf] }
 0x4f5   : > { %5067 = vmatpush.bf16.msra.mxu1 %v7253_v27  ;;  %5041 = vmatpush.bf16.msrb.mxu3 %v7505_v22  ;;  %v7270_v27 = vld [vmem:[#allocation17 + $0x1f8] sm:$0xf0]  ;;  %v7364_v22 = vld [vmem:[#allocation17 + $0x2a8] sm:$0xf] }
 0x4f6   : > { %5055 = vmatpush.bf16.msra.mxu0 %v7109_v5  ;;  %v7946_v5 = vld [vmem:[#allocation17 + $0xcc] sm:$0xf]  ;;  %v7273_v63 = vor.u32 %v7982_v20, %v7270_v27  ;;  %v7046_v20 = vld [vmem:[#allocation17 + $0x38] sm:$0xf0] }
 0x4f7   : > { %v7129_v33 = vor.u32 %v7946_v5, %v7126_v40  ;;  %v7193_v5 = vor.u32 %v7962_v34, %v7190_v37  ;;  %v7348_v40 = vld [vmem:[#allocation17 + $0x288] sm:$0xf]  ;;  %v7318_v34 = vld [vmem:[#allocation17 + $0x258] sm:$0xf0] }
 0x4f9   : > { %5068 = vmatpush.bf16.msra.mxu1 %v7237_v45  ;;  %5042 = vmatpush.bf16.msrb.mxu3 %v7489_v38  ;;  %v7254_v45 = vld [vmem:[#allocation17 + $0x1d8] sm:$0xf0]  ;;  %v7365_v38 = vor.u32 %v8008_v32, %v7364_v22  ;;  %v7476_v32 = vld [vmem:[#allocation17 + $0x388] sm:$0xf] }
 0x4fa   : > { %5056 = vmatpush.bf16.msra.mxu0 %v7093_v6  ;;  %v7110_v6 = vld [vmem:[#allocation17 + $0xb8] sm:$0xf0]  ;;  %v7257_v50 = vor.u32 %v7978_v43, %v7254_v45 }
 0x4fb   : > { %v7113_v52 = vor.u32 %v7942_v47, %v7110_v6  ;;  %v7030_v43 = vld [vmem:[#allocation17 + $0x18] sm:$0xf0]  ;;  %v7332_v47 = vld [vmem:[#allocation17 + $0x268] sm:$0xf]  ;;  %v8000_v6 = vld [vmem:[#allocation17 + $0x274] sm:$0xf0] }
 0x4fc   : > { %v7334_v22 = vld [vmem:[#allocation17 + $0x278] sm:$0xf0] }
 0x4fd   : > { %5069 = vmatpush.bf16.msra.mxu1 %v7221_v28  ;;  %5009 = vmatmul.bf16.vlgmr.msrb.gmra.mxu0 %v9215_v23  ;;  %v7938_v28 = vld [vmem:[#allocation17 + $0x8c] sm:$0xf] }
 0x4fe   : > { %5057 = vmatpush.bf16.msra.mxu0 %v7077_v57  ;;  %5043 = vmatpush.bf16.msrb.mxu3 %v7473_v46  ;;  %v7438_v57 = vld [vmem:[#allocation17 + $0x350] sm:$0xf0]  ;;  %v7097_v3 = vor.u32 %v7938_v28, %v7094_v56  ;;  %v7177_v46 = vor.u32 %v7958_v15, %v7174_v2  ;;  %v7300_v28 = vld [vmem:[#allocation17 + $0x228] sm:$0xf]  ;;  %v7992_v56 = vld [vmem:[#allocation17 + $0x234] sm:$0xf0] }
 0x4ff   : > { %v7441_v7 = vor.u32 %v8025_v60, %v7438_v57  ;;  %v7301_v60 = vor.u32 %v7992_v56, %v7300_v28  ;;  %v7284_v57 = vld [vmem:[#allocation17 + $0x208] sm:$0xf]  ;;  %v7986_v15 = vld [vmem:[#allocation17 + $0x20c] sm:$0xf]  ;;  %v7286_v2 = vld [vmem:[#allocation17 + $0x218] sm:$0xf0] }
 0x500   : > { %5022 = vmatmul.bf16.vlgmr.msrb.gmra.mxu1 %v9218_v8  ;;  %v8038_v28 = vld [vmem:[#allocation17 + $0x3ac] sm:$0xf]  ;;  %v7494_v56 = vld [vmem:[#allocation17 + $0x3b8] sm:$0xf0] }
 0x501   : > { %5070 = vmatpush.bf16.msra.mxu1 %v7205_v16  ;;  %v7970_v16 = vld [vmem:[#allocation17 + $0x18c] sm:$0xf] }
 0x502   : > { %5058 = vmatpush.bf16.msra.mxu0 %v7061_v10  ;;  %5044 = vmatpush.bf16.msrb.mxu3 %v7457_v26  ;;  %v7225_v17 = vor.u32 %v7970_v16, %v7222_v44  ;;  %v7161_v26 = vor.u32 %v7954_v49, %v7158_v21  ;;  %v7401_v16 = vor.u32 %v8014_v62, %v7398_v48  ;;  %v8010_v44 = vld [vmem:[#allocation17 + $0x2cc] sm:$0xf]  ;;  %v7526_v21 = vld [vmem:[#allocation17 + $0x3f8] sm:$0xf0] }
 0x503   : > { %v8046_v49 = vld [vmem:[#allocation17 + $0x3ec] sm:$0xf] }
 0x504   : > { %v8030_v48 = vld [vmem:[#allocation17 + $0x36c] sm:$0xf] }
 0x505   : > { %5071 = vmatpush.bf16.msra.mxu1 %v7189_v35  ;;  %v7422_v35 = vld [vmem:[#allocation17 + $0x330] sm:$0xf0] }
 0x506   : > { %5059 = vmatpush.bf16.msra.mxu0 %v7045_v25  ;;  %5045 = vmatpush.bf16.msrb.mxu3 %v7441_v7  ;;  %v7966_v25 = vld [vmem:[#allocation17 + $0x16c] sm:$0xf]  ;;  %v7425_v29 = vor.u32 %v8021_v19, %v7422_v35  ;;  %v8044_v19 = vld [vmem:[#allocation17 + $0x3d4] sm:$0xf0] }
 0x507   : > { %v7209_v24 = vor.u32 %v7966_v25, %v7206_v31  ;;  %v7350_v25 = vld [vmem:[#allocation17 + $0x298] sm:$0xf0] }
 0x509   : > { %5072 = vmatpush.bf16.msra.mxu1 %v7173_v39  ;;  %v8017_v39 = vld [vmem:[#allocation17 + $0x304] sm:$0xf] }
 0x50a   : > { %5060 = vmatpush.bf16.msra.mxu0 %v7029_v42  ;;  %5046 = vmatpush.bf16.msrb.mxu3 %v7425_v29  ;;  %v7065_v42 = vor.u32 %v7930_v18, %v7062_v1  ;;  %v7409_v58 = vor.u32 %v8017_v39, %v7406_v55  ;;  %v7492_v29 = vld [vmem:[#allocation17 + $0x3a8] sm:$0xf]  ;;  %v8040_v18 = vld [vmem:[#allocation17 + $0x3b4] sm:$0xf0] }
 0x50b   : > { %v8036_v39 = vld [vmem:[#allocation17 + $0x394] sm:$0xf0] }
 0x50c   : > { %v7477_v37 = vor.u32 %v8036_v39, %v7476_v32 }
 0x50d   : > { %5073 = vmatpush.bf16.msra.mxu1 %v7157_v41  ;;  %5061 = vmatmul.bf16.vlgmr.msra.gmra.mxu0 %v9215_v23  ;;  %v4044_v36 = vpop.permute.xlu1 %4043  ;;  %v8004_v41 = vld [vmem:[#allocation17 + $0x294] sm:$0xf0] }
 0x50e   : > { %5105 = vmatpush.bf16.msrb.mxu0 %v7145_v0  ;;  %4046 = vst.msk [vmem:[#allocation2 + $0x10] sm:$0xff] %vm3808_vm2, %v4044_v36  ;;  %v7926_v0 = vld [vmem:[#allocation17 + $0x2c] sm:$0xf]  ;;  %5047 = vmatpush.bf16.msrb.mxu3 %v7409_v58  ;;  %v7349_v45 = vor.u32 %v8004_v41, %v7348_v40  ;;  %v7460_v58 = vld [vmem:[#allocation17 + $0x368] sm:$0xf] }
 0x50f   : > { %v7444_v40 = vld [vmem:[#allocation17 + $0x348] sm:$0xf]  ;;  %v8028_v41 = vld [vmem:[#allocation17 + $0x354] sm:$0xf0] }
 0x510   : > { %5074 = vmatmul.bf16.vlgmr.msra.gmra.mxu1 %v9218_v8 }
 0x511   : > { %5118 = vmatpush.bf16.msrb.mxu1 %v7273_v63  ;;  %v7049_v63 = vor.u32 %v7926_v0, %v7046_v20  ;;  %v8032_v0 = vld [vmem:[#allocation17 + $0x374] sm:$0xf0] }
 0x512   : > { %5106 = vmatpush.bf16.msrb.mxu0 %v7129_v33  ;;  %v7922_v33 = vld [vmem:[#allocation17 + $0xc] sm:$0xf] }
 0x513   : > { %v7033_v36 = vor.u32 %v7922_v33, %v7030_v43  ;;  %v7445_v33 = vor.u32 %v8028_v41, %v7444_v40  ;;  %v7428_v43 = vld [vmem:[#allocation17 + $0x328] sm:$0xf] }
 0x515   : > { %5119 = vmatpush.bf16.msrb.mxu1 %v7257_v50  ;;  %v4165_v11 = vld [vmem:[#allocation2 + $0x10] sm:$0xff]  ;;  %v7333_v50 = vor.u32 %v8000_v6, %v7332_v47 }
 0x516   : > { %5107 = vmatpush.bf16.msrb.mxu0 %v7113_v52  ;;  %v9227_v14 = vpack.c.bf16 %v4165_v11, %v4165_v11  ;;  %v7316_v52 = vld [vmem:[#allocation17 + $0x248] sm:$0xf]  ;;  %v8006_v11 = vld [vmem:[#allocation17 + $0x2ac] sm:$0xf] }
 0x517   : > { %v4099_v10 = vpop.f32.mrf.mxu1  ;;  %v7317_v54 = vor.u32 %v7996_v51, %v7316_v52  ;;  %v7412_v6 = vld [vmem:[#allocation17 + $0x308] sm:$0xf]  ;;  %v8042_v52 = vld [vmem:[#allocation17 + $0x3cc] sm:$0xf]  ;;  %v7510_v51 = vld [vmem:[#allocation17 + $0x3d8] sm:$0xf0] }
 0x518   : > { %4103 = vst.msk [vmem:[#allocation2 + $0x18] sm:$0xff] %vm3691_vm0, %v4099_v10  ;;  %4983 = vmatmul.bf16.vlgmr.msra.gmra.mxu2 %v9227_v14  ;;  %v7385_v10 = vor.u32 %v8010_v44, %v7382_v4  ;;  %v7446_v44 = vld [vmem:[#allocation17 + $0x358] sm:$0xf0] }
 0x519   : > { %5120 = vmatpush.bf16.msrb.mxu1 %v7241_v61  ;;  %5079 = vmatpush.bf16.msra.mxu2 %v7397_v53  ;;  %v7988_v61 = vld [vmem:[#allocation17 + $0x214] sm:$0xf0] }
 0x51a   : > { %5108 = vmatpush.bf16.msrb.mxu0 %v7097_v3  ;;  %v7285_v3 = vor.u32 %v7988_v61, %v7284_v57  ;;  %v8034_v57 = vld [vmem:[#allocation17 + $0x38c] sm:$0xf]  ;;  %v7478_v61 = vld [vmem:[#allocation17 + $0x398] sm:$0xf0] }
 0x51b   : > { %v7481_v62 = vor.u32 %v8034_v57, %v7478_v61  ;;  %v8230_v57 = vld [vmem:[%s8930_s30 + $0x8] sm:$0xff] }
 0x51d   : > { %5121 = vmatpush.bf16.msrb.mxu1 %v7225_v17  ;;  %5080 = vmatpush.bf16.msra.mxu2 %v7381_v30  ;;  %v7508_v17 = vld [vmem:[#allocation17 + $0x3c8] sm:$0xf]  ;;  %v7998_v30 = vld [vmem:[#allocation17 + $0x26c] sm:$0xf] }
 0x51e   : > { %5109 = vmatpush.bf16.msrb.mxu0 %v7081_v59  ;;  %v8002_v59 = vld [vmem:[#allocation17 + $0x28c] sm:$0xf]  ;;  %v7509_v31 = vor.u32 %v8044_v19, %v7508_v17  ;;  %v7337_v55 = vor.u32 %v7998_v30, %v7334_v22 }
 0x51f   : > { %v4101_v27 = vpop.f32.mrf.mxu1  ;;  %v7353_v1 = vor.u32 %v8002_v59, %v7350_v25  ;;  %v8018_v19 = vld [vmem:[#allocation17 + $0x30c] sm:$0xf] }
 0x520   : > { %v7990_v27 = vld [vmem:[#allocation17 + $0x22c] sm:$0xf] }
 0x521   : > { %5122 = vmatpush.bf16.msrb.mxu1 %v7209_v24  ;;  %5081 = vmatpush.bf16.msra.mxu2 %v7365_v38  ;;  %v7493_v24 = vor.u32 %v8040_v18, %v7492_v29  ;;  %v7302_v38 = vld [vmem:[#allocation17 + $0x238] sm:$0xf0] }
 0x522   : > { %5110 = vmatpush.bf16.msrb.mxu0 %v7065_v42  ;;  %v7994_v42 = vld [vmem:[#allocation17 + $0x24c] sm:$0xf] }
 0x523   : > { %v7321_v20 = vor.u32 %v7994_v42, %v7318_v34 }
 0x525   : > { %5123 = vmatpush.bf16.msrb.mxu1 %v7193_v5  ;;  %5082 = vmatpush.bf16.msra.mxu2 %v7349_v45  ;;  %v7461_v5 = vor.u32 %v8032_v0, %v7460_v58  ;;  %v8024_v45 = vld [vmem:[#allocation17 + $0x334] sm:$0xf0] }
 0x526   : > { %5111 = vmatpush.bf16.msrb.mxu0 %v7049_v63  ;;  %v7305_v63 = vor.u32 %v7990_v27, %v7302_v38  ;;  %v7429_v47 = vor.u32 %v8024_v45, %v7428_v43 }
 0x528   : > { %5035 = vmatmul.bf16.vlgmr.msrb.gmra.mxu2 %v9227_v14 }
 0x529   : > { %5124 = vmatpush.bf16.msrb.mxu1 %v7177_v46  ;;  %5083 = vmatpush.bf16.msra.mxu2 %v7333_v50  ;;  %v7289_v46 = vor.u32 %v7986_v15, %v7286_v2 }
 0x52a   : > { %5112 = vmatpush.bf16.msrb.mxu0 %v7033_v36  ;;  %v8020_v36 = vld [vmem:[#allocation17 + $0x314] sm:$0xf0] }
 0x52b   : > { %v7413_v50 = vor.u32 %v8020_v36, %v7412_v6 }
 0x52d   : > { %5113 = vmatmul.bf16.vlgmr.msrb.gmra.mxu0 %v9215_v23  ;;  %5125 = vmatpush.bf16.msrb.mxu1 %v7161_v26  ;;  %v7524_v23 = vld [vmem:[#allocation17 + $0x3e8] sm:$0xf]  ;;  %v7529_v26 = vor.u32 %v8046_v49, %v7526_v21 }
 0x52e   : > { %5084 = vmatpush.bf16.msra.mxu2 %v7317_v54  ;;  %v7525_v12 = vor.u32 %v8048_v9, %v7524_v23  ;;  %v7513_v54 = vor.u32 %v8042_v52, %v7510_v51 }
 0x530   : > { %5126 = vmatmul.bf16.vlgmr.msrb.gmra.mxu1 %v9218_v8  ;;  %v4160_v7 = vpop.permute.xlu1 %4159  ;;  %v7366_v8 = vld [vmem:[#allocation17 + $0x2b8] sm:$0xf0] }
 0x531   : > { %4162 = vst.msk [vmem:[#allocation2 + $0x18] sm:$0xff] %vm3808_vm2, %v4160_v7  ;;  %v7369_v35 = vor.u32 %v8006_v11, %v7366_v8  ;;  %v7462_v7 = vld [vmem:[#allocation17 + $0x378] sm:$0xf0] }
 0x532   : > { %5085 = vmatpush.bf16.msra.mxu2 %v7301_v60  ;;  %v7497_v60 = vor.u32 %v8038_v28, %v7494_v56  ;;  %v7430_v11 = vld [vmem:[#allocation17 + $0x338] sm:$0xf0] }
 0x536   : > { %5086 = vmatpush.bf16.msra.mxu2 %v7285_v3  ;;  %v7465_v3 = vor.u32 %v8030_v48, %v7462_v7 }
 0x538   : > { %v4166_v53 = vld [vmem:[#allocation2 + $0x18] sm:$0xff] }
 0x539   : > { %5087 = vmatmul.bf16.vlgmr.msra.gmra.mxu2 %v9227_v14  ;;  %v9235_v13 = vpack.c.bf16 %v4166_v53, %v4166_v53 }
 0x53a   : > { %5131 = vmatpush.bf16.msrb.mxu2 %v7401_v16  ;;  %v8026_v16 = vld [vmem:[#allocation17 + $0x34c] sm:$0xf] }
 0x53b   : > { %4996 = vmatmul.bf16.vlgmr.msra.gmra.mxu3 %v9235_v13  ;;  %v7449_v23 = vor.u32 %v8026_v16, %v7446_v44 }
 0x53c   : > { %5092 = vmatpush.bf16.msra.mxu3 %v7525_v12 }
 0x53e   : > { %5132 = vmatpush.bf16.msrb.mxu2 %v7385_v10  ;;  %v8022_v10 = vld [vmem:[#allocation17 + $0x32c] sm:$0xf] }
 0x53f   : > { %v7433_v12 = vor.u32 %v8022_v10, %v7430_v11 }
 0x540   : > { %5093 = vmatpush.bf16.msra.mxu3 %v7509_v31 }
 0x542   : > { %5133 = vmatpush.bf16.msrb.mxu2 %v7369_v35  ;;  %v7414_v35 = vld [vmem:[#allocation17 + $0x318] sm:$0xf0] }
 0x543   : > { %v7417_v59 = vor.u32 %v8018_v19, %v7414_v35 }
 0x544   : > { %5094 = vmatpush.bf16.msra.mxu3 %v7493_v24 }
 0x546   : > { %5134 = vmatpush.bf16.msrb.mxu2 %v7353_v1 }
 0x548   : > { %5095 = vmatpush.bf16.msra.mxu3 %v7477_v37 }
 0x54a   : > { %5135 = vmatpush.bf16.msrb.mxu2 %v7337_v55 }
 0x54b   : > { %5048 = vmatmul.bf16.vlgmr.msrb.gmra.mxu3 %v9235_v13 }
 0x54c   : > { %5096 = vmatpush.bf16.msra.mxu3 %v7461_v5 }
 0x54e   : > { %5136 = vmatpush.bf16.msrb.mxu2 %v7321_v20 }
 0x550   : > { %5097 = vmatpush.bf16.msra.mxu3 %v7445_v33 }
 0x552   : > { %5137 = vmatpush.bf16.msrb.mxu2 %v7305_v63 }
 0x554   : > { %5098 = vmatpush.bf16.msra.mxu3 %v7429_v47 }
 0x556   : > { %5138 = vmatpush.bf16.msrb.mxu2 %v7289_v46 }
 0x558   : > { %5099 = vmatpush.bf16.msra.mxu3 %v7413_v50 }
 0x559   : > { %5139 = vmatmul.bf16.vlgmr.msrb.gmra.mxu2 %v9227_v14  ;;  %v4299_v14 = vld [vmem:[%s9294_s10] sm:$0xf] }
 0x55a   : > { %v4301_v4 = vperm.slane %v4299_v14, 0  ;;  %v4302_v29 = vperm.slane %v4299_v14, 1  ;;  %v4303_v39 = vperm.slane %v4299_v14, 2  ;;  %v4304_v5 = vperm.slane %v4299_v14, 3  ;;  %v8232_v14 = vld [vmem:[%s8930_s30 + $0x10] sm:$0xff] }
 0x55b   : > { %5100 = vmatmul.bf16.vlgmr.msra.gmra.mxu3 %v9235_v13 }
 0x55c   : > { %5144 = vmatpush.bf16.msrb.mxu3 %v7529_v26 }
 0x560   : > { %5145 = vmatpush.bf16.msrb.mxu3 %v7513_v54 }
 0x564   : > { %5146 = vmatpush.bf16.msrb.mxu3 %v7497_v60 }
 0x568   : > { %5147 = vmatpush.bf16.msrb.mxu3 %v7481_v62  ;;  %v8231_v62 = vld [vmem:[%s8930_s30] sm:$0xff] }
 0x56a   : > { %v4958_v9 = vpop.f32.mrf.mxu0 }
 0x56b   : > { %v4959_v8 = vadd.f32 %v4958_v9, %v4301_v4 }
 0x56c   : > { %5148 = vmatpush.bf16.msrb.mxu3 %v7465_v3 }
 0x56d   : > { %v4971_v53 = vpop.f32.mrf.mxu1 }
 0x56e   : > { %v4972_v17 = vadd.f32 %v4971_v53, %v4959_v8  ;;  %v8665_v53 = vmov 512.0  }
 0x56f   : > { %8226 = vrcp.f32 %v8665_v53 }
 0x570   : > { %5149 = vmatpush.bf16.msrb.mxu3 %v7449_v23  ;;  %v8233_v23 = vld [vmem:[%s8930_s30 + $0x18] sm:$0xff]  ;;  %s8578_s30 = sshra.s32 %s5252_s7, 4  ;;  %s8579_s30 = int_to_ptr.hbm [resolvable:$true] %s8578_s30 }
 0x571   : > { %s8580_s16 = scalar_lea.hbm %s8579_s30, 32  ;;  %p8585_p13 = scmp.lt.s32.totalorder %s8579_s30, %s9351_s3 }
 0x572   : > { %v4960_v25 = vpop.f32.mrf.mxu0  ;;  %p8581_p10 = scmp.ne.s32.totalorder %s8579_s30, %s8580_s16  ;;  %p8586_p3 = scmp.lt.s32.totalorder %s8584_s22, %s8580_s16 }
 0x574   : > { %5150 = vmatpush.bf16.msrb.mxu3 %v7433_v12  ;;  %p8582_p6 = pnand %p8581_p10, %p8827_p4  ;;  %p8587_p7 = por %p8586_p3, %p8585_p13 }
 0x575   : > { %v4973_v31 = vpop.f32.mrf.mxu1  ;;  %v8227_v12 = vpop.eup %8226 }
 0x576   : > { %vm5171_vm3 = vweird.f32 %v8227_v12  ;;  %p8583_p11 = pneg %p8582_p6 }
 0x578   : > { %5151 = vmatpush.bf16.msrb.mxu3 %v7417_v59  ;;  %p8588_p9 = pnand %p8587_p7, %p8583_p11 }
 0x57a   : > { %v5010_v18 = vpop.f32.mrf.mxu0 }
 0x57b   : > { %5152 = vmatmul.bf16.vlgmr.msrb.gmra.mxu3 %v9235_v13  ;;  %v5011_v1 = vadd.f32 %v5010_v18, %v4302_v29 }
 0x57d   : > { %v5023_v30 = vpop.f32.mrf.mxu1 }
 0x57e   : > { %v5024_v22 = vadd.f32 %v5023_v30, %v5011_v1 }
 0x582   : > { %v5012_v24 = vpop.f32.mrf.mxu0 }
 0x585   : > { %v5025_v32 = vpop.f32.mrf.mxu1 }
 0x58a   : > { %v5062_v55 = vpop.f32.mrf.mxu0 }
 0x58b   : > { %v5063_v42 = vadd.f32 %v5062_v55, %v4303_v39 }
 0x58d   : > { %v5075_v34 = vpop.f32.mrf.mxu1 }
 0x58e   : > { %v5076_v37 = vadd.f32 %v5075_v34, %v5063_v42 }
 0x592   : > { %v5064_v58 = vpop.f32.mrf.mxu0 }
 0x595   : > { %v5077_v0 = vpop.f32.mrf.mxu1 }
 0x59b   : > { %v4984_v20 = vpop.f32.mrf.mxu2 }
 0x59c   : > { %v4985_v27 = vadd.f32 %v4984_v20, %v4972_v17  ;;  %v5167_v17 = vmul.f32 512.0, %v8227_v12 }
 0x59e   : > { %v5168_v19 = vsub.f32 1.0, %v5167_v17 }
 0x5a0   : > { %v5169_v35 = vmul.f32 %v8227_v12, %v5168_v19 }
 0x5a2   : > { %v5170_v59 = vadd.f32 %v8227_v12, %v5169_v35 }
 0x5a3   : > { %v4986_v38 = vpop.f32.mrf.mxu2 }
 0x5a4   : > { %v5172_v25 = vsel %vm5171_vm3, %v8227_v12, %v5170_v59 }
 0x5aa   : > { %v5114_v40 = vpop.f32.mrf.mxu0 }
 0x5ab   : > { %v5115_v41 = vadd.f32 %v5114_v40, %v4304_v5  ;;  %v5036_v15 = vpop.f32.mrf.mxu2 }
 0x5ac   : > { %v5037_v2 = vadd.f32 %v5036_v15, %v5024_v22 }
 0x5ad   : > { %v5127_v13 = vpop.f32.mrf.mxu1 }
 0x5ae   : > { %v5128_v63 = vadd.f32 %v5127_v13, %v5115_v41  ;;  %v5203_v41 = vld [vmem:[#allocation18] sm:$0xf] }
 0x5b2   : > { %v5116_v33 = vpop.f32.mrf.mxu0 }
 0x5b3   : > { %v5038_v45 = vpop.f32.mrf.mxu2  ;;  %v5206_v33 = vperm.slane %v5203_v41, 1 }
 0x5b4   : > { %v5208_v45 = vperm.slane %v5203_v41, 3 }
 0x5b5   : > { %v5129_v43 = vpop.f32.mrf.mxu1 }
 0x5b6   : > { %v5207_v43 = vperm.slane %v5203_v41, 2 }
 0x5bc   : > { %v5088_v46 = vpop.f32.mrf.mxu2 }
 0x5bd   : > { %v5089_v54 = vadd.f32 %v5088_v46, %v5076_v37 }
 0x5be   : > { %v4997_v47 = vpop.f32.mrf.mxu3 }
 0x5bf   : > { %v4998_v56 = vadd.f32 %v4997_v47, %v4985_v27 }
 0x5c1   : > { %v5157_v48 = vadd.f32 %v8231_v62, %v4998_v56 }
 0x5c4   : > { %v5090_v6 = vpop.f32.mrf.mxu2 }
 0x5c6   : > { %v4999_v36 = vpop.f32.mrf.mxu3 }
 0x5ce   : > { %v5049_v49 = vpop.f32.mrf.mxu3 }
 0x5cf   : > { %v5050_v28 = vadd.f32 %v5049_v49, %v5037_v2  ;;  %v5205_v2 = vperm.slane %v5203_v41, 0 }
 0x5d1   : > { %v5158_v61 = vadd.f32 %v8230_v57, %v5050_v28 }
 0x5d3   : > { %v5161_v44 = vadd.f32 %v5158_v61, %v5157_v48 }
 0x5d6   : > { %v5051_v21 = vpop.f32.mrf.mxu3 }
 0x5dc   : > { %v5140_v50 = vpop.f32.mrf.mxu2 }
 0x5dd   : > { %v5141_v7 = vadd.f32 %v5140_v50, %v5128_v63  ;;  %v5217_v63 = vld [vmem:[#allocation20] sm:$0xf] }
 0x5de   : > { %v5101_v26 = vpop.f32.mrf.mxu3  ;;  %v5219_v46 = vperm.slane %v5217_v63, 0  ;;  %v5220_v47 = vperm.slane %v5217_v63, 1  ;;  %v5221_v6 = vperm.slane %v5217_v63, 2 }
 0x5df   : > { %v5102_v60 = vadd.f32 %v5101_v26, %v5089_v54 }
 0x5e1   : > { %v5159_v3 = vadd.f32 %v8232_v14, %v5102_v60 }
 0x5e3   : > { %v5162_v10 = vadd.f32 %v5161_v44, %v5159_v3 }
 0x5e4   : > { %v5142_v52 = vpop.f32.mrf.mxu2 }
 0x5e5   : > { %v5222_v52 = vperm.slane %v5217_v63, 3 }
 0x5e6   : > { %v5103_v51 = vpop.f32.mrf.mxu3 }
 0x5fe   : > { %v5153_v16 = vpop.f32.mrf.mxu3 }
 0x5ff   : > { %v5154_v4 = vadd.f32 %v5153_v16, %v5141_v7 }
 0x601   : > { %v5160_v9 = vadd.f32 %v8233_v23, %v5154_v4 }
 0x603   : > { %v5163_v11 = vadd.f32 %v5162_v10, %v5160_v9 }
 0x605   : > { %5164 = vadd.xlane.f32.xlu1 %v5163_v11 }
 0x606   : > { %v5155_v8 = vpop.f32.mrf.mxu3 }
 0x678   : > { %v5165_v31 = vpop.xlane.xlu1 %5164 }
 0x679   : > { %v5173_v29 = vmul.f32 %v5172_v25, %v5165_v31 }
 0x67b   : > { %v5174_v18 = vsub.f32 %v5157_v48, %v5173_v29  ;;  %v5175_v1 = vsub.f32 %v5158_v61, %v5173_v29  ;;  %v5176_v30 = vsub.f32 %v5159_v3, %v5173_v29  ;;  %v5177_v22 = vsub.f32 %v5160_v9, %v5173_v29 }
 0x67d   : > { %v5178_v24 = vmul.f32 %v5174_v18, %v5174_v18  ;;  %v5179_v32 = vmul.f32 %v5175_v1, %v5175_v1  ;;  %v5180_v39 = vmul.f32 %v5176_v30, %v5176_v30  ;;  %v5181_v42 = vmul.f32 %v5177_v22, %v5177_v22 }
 0x67f   : > { %v5182_v55 = vadd.f32 %v5179_v32, %v5178_v24 }
 0x681   : > { %v5183_v34 = vadd.f32 %v5182_v55, %v5180_v39 }
 0x683   : > { %v5184_v37 = vadd.f32 %v5183_v34, %v5181_v42 }
 0x685   : > { %5185 = vadd.xlane.f32.xlu0 %v5184_v37 }
 0x6f8   : > { %v5186_v58 = vpop.xlane.xlu0 %5185 }
 0x6f9   : > { %v5187_v0 = vmul.f32 %v5186_v58, %v5172_v25 }
 0x6fb   : > { %v5188_v20 = vadd.f32 1e-12, %v5187_v0 }
 0x6fd   : > { %8228 = vrsqrt.f32 %v5188_v20  ;;  %vm5195_vm5 = vweird.f32 %v5188_v20 }
 0x703   : > { %v8229_v27 = vpop.eup %8228 }
 0x704   : > { %v5190_v38 = vmul.f32 %v8229_v27, %v5188_v20  ;;  %vm5196_vm4 = vweird.f32 %v8229_v27 }
 0x705   : > { %vm5197_vm6 = vmor %vm5195_vm5, %vm5196_vm4 }
 0x706   : > { %v5191_v5 = vmul.f32 %v8229_v27, %v5190_v38 }
 0x708   : > { %v5192_v40 = vmul.f32 0.5, %v5191_v5 }
 0x70a   : > { %v5193_v13 = vsub.f32 1.5, %v5192_v40 }
 0x70c   : > { %v5194_v15 = vmul.f32 %v8229_v27, %v5193_v13 }
 0x70e   : > { %v5198_v36 = vsel %vm5197_vm6, %v8229_v27, %v5194_v15 }
 0x70f   : > { %v5199_v49 = vmul.f32 %v5198_v36, %v5174_v18  ;;  %v5200_v21 = vmul.f32 %v5198_v36, %v5175_v1  ;;  %v5201_v50 = vmul.f32 %v5198_v36, %v5176_v30  ;;  %v5202_v26 = vmul.f32 %v5198_v36, %v5177_v22 }
 0x711   : > { %v5213_v51 = vmul.f32 %v5205_v2, %v5199_v49  ;;  %v5214_v54 = vmul.f32 %v5206_v33, %v5200_v21  ;;  %v5215_v28 = vmul.f32 %v5207_v43, %v5201_v50  ;;  %v5216_v56 = vmul.f32 %v5208_v45, %v5202_v26 }
 0x713   : > { %v5227_v60 = vadd.f32 %v5219_v46, %v5213_v51  ;;  %v5228_v57 = vadd.f32 %v5220_v47, %v5214_v54  ;;  %v5229_v61 = vadd.f32 %v5221_v6, %v5215_v28  ;;  %v5230_v62 = vadd.f32 %v5222_v52, %v5216_v56 }
 0x715   : > { %5231 = vst [vmem:[%s656_s1] sm:$0xff] %v5227_v60 }
 0x716   : > { %5232 = vst [vmem:[%s656_s1 + $0x8] sm:$0xff] %v5228_v57 }
 0x717   : > { %5233 = vst [vmem:[%s656_s1 + $0x10] sm:$0xff] %v5229_v61 }
 0x718   : > { %5234 = vst [vmem:[%s656_s1 + $0x18] sm:$0xff] %v5230_v62 }
 0x719   : > { %8591 = shalt.err (!%p8588_p9)
}
 0x71a   : > { %8088 = dma.vmem_to_hbm [thread:$0]  (%p8827_p4), %s5250_s4, 512, %s5252_s7, %s5236_s18  }
 0x71b PF: > { %s9353_s24 = sld [smem:[#allocation29_spill]]  ;;  %p9355_p0 = scmp.ge.s32.totalorder %s8650_s28, 2 }
 0x71d   : > { %p8126_p2 = pnand %p9355_p0, %p8831_p5 }
 0x71f   : > { %p8127_p1 = pneg %p8126_p2 }
 0x721   : > { %s5263_s11 = sand.u32 1, %s9353_s24  }
 0x722   : > { %s5264_s27 = scalar_lea.sflag [#allocation5], %s5263_s11 }
 0x723   : > { %8633 = dma.done.wait (%p8127_p1), %s5264_s27, 512  }
 0x724   : > { %8635 = vsyncadd (%p8127_p1), %s5264_s27, 4294966784  ;;  %s9356_s28 = sld [smem:[#allocation31_spill]]  ;;  %s9359_s25 = smov %s8642_s26 }
 0x725   : > { %s9357_s29 = sld [smem:[#allocation30_spill]] }
 0x726   : > { %s9358_s27 = sld [smem:[#allocation32_spill]] }
 0x72a   : > { %p33_p12 = scmp.ge.s32.totalorder %s9356_s28, 4  }
 0x72b   : > { %s9360_s26 = smov %s9357_s29 }
 0x72c   :  { %35 = sbr.rel (!%p33_p12) target bundleno = 21 (0x15), region = 173 }
 0x731   :  { %5270 = vsyncpa [#allocation4], 1 }
 0x732   :  { %5272 = vsyncpa [#allocation4 + $0x1], 1 }
 0x733   :  { %5273 = vsyncpa [#allocation7], 1 }
 0x734   :  { %5275 = vsyncpa [#allocation7 + $0x1], 1 }
 0x735   :  { %5276 = vsyncpa [#allocation10], 1 }
 0x736   :  { %5277 = vsyncpa [#allocation13], 1 }
 0x737   :  { %5278 = vsyncpa [#allocation16], 1 }
 0x738   :  { %5279 = vsyncpa [#allocation19], 1 }
 0x739   :  { %5280 = vsyncpa [#allocation5], 1 }
 0x73a   :  { %5282 = vsyncpa [#allocation5 + $0x1], 1 }

</bundles_post_ra>
